<compile_context>
chip_gen: v5e
topology: v5e:2x2
jax: 0.10.0
libtpu: 0.0.40
codegen_flags: <defaults>
</compile_context>

<pallas_src>
import functools

import numpy as np
import jax
import jax.numpy as jnp
from jax import lax
from jax.experimental import pallas as pl
from jax.experimental.pallas import tpu as pltpu

LANE = 128


# ----------------------------- Pallas kernel --------------------------------
def _bottleneck_kernel(H, W, stride,
                       x_ref, w1_ref, b1_ref, w2_ref, b2_ref,
                       w3_ref, b3_ref, wd_ref, bd_ref,
                       o_ref, pad_ref, col_ref, pool_ref):
    HW = H * W
    Ho, Wo = H // stride, W // stride
    HWo = Ho * Wo
    P = w1_ref.shape[-1]                       # padded mid-channel count

    def avg_pool(v):
        """(HW, C) f32 -> (HWo, C) f32 average over stride x stride windows."""
        if stride == 1:
            return v
        C = v.shape[-1]
        pool_ref[:, :C] = v
        # pool along W: groups of `stride` consecutive flat rows (W % stride == 0)
        u = pool_ref[pl.ds(0, HW // stride, stride=stride), :C]
        for b in range(1, stride):
            u = u + pool_ref[pl.ds(b, HW // stride, stride=stride), :C]
        # pool along H: rows of u are (h, wo); group h in blocks of `stride`
        u = u.reshape(Ho, stride, Wo, C)
        acc = u[:, 0]
        for a in range(1, stride):
            acc = acc + u[:, a]
        return (acc * (1.0 / (stride * stride))).reshape(HWo, C)

    x = x_ref[0]                                                    # (HW, Cin) bf16

    # ---- conv1 (1x1, BN scale folded into weights) + bias + relu ----------
    h1 = jnp.dot(x, w1_ref[...], preferred_element_type=jnp.float32)
    h1 = jnp.maximum(h1 + b1_ref[...], 0.0)                         # (HW, P) f32

    # ---- conv2 (3x3, padding=1): zero-padded tile + im2col, one matmul ----
    pad_ref[...] = jnp.zeros_like(pad_ref)
    pad_ref[1:H + 1, 1:W + 1, :] = h1.reshape(H, W, P)
    t = 0
    for kh in range(3):
        for kw in range(3):
            col_ref[:, t * P:(t + 1) * P] = (
                pad_ref[kh:kh + H, kw:kw + W, :]
                .reshape(HW, P).astype(col_ref.dtype))
            t += 1
    h2 = jnp.dot(col_ref[...], w2_ref[...], preferred_element_type=jnp.float32)
    h2 = jnp.maximum(h2 + b2_ref[...], 0.0)                         # (HW, P) f32

    # ---- avgpool(stride) on both branches (VPU adds, identity if stride==1)
    h2p = avg_pool(h2)                                              # (HWo, P)
    xid = avg_pool(x.astype(jnp.float32))                           # (HWo, Cin)

    # ---- conv3 (1x1) + bias -------------------------------------------------
    h3 = jnp.dot(h2p.astype(jnp.bfloat16), w3_ref[...],
                 preferred_element_type=jnp.float32) + b3_ref[...]
    # ---- downsample branch: avgpool -> 1x1 conv -> bias ---------------------
    idt = jnp.dot(xid.astype(jnp.bfloat16), wd_ref[...],
                  preferred_element_type=jnp.float32) + bd_ref[...]

    # ---- residual add + final relu ------------------------------------------
    o_ref[0] = jnp.maximum(h3 + idt, 0.0).astype(o_ref.dtype)


# ----------------------------- host-side glue --------------------------------
def _round_up(n, m):
    return (n + m - 1) // m * m


def _pad_to(x, axis, size):
    pad = size - x.shape[axis]
    if pad == 0:
        return x
    widths = [(0, 0)] * x.ndim
    widths[axis] = (0, pad)
    return jnp.pad(x, widths)


def bottleneck_pallas(x_nhwc, params, stride):
    N, H, W, Cin = x_nhwc.shape
    assert H % stride == 0 and W % stride == 0
    Ho, Wo = H // stride, W // stride
    HW, HWo = H * W, Ho * Wo
    P = params["w1"].shape[1]
    Cout = params["w3"].shape[1]

    Cin_p = _round_up(Cin, LANE)
    P_p = _round_up(P, LANE)
    Cout_p = _round_up(Cout, LANE)
    Cmax = max(Cin_p, P_p)

    # Fold BN scales into weights, pad channels to lane multiples, cast to bf16.
    w1 = _pad_to(_pad_to(params["w1"] * params["s1"], 0, Cin_p), 1, P_p)
    w1 = w1.astype(jnp.bfloat16)
    b1 = _pad_to(params["b1"], 1, P_p).astype(jnp.float32)

    w2 = params["w2"] * params["s2"].reshape(1, 1, 1, P)              # HWIO
    w2 = _pad_to(_pad_to(w2, 2, P_p), 3, P_p)
    w2 = w2.reshape(9 * P_p, P_p).astype(jnp.bfloat16)
    b2 = _pad_to(params["b2"], 1, P_p).astype(jnp.float32)

    w3 = _pad_to(_pad_to(params["w3"] * params["s3"], 0, P_p), 1, Cout_p)
    w3 = w3.astype(jnp.bfloat16)
    b3 = _pad_to(params["b3"], 1, Cout_p).astype(jnp.float32)

    wd = _pad_to(_pad_to(params["wd"] * params["sd"], 0, Cin_p), 1, Cout_p)
    wd = wd.astype(jnp.bfloat16)
    bd = _pad_to(params["bd"], 1, Cout_p).astype(jnp.float32)

    x_flat = _pad_to(x_nhwc.reshape(N, HW, Cin), 2, Cin_p).astype(jnp.bfloat16)

    def const_spec(shape):
        nd = len(shape)
        return pl.BlockSpec(shape, lambda n, _nd=nd: (0,) * _nd)

    in_specs = [
        pl.BlockSpec((1, HW, Cin_p), lambda n: (n, 0, 0)),   # x
        const_spec((Cin_p, P_p)), const_spec((1, P_p)),      # conv1 / bias1
        const_spec((9 * P_p, P_p)), const_spec((1, P_p)),    # conv2 / bias2
        const_spec((P_p, Cout_p)), const_spec((1, Cout_p)),  # conv3 / bias3
        const_spec((Cin_p, Cout_p)), const_spec((1, Cout_p)),  # downsample
    ]
    out_spec = pl.BlockSpec((1, HWo, Cout_p), lambda n: (n, 0, 0))

    scratch_shapes = [
        pltpu.VMEM((H + 2, W + 2, P_p), jnp.float32),   # zero-padded h1 tile
        pltpu.VMEM((HW, 9 * P_p), jnp.bfloat16),        # im2col
        pltpu.VMEM((HW, Cmax), jnp.float32),            # pooling staging
    ]

    kernel = functools.partial(_bottleneck_kernel, H, W, stride)

    out_flat = pl.pallas_call(
        kernel,
        out_shape=jax.ShapeDtypeStruct((N, HWo, Cout_p), jnp.float32),
        grid_spec=pltpu.PrefetchScalarGridSpec(
            num_scalar_prefetch=0,
            grid=(N,),
            in_specs=in_specs,
            out_specs=out_spec,
            scratch_shapes=scratch_shapes,
        ),
        compiler_params=pltpu.CompilerParams(
            dimension_semantics=("parallel",),
            vmem_limit_bytes=64 * 1024 * 1024,
        ),
    )(x_flat, w1, b1, w2, b2, w3, b3, wd, bd)

    return out_flat[:, :, :Cout].reshape(N, Ho, Wo, Cout)


# ----------------------------- pure-JAX reference ----------------------------
def bottleneck_ref(x_nhwc, params, stride):
    h1 = jnp.einsum("nhwc,cp->nhwp", x_nhwc, params["w1"])
    h1 = jnp.maximum(h1 * params["s1"] + params["b1"], 0.0)
    h2 = lax.conv_general_dilated(
        h1, params["w2"], window_strides=(1, 1), padding=((1, 1), (1, 1)),
        dimension_numbers=("NHWC", "HWIO", "NHWC"))
    h2 = jnp.maximum(h2 * params["s2"] + params["b2"], 0.0)
    N, H, W, P = h2.shape
    Ho, Wo = H // stride, W // stride
    h2p = h2.reshape(N, Ho, stride, Wo, stride, P).mean(axis=(2, 4))
    h3 = jnp.einsum("nhwp,pq->nhwq", h2p, params["w3"]) * params["s3"] + params["b3"]
    Cin = x_nhwc.shape[-1]
    xid = x_nhwc.reshape(N, Ho, stride, Wo, stride, Cin).mean(axis=(2, 4))
    idt = jnp.einsum("nhwc,cq->nhwq", xid, params["wd"]) * params["sd"] + params["bd"]
    return jnp.maximum(h3 + idt, 0.0)


# ----------------------------- parameter init --------------------------------
def _bn_fold(key, c, eps=1e-5):
    k1, k2, k3, k4 = jax.random.split(key, 4)
    gamma = 0.5 + jax.random.uniform(k1, (c,), jnp.float32)
    beta = 0.1 * jax.random.normal(k2, (c,), jnp.float32)
    mean = 0.1 * jax.random.normal(k3, (c,), jnp.float32)
    var = 0.5 + jax.random.uniform(k4, (c,), jnp.float32)
    scale = gamma / jnp.sqrt(var + eps)
    bias = beta - mean * scale
    return scale.reshape(1, c), bias.reshape(1, c)


def make_params(key, inplanes, planes, expansion=4):
    cout = planes * expansion
    ks = jax.random.split(key, 8)
    w1 = jax.random.normal(ks[0], (inplanes, planes), jnp.float32) / np.sqrt(inplanes)
    w2 = jax.random.normal(ks[1], (3, 3, planes, planes), jnp.float32) / np.sqrt(9 * planes)
    w3 = jax.random.normal(ks[2], (planes, cout), jnp.float32) / np.sqrt(planes)
    wd = jax.random.normal(ks[3], (inplanes, cout), jnp.float32) / np.sqrt(inplanes)
    s1, b1 = _bn_fold(ks[4], planes)
    s2, b2 = _bn_fold(ks[5], planes)
    s3, b3 = _bn_fold(ks[6], cout)
    sd, bd = _bn_fold(ks[7], cout)
    return dict(w1=w1, s1=s1, b1=b1, w2=w2, s2=s2, b2=b2,
                w3=w3, s3=s3, b3=b3, wd=wd, sd=sd, bd=bd)


# ----------------------------------- main -------------------------------------
if __name__ == "__main__":
    inplanes, planes, stride = 4, 4, 2         # downsample branch active
    N, H, W = 2, 16, 16

    key = jax.random.PRNGKey(0)
    kx, kp = jax.random.split(key)
    x_nchw = jax.random.normal(kx, (N, inplanes, H, W), jnp.float32)  # PyTorch layout
    x_nhwc = jnp.transpose(x_nchw, (0, 2, 3, 1))                      # kernel layout

    params = make_params(kp, inplanes, planes)

    out = jax.block_until_ready(bottleneck_pallas(x_nhwc, params, stride))
    ref = jax.block_until_ready(bottleneck_ref(x_nhwc, params, stride))

    err = float(jnp.max(jnp.abs(out - ref)))
    assert out.shape == (N, H // stride, W // stride, planes * 4), out.shape
    # bf16 MXU operands with f32 accumulation vs. pure-f32 reference
    assert err < 1e-1, f"max abs error {err}"
    print("KERNEL_OK")
</pallas_src>

<mosaic_0001>
module attributes {stable_mosaic.version = 11 : i64} {
  func.func @_bottleneck_kernel(%arg0: i32, %arg1: memref<1x256x128xbf16, #tpu.memory_space<vmem>>, %arg2: memref<128x128xbf16, #tpu.memory_space<vmem>>, %arg3: memref<1x128xf32, #tpu.memory_space<vmem>>, %arg4: memref<1152x128xbf16, #tpu.memory_space<vmem>>, %arg5: memref<1x128xf32, #tpu.memory_space<vmem>>, %arg6: memref<128x128xbf16, #tpu.memory_space<vmem>>, %arg7: memref<1x128xf32, #tpu.memory_space<vmem>>, %arg8: memref<128x128xbf16, #tpu.memory_space<vmem>>, %arg9: memref<1x128xf32, #tpu.memory_space<vmem>>, %arg10: memref<1x64x128xf32, #tpu.memory_space<vmem>>, %arg11: memref<18x18x128xf32, #tpu.memory_space<vmem>>, %arg12: memref<256x1152xbf16, #tpu.memory_space<vmem>>, %arg13: memref<256x128xf32, #tpu.memory_space<vmem>>) attributes {dimension_semantics = [#tpu.dimension_semantics<parallel>], iteration_bounds = array<i64: 2>, scalar_prefetch = 0 : i64, scratch_operands = 3 : i64, tpu.core_type = #tpu.core_type<tc>, window_params = [{transform_indices = @transform_0, window_bounds = array<i64: 1, 256, 128>}, {pipeline_mode = #tpu.pipeline_mode<synchronous>, transform_indices = @transform_1, window_bounds = array<i64: 128, 128>}, {pipeline_mode = #tpu.pipeline_mode<synchronous>, transform_indices = @transform_2, window_bounds = array<i64: 1, 128>}, {pipeline_mode = #tpu.pipeline_mode<synchronous>, transform_indices = @transform_3, window_bounds = array<i64: 1152, 128>}, {pipeline_mode = #tpu.pipeline_mode<synchronous>, transform_indices = @transform_4, window_bounds = array<i64: 1, 128>}, {pipeline_mode = #tpu.pipeline_mode<synchronous>, transform_indices = @transform_5, window_bounds = array<i64: 128, 128>}, {pipeline_mode = #tpu.pipeline_mode<synchronous>, transform_indices = @transform_6, window_bounds = array<i64: 1, 128>}, {pipeline_mode = #tpu.pipeline_mode<synchronous>, transform_indices = @transform_7, window_bounds = array<i64: 128, 128>}, {pipeline_mode = #tpu.pipeline_mode<synchronous>, transform_indices = @transform_8, window_bounds = array<i64: 1, 128>}, {transform_indices = @transform_9, window_bounds = array<i64: 1, 64, 128>}]} {
    %c0 = arith.constant 0 : index
    %c0_0 = arith.constant 0 : index
    %c0_1 = arith.constant 0 : index
    %0 = vector.load %arg1[%c0, %c0_0, %c0_1] : memref<1x256x128xbf16, #tpu.memory_space<vmem>>, vector<1x256x128xbf16>
    %1 = vector.shape_cast %0 : vector<1x256x128xbf16> to vector<256x128xbf16>
    %c0_2 = arith.constant 0 : index
    %c0_3 = arith.constant 0 : index
    %2 = vector.load %arg2[%c0_2, %c0_3] : memref<128x128xbf16, #tpu.memory_space<vmem>>, vector<128x128xbf16>
    %cst = arith.constant dense<0.000000e+00> : vector<256x128xf32>
    %3 = tpu.matmul %1, %2, %cst {dimension_numbers = #tpu.dot_dimension_numbers<[1], [0], [0], [1], [0, 0, 1, 1], [], []>} : vector<256x128xbf16>, vector<128x128xbf16>, vector<256x128xf32> -> vector<256x128xf32>
    %c0_4 = arith.constant 0 : index
    %c0_5 = arith.constant 0 : index
    %4 = vector.load %arg3[%c0_4, %c0_5] : memref<1x128xf32, #tpu.memory_space<vmem>>, vector<1x128xf32>
    %5 = vector.broadcast %4 : vector<1x128xf32> to vector<256x128xf32>
    %6 = arith.addf %3, %5 : vector<256x128xf32>
    %cst_6 = arith.constant 0.000000e+00 : f32
    %7 = vector.broadcast %cst_6 : f32 to vector<256x128xf32>
    %8 = arith.maximumf %6, %7 : vector<256x128xf32>
    %cst_7 = arith.constant 0.000000e+00 : f32
    %9 = vector.broadcast %cst_7 : f32 to vector<18x18x128xf32>
    %c0_8 = arith.constant 0 : index
    %c0_9 = arith.constant 0 : index
    %c0_10 = arith.constant 0 : index
    %10 = vector.load %arg11[%c0_8, %c0_9, %c0_10] : memref<18x18x128xf32, #tpu.memory_space<vmem>>, vector<18x18x128xf32>
    tpu.vector_store %arg11[%c0_8, %c0_9, %c0_10], %9 {strides = array<i32>} : memref<18x18x128xf32, #tpu.memory_space<vmem>>, vector<18x18x128xf32>,
    %11 = vector.shape_cast %8 : vector<256x128xf32> to vector<16x16x128xf32>
    %c1 = arith.constant 1 : index
    %c1_11 = arith.constant 1 : index
    %c0_12 = arith.constant 0 : index
    %12 = vector.load %arg11[%c1, %c1_11, %c0_12] : memref<18x18x128xf32, #tpu.memory_space<vmem>>, vector<16x16x128xf32>
    tpu.vector_store %arg11[%c1, %c1_11, %c0_12], %11 {strides = array<i32>} : memref<18x18x128xf32, #tpu.memory_space<vmem>>, vector<16x16x128xf32>,
    %c0_13 = arith.constant 0 : index
    %c0_14 = arith.constant 0 : index
    %c0_15 = arith.constant 0 : index
    %13 = vector.load %arg11[%c0_13, %c0_14, %c0_15] : memref<18x18x128xf32, #tpu.memory_space<vmem>>, vector<16x16x128xf32>
    %14 = vector.shape_cast %13 : vector<16x16x128xf32> to vector<256x128xf32>
    %15 = arith.truncf %14 : vector<256x128xf32> to vector<256x128xbf16>
    %c0_16 = arith.constant 0 : index
    %c0_17 = arith.constant 0 : index
    %16 = vector.load %arg12[%c0_16, %c0_17] : memref<256x1152xbf16, #tpu.memory_space<vmem>>, vector<256x128xbf16>
    tpu.vector_store %arg12[%c0_16, %c0_17], %15 {strides = array<i32>} : memref<256x1152xbf16, #tpu.memory_space<vmem>>, vector<256x128xbf16>,
    %c0_18 = arith.constant 0 : index
    %c1_19 = arith.constant 1 : index
    %c0_20 = arith.constant 0 : index
    %17 = vector.load %arg11[%c0_18, %c1_19, %c0_20] : memref<18x18x128xf32, #tpu.memory_space<vmem>>, vector<16x16x128xf32>
    %18 = vector.shape_cast %17 : vector<16x16x128xf32> to vector<256x128xf32>
    %19 = arith.truncf %18 : vector<256x128xf32> to vector<256x128xbf16>
    %c0_21 = arith.constant 0 : index
    %c128 = arith.constant 128 : index
    %20 = vector.load %arg12[%c0_21, %c128] : memref<256x1152xbf16, #tpu.memory_space<vmem>>, vector<256x128xbf16>
    tpu.vector_store %arg12[%c0_21, %c128], %19 {strides = array<i32>} : memref<256x1152xbf16, #tpu.memory_space<vmem>>, vector<256x128xbf16>,
    %c0_22 = arith.constant 0 : index
    %c2 = arith.constant 2 : index
    %c0_23 = arith.constant 0 : index
    %21 = vector.load %arg11[%c0_22, %c2, %c0_23] : memref<18x18x128xf32, #tpu.memory_space<vmem>>, vector<16x16x128xf32>
    %22 = vector.shape_cast %21 : vector<16x16x128xf32> to vector<256x128xf32>
    %23 = arith.truncf %22 : vector<256x128xf32> to vector<256x128xbf16>
    %c0_24 = arith.constant 0 : index
    %c256 = arith.constant 256 : index
    %24 = vector.load %arg12[%c0_24, %c256] : memref<256x1152xbf16, #tpu.memory_space<vmem>>, vector<256x128xbf16>
    tpu.vector_store %arg12[%c0_24, %c256], %23 {strides = array<i32>} : memref<256x1152xbf16, #tpu.memory_space<vmem>>, vector<256x128xbf16>,
    %c1_25 = arith.constant 1 : index
    %c0_26 = arith.constant 0 : index
    %c0_27 = arith.constant 0 : index
    %25 = vector.load %arg11[%c1_25, %c0_26, %c0_27] : memref<18x18x128xf32, #tpu.memory_space<vmem>>, vector<16x16x128xf32>
    %26 = vector.shape_cast %25 : vector<16x16x128xf32> to vector<256x128xf32>
    %27 = arith.truncf %26 : vector<256x128xf32> to vector<256x128xbf16>
    %c0_28 = arith.constant 0 : index
    %c384 = arith.constant 384 : index
    %28 = vector.load %arg12[%c0_28, %c384] : memref<256x1152xbf16, #tpu.memory_space<vmem>>, vector<256x128xbf16>
    tpu.vector_store %arg12[%c0_28, %c384], %27 {strides = array<i32>} : memref<256x1152xbf16, #tpu.memory_space<vmem>>, vector<256x128xbf16>,
    %c1_29 = arith.constant 1 : index
    %c1_30 = arith.constant 1 : index
    %c0_31 = arith.constant 0 : index
    %29 = vector.load %arg11[%c1_29, %c1_30, %c0_31] : memref<18x18x128xf32, #tpu.memory_space<vmem>>, vector<16x16x128xf32>
    %30 = vector.shape_cast %29 : vector<16x16x128xf32> to vector<256x128xf32>
    %31 = arith.truncf %30 : vector<256x128xf32> to vector<256x128xbf16>
    %c0_32 = arith.constant 0 : index
    %c512 = arith.constant 512 : index
    %32 = vector.load %arg12[%c0_32, %c512] : memref<256x1152xbf16, #tpu.memory_space<vmem>>, vector<256x128xbf16>
    tpu.vector_store %arg12[%c0_32, %c512], %31 {strides = array<i32>} : memref<256x1152xbf16, #tpu.memory_space<vmem>>, vector<256x128xbf16>,
    %c1_33 = arith.constant 1 : index
    %c2_34 = arith.constant 2 : index
    %c0_35 = arith.constant 0 : index
    %33 = vector.load %arg11[%c1_33, %c2_34, %c0_35] : memref<18x18x128xf32, #tpu.memory_space<vmem>>, vector<16x16x128xf32>
    %34 = vector.shape_cast %33 : vector<16x16x128xf32> to vector<256x128xf32>
    %35 = arith.truncf %34 : vector<256x128xf32> to vector<256x128xbf16>
    %c0_36 = arith.constant 0 : index
    %c640 = arith.constant 640 : index
    %36 = vector.load %arg12[%c0_36, %c640] : memref<256x1152xbf16, #tpu.memory_space<vmem>>, vector<256x128xbf16>
    tpu.vector_store %arg12[%c0_36, %c640], %35 {strides = array<i32>} : memref<256x1152xbf16, #tpu.memory_space<vmem>>, vector<256x128xbf16>,
    %c2_37 = arith.constant 2 : index
    %c0_38 = arith.constant 0 : index
    %c0_39 = arith.constant 0 : index
    %37 = vector.load %arg11[%c2_37, %c0_38, %c0_39] : memref<18x18x128xf32, #tpu.memory_space<vmem>>, vector<16x16x128xf32>
    %38 = vector.shape_cast %37 : vector<16x16x128xf32> to vector<256x128xf32>
    %39 = arith.truncf %38 : vector<256x128xf32> to vector<256x128xbf16>
    %c0_40 = arith.constant 0 : index
    %c768 = arith.constant 768 : index
    %40 = vector.load %arg12[%c0_40, %c768] : memref<256x1152xbf16, #tpu.memory_space<vmem>>, vector<256x128xbf16>
    tpu.vector_store %arg12[%c0_40, %c768], %39 {strides = array<i32>} : memref<256x1152xbf16, #tpu.memory_space<vmem>>, vector<256x128xbf16>,
    %c2_41 = arith.constant 2 : index
    %c1_42 = arith.constant 1 : index
    %c0_43 = arith.constant 0 : index
    %41 = vector.load %arg11[%c2_41, %c1_42, %c0_43] : memref<18x18x128xf32, #tpu.memory_space<vmem>>, vector<16x16x128xf32>
    %42 = vector.shape_cast %41 : vector<16x16x128xf32> to vector<256x128xf32>
    %43 = arith.truncf %42 : vector<256x128xf32> to vector<256x128xbf16>
    %c0_44 = arith.constant 0 : index
    %c896 = arith.constant 896 : index
    %44 = vector.load %arg12[%c0_44, %c896] : memref<256x1152xbf16, #tpu.memory_space<vmem>>, vector<256x128xbf16>
    tpu.vector_store %arg12[%c0_44, %c896], %43 {strides = array<i32>} : memref<256x1152xbf16, #tpu.memory_space<vmem>>, vector<256x128xbf16>,
    %c2_45 = arith.constant 2 : index
    %c2_46 = arith.constant 2 : index
    %c0_47 = arith.constant 0 : index
    %45 = vector.load %arg11[%c2_45, %c2_46, %c0_47] : memref<18x18x128xf32, #tpu.memory_space<vmem>>, vector<16x16x128xf32>
    %46 = vector.shape_cast %45 : vector<16x16x128xf32> to vector<256x128xf32>
    %47 = arith.truncf %46 : vector<256x128xf32> to vector<256x128xbf16>
    %c0_48 = arith.constant 0 : index
    %c1024 = arith.constant 1024 : index
    %48 = vector.load %arg12[%c0_48, %c1024] : memref<256x1152xbf16, #tpu.memory_space<vmem>>, vector<256x128xbf16>
    tpu.vector_store %arg12[%c0_48, %c1024], %47 {strides = array<i32>} : memref<256x1152xbf16, #tpu.memory_space<vmem>>, vector<256x128xbf16>,
    %c0_49 = arith.constant 0 : index
    %c0_50 = arith.constant 0 : index
    %49 = vector.load %arg12[%c0_49, %c0_50] : memref<256x1152xbf16, #tpu.memory_space<vmem>>, vector<256x1152xbf16>
    %c0_51 = arith.constant 0 : index
    %c0_52 = arith.constant 0 : index
    %50 = vector.load %arg4[%c0_51, %c0_52] : memref<1152x128xbf16, #tpu.memory_space<vmem>>, vector<1152x128xbf16>
    %cst_53 = arith.constant dense<0.000000e+00> : vector<256x128xf32>
    %51 = tpu.matmul %49, %50, %cst_53 {dimension_numbers = #tpu.dot_dimension_numbers<[1], [0], [0], [1], [0, 0, 1, 1], [], []>} : vector<256x1152xbf16>, vector<1152x128xbf16>, vector<256x128xf32> -> vector<256x128xf32>
    %c0_54 = arith.constant 0 : index
    %c0_55 = arith.constant 0 : index
    %52 = vector.load %arg5[%c0_54, %c0_55] : memref<1x128xf32, #tpu.memory_space<vmem>>, vector<1x128xf32>
    %53 = vector.broadcast %52 : vector<1x128xf32> to vector<256x128xf32>
    %54 = arith.addf %51, %53 : vector<256x128xf32>
    %cst_56 = arith.constant 0.000000e+00 : f32
    %55 = vector.broadcast %cst_56 : f32 to vector<256x128xf32>
    %56 = arith.maximumf %54, %55 : vector<256x128xf32>
    %c0_57 = arith.constant 0 : index
    %c0_58 = arith.constant 0 : index
    %57 = vector.load %arg13[%c0_57, %c0_58] : memref<256x128xf32, #tpu.memory_space<vmem>>, vector<256x128xf32>
    tpu.vector_store %arg13[%c0_57, %c0_58], %56 {strides = array<i32>} : memref<256x128xf32, #tpu.memory_space<vmem>>, vector<256x128xf32>,
    %c0_59 = arith.constant 0 : index
    %c0_60 = arith.constant 0 : index
    %58 = tpu.strided_load %arg13[%c0_59, %c0_60] {strides = array<i32: 2, 1>} : memref<256x128xf32, #tpu.memory_space<vmem>>, vector<128x128xf32>
    %c1_61 = arith.constant 1 : index
    %c0_62 = arith.constant 0 : index
    %59 = tpu.strided_load %arg13[%c1_61, %c0_62] {strides = array<i32: 2, 1>} : memref<256x128xf32, #tpu.memory_space<vmem>>, vector<128x128xf32>
    %60 = arith.addf %58, %59 : vector<128x128xf32>
    %61 = vector.shape_cast %60 : vector<128x128xf32> to vector<8x2x8x128xf32>
    %62 = vector.extract_strided_slice %61 {offsets = [0, 0, 0, 0], sizes = [8, 1, 8, 128], strides = [1, 1, 1, 1]} : vector<8x2x8x128xf32> to vector<8x1x8x128xf32>
    %63 = vector.shape_cast %62 : vector<8x1x8x128xf32> to vector<8x8x128xf32>
    %64 = vector.extract_strided_slice %61 {offsets = [0, 1, 0, 0], sizes = [8, 1, 8, 128], strides = [1, 1, 1, 1]} : vector<8x2x8x128xf32> to vector<8x1x8x128xf32>
    %65 = vector.shape_cast %64 : vector<8x1x8x128xf32> to vector<8x8x128xf32>
    %66 = arith.addf %63, %65 : vector<8x8x128xf32>
    %cst_63 = arith.constant 2.500000e-01 : f32
    %67 = vector.broadcast %cst_63 : f32 to vector<8x8x128xf32>
    %68 = arith.mulf %66, %67 : vector<8x8x128xf32>
    %69 = vector.shape_cast %68 : vector<8x8x128xf32> to vector<64x128xf32>
    %70 = arith.extf %1 : vector<256x128xbf16> to vector<256x128xf32>
    %c0_64 = arith.constant 0 : index
    %c0_65 = arith.constant 0 : index
    %71 = vector.load %arg13[%c0_64, %c0_65] : memref<256x128xf32, #tpu.memory_space<vmem>>, vector<256x128xf32>
    tpu.vector_store %arg13[%c0_64, %c0_65], %70 {strides = array<i32>} : memref<256x128xf32, #tpu.memory_space<vmem>>, vector<256x128xf32>,
    %c0_66 = arith.constant 0 : index
    %c0_67 = arith.constant 0 : index
    %72 = tpu.strided_load %arg13[%c0_66, %c0_67] {strides = array<i32: 2, 1>} : memref<256x128xf32, #tpu.memory_space<vmem>>, vector<128x128xf32>
    %c1_68 = arith.constant 1 : index
    %c0_69 = arith.constant 0 : index
    %73 = tpu.strided_load %arg13[%c1_68, %c0_69] {strides = array<i32: 2, 1>} : memref<256x128xf32, #tpu.memory_space<vmem>>, vector<128x128xf32>
    %74 = arith.addf %72, %73 : vector<128x128xf32>
    %75 = vector.shape_cast %74 : vector<128x128xf32> to vector<8x2x8x128xf32>
    %76 = vector.extract_strided_slice %75 {offsets = [0, 0, 0, 0], sizes = [8, 1, 8, 128], strides = [1, 1, 1, 1]} : vector<8x2x8x128xf32> to vector<8x1x8x128xf32>
    %77 = vector.shape_cast %76 : vector<8x1x8x128xf32> to vector<8x8x128xf32>
    %78 = vector.extract_strided_slice %75 {offsets = [0, 1, 0, 0], sizes = [8, 1, 8, 128], strides = [1, 1, 1, 1]} : vector<8x2x8x128xf32> to vector<8x1x8x128xf32>
    %79 = vector.shape_cast %78 : vector<8x1x8x128xf32> to vector<8x8x128xf32>
    %80 = arith.addf %77, %79 : vector<8x8x128xf32>
    %cst_70 = arith.constant 2.500000e-01 : f32
    %81 = vector.broadcast %cst_70 : f32 to vector<8x8x128xf32>
    %82 = arith.mulf %80, %81 : vector<8x8x128xf32>
    %83 = vector.shape_cast %82 : vector<8x8x128xf32> to vector<64x128xf32>
    %84 = arith.truncf %69 : vector<64x128xf32> to vector<64x128xbf16>
    %c0_71 = arith.constant 0 : index
    %c0_72 = arith.constant 0 : index
    %85 = vector.load %arg6[%c0_71, %c0_72] : memref<128x128xbf16, #tpu.memory_space<vmem>>, vector<128x128xbf16>
    %cst_73 = arith.constant dense<0.000000e+00> : vector<64x128xf32>
    %86 = tpu.matmul %84, %85, %cst_73 {dimension_numbers = #tpu.dot_dimension_numbers<[1], [0], [0], [1], [0, 0, 1, 1], [], []>} : vector<64x128xbf16>, vector<128x128xbf16>, vector<64x128xf32> -> vector<64x128xf32>
    %c0_74 = arith.constant 0 : index
    %c0_75 = arith.constant 0 : index
    %87 = vector.load %arg7[%c0_74, %c0_75] : memref<1x128xf32, #tpu.memory_space<vmem>>, vector<1x128xf32>
    %88 = vector.broadcast %87 : vector<1x128xf32> to vector<64x128xf32>
    %89 = arith.addf %86, %88 : vector<64x128xf32>
    %90 = arith.truncf %83 : vector<64x128xf32> to vector<64x128xbf16>
    %c0_76 = arith.constant 0 : index
    %c0_77 = arith.constant 0 : index
    %91 = vector.load %arg8[%c0_76, %c0_77] : memref<128x128xbf16, #tpu.memory_space<vmem>>, vector<128x128xbf16>
    %cst_78 = arith.constant dense<0.000000e+00> : vector<64x128xf32>
    %92 = tpu.matmul %90, %91, %cst_78 {dimension_numbers = #tpu.dot_dimension_numbers<[1], [0], [0], [1], [0, 0, 1, 1], [], []>} : vector<64x128xbf16>, vector<128x128xbf16>, vector<64x128xf32> -> vector<64x128xf32>
    %c0_79 = arith.constant 0 : index
    %c0_80 = arith.constant 0 : index
    %93 = vector.load %arg9[%c0_79, %c0_80] : memref<1x128xf32, #tpu.memory_space<vmem>>, vector<1x128xf32>
    %94 = vector.broadcast %93 : vector<1x128xf32> to vector<64x128xf32>
    %95 = arith.addf %92, %94 : vector<64x128xf32>
    %96 = arith.addf %89, %95 : vector<64x128xf32>
    %cst_81 = arith.constant 0.000000e+00 : f32
    %97 = vector.broadcast %cst_81 : f32 to vector<64x128xf32>
    %98 = arith.maximumf %96, %97 : vector<64x128xf32>
    %c0_82 = arith.constant 0 : index
    %c0_83 = arith.constant 0 : index
    %c0_84 = arith.constant 0 : index
    %99 = vector.load %arg10[%c0_82, %c0_83, %c0_84] : memref<1x64x128xf32, #tpu.memory_space<vmem>>, vector<1x64x128xf32>
    %100 = vector.shape_cast %99 : vector<1x64x128xf32> to vector<64x128xf32>
    %101 = vector.shape_cast %98 : vector<64x128xf32> to vector<1x64x128xf32>
    tpu.vector_store %arg10[%c0_82, %c0_83, %c0_84], %101 {strides = array<i32>} : memref<1x64x128xf32, #tpu.memory_space<vmem>>, vector<1x64x128xf32>,
    return
  }
  func.func @transform_0(%arg0: i32) -> (i32, i32, i32) {
    %c0_i32 = arith.constant 0 : i32
    %c0_i32_0 = arith.constant 0 : i32
    %c0_i32_1 = arith.constant 0 : i32
    return %arg0, %c0_i32, %c0_i32_0 : i32, i32, i32
  }
  func.func @transform_1(%arg0: i32) -> (i32, i32) {
    %c0_i32 = arith.constant 0 : i32
    %c0_i32_0 = arith.constant 0 : i32
    %c0_i32_1 = arith.constant 0 : i32
    return %c0_i32, %c0_i32_0 : i32, i32
  }
  func.func @transform_2(%arg0: i32) -> (i32, i32) {
    %c0_i32 = arith.constant 0 : i32
    %c0_i32_0 = arith.constant 0 : i32
    %c0_i32_1 = arith.constant 0 : i32
    return %c0_i32, %c0_i32_0 : i32, i32
  }
  func.func @transform_3(%arg0: i32) -> (i32, i32) {
    %c0_i32 = arith.constant 0 : i32
    %c0_i32_0 = arith.constant 0 : i32
    %c0_i32_1 = arith.constant 0 : i32
    return %c0_i32, %c0_i32_0 : i32, i32
  }
  func.func @transform_4(%arg0: i32) -> (i32, i32) {
    %c0_i32 = arith.constant 0 : i32
    %c0_i32_0 = arith.constant 0 : i32
    %c0_i32_1 = arith.constant 0 : i32
    return %c0_i32, %c0_i32_0 : i32, i32
  }
  func.func @transform_5(%arg0: i32) -> (i32, i32) {
    %c0_i32 = arith.constant 0 : i32
    %c0_i32_0 = arith.constant 0 : i32
    %c0_i32_1 = arith.constant 0 : i32
    return %c0_i32, %c0_i32_0 : i32, i32
  }
  func.func @transform_6(%arg0: i32) -> (i32, i32) {
    %c0_i32 = arith.constant 0 : i32
    %c0_i32_0 = arith.constant 0 : i32
    %c0_i32_1 = arith.constant 0 : i32
    return %c0_i32, %c0_i32_0 : i32, i32
  }
  func.func @transform_7(%arg0: i32) -> (i32, i32) {
    %c0_i32 = arith.constant 0 : i32
    %c0_i32_0 = arith.constant 0 : i32
    %c0_i32_1 = arith.constant 0 : i32
    return %c0_i32, %c0_i32_0 : i32, i32
  }
  func.func @transform_8(%arg0: i32) -> (i32, i32) {
    %c0_i32 = arith.constant 0 : i32
    %c0_i32_0 = arith.constant 0 : i32
    %c0_i32_1 = arith.constant 0 : i32
    return %c0_i32, %c0_i32_0 : i32, i32
  }
  func.func @transform_9(%arg0: i32) -> (i32, i32, i32) {
    %c0_i32 = arith.constant 0 : i32
    %c0_i32_0 = arith.constant 0 : i32
    %c0_i32_1 = arith.constant 0 : i32
    return %arg0, %c0_i32, %c0_i32_0 : i32, i32, i32
  }
}

</mosaic_0001>

<bundles_post_ra>
// kernel: tpu_custom_call.1
= control target key start
LH: loop header
LB: loop body
LE: loop exit
PB: predicated region body
PF: predicated region fallthrough
CT: control target
= control target key end

     0   :  { %s7447_s0 = inlined_call_operand.hbm [shape: bf16[2,256,128], index: 0, kind: input, shape index: {}]   ;;  %s7448_s1 = inlined_call_operand.hbm [shape: bf16[128,128], index: 1, kind: input, shape index: {}]   ;;  %s7449_s2 = inlined_call_operand.vmem [shape: f32[1,128], index: 2, kind: input, shape index: {}]   ;;  %s7450_s3 = inlined_call_operand.hbm [shape: bf16[1152,128], index: 3, kind: input, shape index: {}]   ;;  %s7451_s4 = inlined_call_operand.vmem [shape: f32[1,128], index: 4, kind: input, shape index: {}]   ;;  %s7452_s5 = inlined_call_operand.hbm [shape: bf16[128,128], index: 5, kind: input, shape index: {}]   ;;  %s7453_s6 = inlined_call_operand.vmem [shape: f32[1,128], index: 6, kind: input, shape index: {}]   ;;  %s7454_s7 = inlined_call_operand.hbm [shape: bf16[128,128], index: 7, kind: input, shape index: {}]   ;;  %s7455_s8 = inlined_call_operand.vmem [shape: f32[1,128], index: 8, kind: input, shape index: {}]   ;;  %s7456_s9 = inlined_call_operand.hbm [shape: f32[2,64,128], index: 9, kind: output, shape index: {}]  }
   0x1   :  { %7459 = sst [smem:[#allocation65_spill]] %s7448_s1 }
   0x2   :  { %7460 = sst [smem:[#allocation66_spill]] %s7450_s3 }
   0x3   :  { %7461 = sst [smem:[#allocation67_spill]] %s7452_s5 }
   0x4   :  { %14 = vsyncpa [#allocation6], 0 }
   0x5   :  { %16 = vsyncpa [#allocation6 + $0x1], 0 }
   0x6   :  { %17 = vsyncpa [#allocation9], 0 }
   0x7   :  { %18 = vsyncpa [#allocation12], 0 }
   0x8   :  { %19 = vsyncpa [#allocation7], 0 }
   0x9   :  { %21 = vsyncpa [#allocation7 + $0x1], 0  ;;  %s6309_s30 = smov 0   ;;  %s6311_s10 = smov 0  }
   0xa   :  { %s6313_s11 = smov 0   ;;  %s6315_s12 = smov 0  }
   0xb LB: > { %s6330_s13 = sadd.s32 4294967295, %s6247_s12   ;;  %s4605_s14 = sadd.s32 4294967294, %s6247_s12   ;;  %s6247_s12 = sphi %s6315_s12, %s7577_s12   ;;  %s6243_s11 = sphi %s6313_s11, %s7576_s11   ;;  %s6239_s10 = sphi %s6311_s10, %s7575_s10   ;;  %s6235_s30 = sphi %s6309_s30, %s7574_s30  }
   0xc   : > { %p47_p0 = scmp.ne.s32.totalorder %s6239_s10, %s6235_s30  ;;  %p48_p1 = scmp.eq.s32.totalorder %s6330_s13, 0 }
   0xd   : > { %p239_p2 = scmp.eq.s32.totalorder %s6330_s13, 1  ;;  %p245_p3 = scmp.eq.s32.totalorder %s4605_s14, 1 }
   0xe   : > { %p6339_p4 = por %p48_p1, %p47_p0  ;;  %p4606_p5 = scmp.ge.s32.totalorder %s6247_s12, 1 }
   0xf   : > { %p6344_p6 = por %p245_p3, %p47_p0  ;;  %p252_p7 = scmp.lt.s32.totalorder %s6247_s12, 3 }
  0x10   : > { %s7464_s1 = sld [smem:[#allocation65_spill]]  ;;  %s6249_s21 = smov [#allocation8]  }
  0x11   : > { %p6352_p8 = pnand %p4606_p5, %p252_p7  ;;  %s265_s22 = sshll.u32 %s6249_s21, 4  ;;  %s266_s22 = int_to_ptr.vmem [resolvable:$true] %s265_s22 }
  0x12   : > { %s7467_s5 = sld [smem:[#allocation67_spill]]  ;;  %s7457_s27 = smov 64  }
  0x13   : > { %p5945_p9 = pneg %p6352_p8  ;;  %s7458_s28 = smov 4  }
  0x14   : > { %s6252_s29 = smov [#allocation11]   ;;  %s7468_s3 = sld [smem:[#allocation66_spill]] }
  0x15   : > { %p6360_p10 = pnand %p5945_p9, %p48_p1  ;;  %s299_s14 = sshll.u32 %s6252_s29, 4  ;;  %s300_s14 = int_to_ptr.vmem [resolvable:$true] %s299_s14 }
  0x16   : > { %s263_s19 = sshll.u32 %s7464_s1, 4  ;;  %s314_s24 = sshll.u32 %s7454_s7, 4  ;;  %s264_s19 = int_to_ptr.hbm [resolvable:$true] %s263_s19  ;;  %s315_s24 = int_to_ptr.hbm [resolvable:$true] %s314_s24 }
  0x17   : > { %5948 = dma.hbm_to_vmem [thread:$0]  (!%p6360_p10), %s264_s19, 1024, %s266_s22, [#allocation9], %s7457_s27, %s7457_s27, %s7458_s28  }
  0x18   : > { %s297_s26 = sshll.u32 %s7467_s5, 4  ;;  %s6253_s25 = smov [#allocation10]   ;;  %s298_s26 = int_to_ptr.hbm [resolvable:$true] %s297_s26 }
  0x19   : > { %5954 = dma.hbm_to_vmem [thread:$0]  (!%p6360_p10), %s298_s26, 1024, %s300_s14, [#allocation12], %s7457_s27, %s7457_s27, %s7458_s28  }
  0x1a   : > { %s280_s21 = sshll.u32 %s7468_s3, 4  ;;  %s282_s29 = sshll.u32 %s6253_s25, 4  ;;  %s281_s21 = int_to_ptr.hbm [resolvable:$true] %s280_s21  ;;  %s283_s29 = int_to_ptr.vmem [resolvable:$true] %s282_s29 }
  0x1b   : > { %5951 = dma.hbm_to_vmem [thread:$0]  (!%p6360_p10), %s281_s21, 9216, %s283_s29, [#allocation9], %s7457_s27, %s7457_s27, %s7458_s28  }
  0x1c   : > { %s6254_s17 = smov [#allocation13]   ;;  %s6395_s14 = sadd.s32 1, %s6247_s12  }
  0x1d   : > { %s316_s26 = sshll.u32 %s6254_s17, 4  ;;  %s34_s18 = sadd.s32 1, %s6243_s11  ;;  %s317_s26 = int_to_ptr.vmem [resolvable:$true] %s316_s26 }
  0x1e   : > { %5957 = dma.hbm_to_vmem [thread:$0]  (!%p6360_p10), %s315_s24, 1024, %s317_s26, [#allocation12], %s7457_s27, %s7457_s27, %s7458_s28  }
  0x1f   : > { %s31_s19 = ssub.s32 %s6247_s12, %s6395_s14  ;;  %p41_p12 = scmp.ne.s32.totalorder %s6243_s11, %s6239_s10 }
  0x20   : > { %p32_p13 = scmp.eq.s32.totalorder %s31_s19, 0  ;;  %p42_p0 = scmp.eq.s32.totalorder %s6247_s12, 0 }
  0x21   : > { %p6405_p3 = por %p239_p2, %p41_p12  ;;  %p5970_p5 = scmp.lt.s32.totalorder %s6247_s12, 2 }
  0x22   : > { %s6411_s22 = scalar_select %p32_p13, %s6243_s11, %s34_s18  }
  0x23   : > { %p43_p7 = por %p42_p0, %p41_p12  ;;  %s333_s23 = sand.u32 1, %s6243_s11  }
  0x24   : > { %s4612_s25 = sshll.u32 %s333_s23, 7  ;;  %s5651_s24 = sshll.u32 %s6247_s12, 7 }
  0x25   : > { %s342_s26 = scalar_lea.hbm %s7447_s0, %s5651_s24  ;;  %s337_s27 = scalar_lea.vmem [#allocation5], %s4612_s25 }
  0x26   : > { %s345_s28 = sshll.u32 %s337_s27, 4  ;;  %s343_s19 = sshll.u32 %s342_s26, 4  ;;  %s346_s28 = int_to_ptr.vmem [resolvable:$true] %s345_s28  ;;  %s344_s19 = int_to_ptr.hbm [resolvable:$true] %s343_s19 }
  0x27   : > { %p6418_p2 = pnand %p5970_p5, %p43_p7  ;;  %s334_s18 = scalar_lea.sflag [#allocation6], %s333_s23 }
  0x28   : > { %s6143_s3 = sshra.s32 %s344_s19, 4  ;;  %s6150_s27 = scalar_lea.hbm %s7447_s0, 256  ;;  %s6144_s3 = int_to_ptr.hbm [resolvable:$true] %s6143_s3 }
  0x29   : > { %s6145_s5 = scalar_lea.hbm %s6144_s3, 128  ;;  %p6147_p10 = pneg %p6418_p2 }
  0x2a   : > { %p6146_p9 = scmp.ne.s32.totalorder %s6144_s3, %s6145_s5  ;;  %p6151_p0 = scmp.lt.s32.totalorder %s6144_s3, %s7447_s0 }
  0x2b   : > { %p6152_p5 = scmp.lt.s32.totalorder %s6150_s27, %s6145_s5 }
  0x2c   : > { %p6148_p12 = pnand %p6147_p10, %p6146_p9 }
  0x2d   : > { %p6153_p7 = por %p6152_p5, %p6151_p0 }
  0x2e   : > { %p6149_p13 = pneg %p6148_p12 }
  0x30   : > { %p6154_p11 = pnand %p6153_p7, %p6149_p13 }
  0x32   : > { %6157 = shalt.err (!%p6154_p11)
}
  0x33   : > { %s7471_s23 = smov 4   ;;  %s7472_s26 = smov 64  }
  0x34   : > { %5961 = dma.hbm_to_vmem [thread:$0]  (!%p6418_p2), %s344_s19, 2048, %s346_s28, %s334_s18, %s7472_s26, %s7472_s26, %s7471_s23  }
  0x35   : > { %357 = sbr.rel (%p6352_p8) target bundleno = 1315 (0x523), region = 56 }
  0x3a   : > { %s6438_s24 = sand.u32 1, %s6239_s10  }
  0x3b   : > { %s4616_s3 = sshll.u32 %s6438_s24, 7  ;;  %s360_s5 = scalar_lea.sflag [#allocation6], %s6438_s24 }
  0x3c   : > { %s6442_s25 = scalar_lea.vmem [#allocation5], %s4616_s3 }
  0x3d   : > { %6218 = dma.done.wait (%p6339_p4), %s360_s5, 2048  }
  0x3e   : > { %6220 = vsyncadd (%p6339_p4), %s360_s5, 4294965248 }
  0x3f   : > { %6222 = dma.done.wait (%p48_p1), [#allocation9], 10240  }
  0x40   : > { %6224 = vsyncadd (%p48_p1), [#allocation9], 4294957056 }
  0x41   : > { %6226 = dma.done.wait (%p48_p1), [#allocation12], 2048  }
  0x42   : > { %6228 = vsyncadd (%p48_p1), [#allocation12], 4294965248  ;;  %v5675_v0 = vld [vmem:[#allocation8 + $0x38] sm:$0xff]  ;;  %v5674_v1 = vld [vmem:[#allocation8 + $0x30] sm:$0xff]  ;;  %v6255_v26 = vmov 0.0   ;;  %v6256_v57 = vmov 0.0|0.0  }
  0x43   : > { %615 = vmatpush.bf16.msra.mxu0 %v5675_v0  ;;  %5909 = vmatpush.bf16.msra.mxu2 %v5675_v0  ;;  %v5673_v2 = vld [vmem:[#allocation8 + $0x28] sm:$0xff]  ;;  %v5672_v3 = vld [vmem:[#allocation8 + $0x20] sm:$0xff]  ;;  %v5671_v4 = vld [vmem:[#allocation8 + $0x18] sm:$0xff]  ;;  %739 = vst [vmem:[#allocation2 + $0x18] sm:$0xff] %v6255_v26  ;;  %s4621_s26 = sshll.u32 %s6438_s24, 6  ;;  %s5908_s5 = sshll.u32 %s6330_s13, 6 }
  0x44   : > { %v5670_v5 = vld [vmem:[#allocation8 + $0x10] sm:$0xff]  ;;  %v5669_v6 = vld [vmem:[#allocation8 + $0x8] sm:$0xff]  ;;  %v5668_v7 = vld [vmem:[#allocation8] sm:$0xff]  ;;  %740 = vst [vmem:[#allocation2 + $0x20] sm:$0xff] %v6255_v26  ;;  %s7389_s3 = scalar_lea.vmem [#allocation14], %s4621_s26  ;;  %s4490_s15 = scalar_lea.hbm %s7456_s9, %s5908_s5 }
  0x45   : > { %v5652_v8 = vld [vmem:[%s6442_s25] sm:$0xff]  ;;  %v5662_v9 = vld [vmem:[%s6442_s25 + $0x50] sm:$0xff]  ;;  %v5653_v10 = vld [vmem:[%s6442_s25 + $0x8] sm:$0xff]  ;;  %736 = vst [vmem:[#allocation2] sm:$0xff] %v6255_v26  ;;  %s4491_s20 = sshll.u32 %s7389_s3, 4  ;;  %s4493_s28 = sshll.u32 %s4490_s15, 4  ;;  %s4492_s20 = int_to_ptr.vmem [resolvable:$true] %s4491_s20  ;;  %s4494_s28 = int_to_ptr.hbm [resolvable:$true] %s4493_s28 }
  0x46   : > { %v5663_v11 = vld [vmem:[%s6442_s25 + $0x58] sm:$0xff]  ;;  %v5654_v12 = vld [vmem:[%s6442_s25 + $0x10] sm:$0xff]  ;;  %v5664_v13 = vld [vmem:[%s6442_s25 + $0x60] sm:$0xff]  ;;  %737 = vst [vmem:[#allocation2 + $0x8] sm:$0xff] %v6255_v26  ;;  %s4479_s13 = scalar_lea.sflag [#allocation7], %s6438_s24  ;;  %s6187_s19 = sshra.s32 %s4494_s28, 4  ;;  %s6188_s19 = int_to_ptr.hbm [resolvable:$true] %s6187_s19 }
  0x47   : > { %616 = vmatpush.bf16.msra.mxu0 %v5674_v1  ;;  %5910 = vmatpush.bf16.msra.mxu2 %v5674_v1  ;;  %v5655_v14 = vld [vmem:[%s6442_s25 + $0x18] sm:$0xff]  ;;  %v5665_v15 = vld [vmem:[%s6442_s25 + $0x68] sm:$0xff]  ;;  %v5656_v16 = vld [vmem:[%s6442_s25 + $0x20] sm:$0xff]  ;;  %738 = vst [vmem:[#allocation2 + $0x10] sm:$0x3] %v6255_v26  ;;  %s6189_s18 = scalar_lea.hbm %s6188_s19, 64  ;;  %p6194_p11 = scmp.lt.s32.totalorder %s6188_s19, %s7456_s9 }
  0x48   : > { %v5666_v17 = vld [vmem:[%s6442_s25 + $0x70] sm:$0xff]  ;;  %v5827_v18 = vld [vmem:[#allocation10 + $0x38] sm:$0xff]  ;;  %v5657_v21 = vld [vmem:[%s6442_s25 + $0x28] sm:$0xff]  ;;  %741 = vst [vmem:[#allocation2 + $0x28] sm:$0x3] %v6255_v26  ;;  %p6190_p1 = scmp.ne.s32.totalorder %s6188_s19, %s6189_s18  ;;  %s6193_s17 = scalar_lea.hbm %s7456_s9, 128 }
  0x49   : > { %v5835_v19 = vld [vmem:[#allocation10 + $0x78] sm:$0xff]  ;;  %3164 = vmatpush.bf16.msra.mxu1 %v5827_v18  ;;  %5917 = vmatpush.bf16.msra.mxu3 %v5827_v18  ;;  %v5834_v20 = vld [vmem:[#allocation10 + $0x70] sm:$0xff]  ;;  %v5833_v22 = vld [vmem:[#allocation10 + $0x68] sm:$0xff]  ;;  %742 = vst [vmem:[#allocation2 + $0x30] sm:$0xff] %v6255_v26  ;;  %p6195_p2 = scmp.lt.s32.totalorder %s6193_s17, %s6189_s18 }
  0x4a   : > { %v5826_v23 = vld [vmem:[#allocation10 + $0x30] sm:$0xff]  ;;  %v5832_v24 = vld [vmem:[#allocation10 + $0x60] sm:$0xff]  ;;  %v5825_v25 = vld [vmem:[#allocation10 + $0x28] sm:$0xff]  ;;  %743 = vst [vmem:[#allocation2 + $0x38] sm:$0xff] %v6255_v26  ;;  %p6191_p4 = pnand %p6190_p1, %p6405_p3 }
  0x4b   : > { %617 = vmatpush.bf16.msra.mxu0 %v5673_v2  ;;  %5911 = vmatpush.bf16.msra.mxu2 %v5673_v2  ;;  %v5667_v27 = vld [vmem:[%s6442_s25 + $0x78] sm:$0xff]  ;;  %v5824_v29 = vld [vmem:[#allocation10 + $0x20] sm:$0xff]  ;;  %v5830_v30 = vld [vmem:[#allocation10 + $0x50] sm:$0xff]  ;;  %744 = vst [vmem:[#allocation2 + $0x40] sm:$0x3] %v6255_v26  ;;  %p6196_p9 = por %p6195_p2, %p6194_p11 }
  0x4c   : > { %v5831_v28 = vld [vmem:[#allocation10 + $0x58] sm:$0xff]  ;;  %745 = vst [vmem:[#allocation2 + $0x48] sm:$0xff] %v6255_v26  ;;  %v5658_v31 = vld [vmem:[%s6442_s25 + $0x30] sm:$0xff]  ;;  %v5829_v33 = vld [vmem:[#allocation10 + $0x48] sm:$0xff]  ;;  %p6192_p8 = pneg %p6191_p4 }
  0x4d   : > { %3165 = vmatpush.bf16.msra.mxu1 %v5826_v23  ;;  %5918 = vmatpush.bf16.msra.mxu3 %v5826_v23  ;;  %746 = vst [vmem:[#allocation2 + $0x50] sm:$0xff] %v6255_v26  ;;  %v5823_v32 = vld [vmem:[#allocation10 + $0x18] sm:$0xff]  ;;  %v5822_v35 = vld [vmem:[#allocation10 + $0x10] sm:$0xff]  ;;  %v5828_v36 = vld [vmem:[#allocation10 + $0x40] sm:$0xff] }
  0x4e   : > { %747 = vst [vmem:[#allocation2 + $0x58] sm:$0x3] %v6255_v26  ;;  %v5851_v34 = vld [vmem:[#allocation10 + $0xf8] sm:$0xff]  ;;  %v5850_v37 = vld [vmem:[#allocation10 + $0xf0] sm:$0xff]  ;;  %v5821_v38 = vld [vmem:[#allocation10 + $0x8] sm:$0xff]  ;;  %p6197_p10 = pnand %p6196_p9, %p6192_p8 }
  0x4f   : > { %618 = vmatpush.bf16.msra.mxu0 %v5672_v3  ;;  %5912 = vmatpush.bf16.msra.mxu2 %v5672_v3  ;;  %748 = vst [vmem:[#allocation2 + $0x60] sm:$0xff] %v6255_v26  ;;  %v5849_v39 = vld [vmem:[#allocation10 + $0xe8] sm:$0xff]  ;;  %v5820_v40 = vld [vmem:[#allocation10] sm:$0xff]  ;;  %v5659_v41 = vld [vmem:[%s6442_s25 + $0x38] sm:$0xff] }
  0x50   : > { %749 = vst [vmem:[#allocation2 + $0x68] sm:$0xff] %v6255_v26  ;;  %v5848_v42 = vld [vmem:[#allocation10 + $0xe0] sm:$0xff]  ;;  %v6513_v43 = vld [vmem:[%s7449_s2] ss:$0 sm:$0xff]  ;;  %v5847_v45 = vld [vmem:[#allocation10 + $0xd8] sm:$0xff] }
  0x51   : > { %3166 = vmatpush.bf16.msra.mxu1 %v5825_v25  ;;  %5919 = vmatpush.bf16.msra.mxu3 %v5825_v25  ;;  %750 = vst [vmem:[#allocation2 + $0x70] sm:$0x3] %v6255_v26  ;;  %v5660_v44 = vld [vmem:[%s6442_s25 + $0x40] sm:$0xff]  ;;  %v5846_v49 = vld [vmem:[#allocation10 + $0xd0] sm:$0xff]  ;;  %v5845_v54 = vld [vmem:[#allocation10 + $0xc8] sm:$0xff] }
  0x52   : > { %751 = vst [vmem:[#allocation2 + $0x78] sm:$0xff] %v6255_v26  ;;  %v919_v51 = vld [vmem:[#allocation2 + $0x1] sm:$0xff]  ;;  %v920_v53 = vld [vmem:[#allocation2 + $0x9] sm:$0xff]  ;;  %v5661_v63 = vld [vmem:[%s6442_s25 + $0x48] sm:$0xff] }
  0x53   : > { %619 = vmatpush.bf16.msra.mxu0 %v5671_v4  ;;  %5913 = vmatpush.bf16.msra.mxu2 %v5671_v4  ;;  %752 = vst [vmem:[#allocation2 + $0x80] sm:$0xff] %v6255_v26  ;;  %v951_v56 = vpack.c.bf16 %v919_v51, %v919_v51  ;;  %v952_v58 = vpack.c.bf16 %v920_v53, %v920_v53  ;;  %v5844_v60 = vld [vmem:[#allocation10 + $0xc0] sm:$0xff] }
  0x54   : > { %753 = vst [vmem:[#allocation2 + $0x88] sm:$0x3] %v6255_v26 }
  0x55   : > { %3167 = vmatpush.bf16.msra.mxu1 %v5824_v29  ;;  %5920 = vmatpush.bf16.msra.mxu3 %v5824_v29  ;;  %754 = vst [vmem:[#allocation2 + $0x90] sm:$0xff] %v6255_v26 }
  0x56   : > { %755 = vst [vmem:[#allocation2 + $0x98] sm:$0xff] %v6255_v26 }
  0x57   : > { %620 = vmatpush.bf16.msra.mxu0 %v5670_v5  ;;  %5914 = vmatpush.bf16.msra.mxu2 %v5670_v5  ;;  %756 = vst [vmem:[#allocation2 + $0xa0] sm:$0x3] %v6255_v26 }
  0x58   : > { %757 = vst [vmem:[#allocation2 + $0xa8] sm:$0xff] %v6255_v26 }
  0x59   : > { %3168 = vmatpush.bf16.msra.mxu1 %v5823_v32  ;;  %5921 = vmatpush.bf16.msra.mxu3 %v5823_v32  ;;  %758 = vst [vmem:[#allocation2 + $0xb0] sm:$0xff] %v6255_v26 }
  0x5a   : > { %759 = vst [vmem:[#allocation2 + $0xb8] sm:$0x3] %v6255_v26 }
  0x5b   : > { %621 = vmatpush.bf16.msra.mxu0 %v5669_v6  ;;  %5915 = vmatpush.bf16.msra.mxu2 %v5669_v6  ;;  %760 = vst [vmem:[#allocation2 + $0xc0] sm:$0xff] %v6255_v26 }
  0x5c   : > { %761 = vst [vmem:[#allocation2 + $0xc8] sm:$0xff] %v6255_v26 }
  0x5d   : > { %3169 = vmatpush.bf16.msra.mxu1 %v5822_v35  ;;  %5922 = vmatpush.bf16.msra.mxu3 %v5822_v35  ;;  %762 = vst [vmem:[#allocation2 + $0xd0] sm:$0x3] %v6255_v26 }
  0x5e   : > { %763 = vst [vmem:[#allocation2 + $0xd8] sm:$0xff] %v6255_v26 }
  0x5f   : > { %622 = vmatpush.bf16.msra.mxu0 %v5668_v7  ;;  %5916 = vmatpush.bf16.msra.mxu2 %v5668_v7  ;;  %764 = vst [vmem:[#allocation2 + $0xe0] sm:$0xff] %v6255_v26 }
  0x60   : > { %765 = vst [vmem:[#allocation2 + $0xe8] sm:$0x3] %v6255_v26 }
  0x61   : > { %3170 = vmatpush.bf16.msra.mxu1 %v5821_v38  ;;  %5923 = vmatpush.bf16.msra.mxu3 %v5821_v38  ;;  %766 = vst [vmem:[#allocation2 + $0xf0] sm:$0xff] %v6255_v26 }
  0x62   : > { %623 = vmatmul.bf16.vlgmr.msra.gmra.mxu0 %v5652_v8  ;;  %673 = vmatmul.bf16.vlgmr.msra.gmra.mxu2 %v5662_v9  ;;  %767 = vst [vmem:[#allocation2 + $0xf8] sm:$0xff] %v6255_v26 }
  0x63   : > { %3253 = vmatpush.bf16.msrb.mxu2 %v5835_v19  ;;  %3431 = vmatpush.bf16.msrb.mxu0 %v5851_v34  ;;  %768 = vst [vmem:[#allocation2 + $0x100] sm:$0x3] %v6255_v26 }
  0x64   : > { %769 = vst [vmem:[#allocation2 + $0x108] sm:$0xff] %v6255_v26 }
  0x65   : > { %3171 = vmatpush.bf16.msra.mxu1 %v5820_v40  ;;  %5924 = vmatpush.bf16.msra.mxu3 %v5820_v40  ;;  %770 = vst [vmem:[#allocation2 + $0x110] sm:$0xff] %v6255_v26 }
  0x66   : > { %771 = vst [vmem:[#allocation2 + $0x118] sm:$0x3] %v6255_v26 }
  0x67   : > { %3254 = vmatpush.bf16.msrb.mxu2 %v5834_v20  ;;  %3432 = vmatpush.bf16.msrb.mxu0 %v5850_v37  ;;  %772 = vst [vmem:[#allocation2 + $0x120] sm:$0xff] %v6255_v26 }
  0x68   : > { %773 = vst [vmem:[#allocation2 + $0x128] sm:$0xff] %v6255_v26 }
  0x69   : > { %774 = vst [vmem:[#allocation2 + $0x130] sm:$0x3] %v6255_v26 }
  0x6a   : > { %775 = vst [vmem:[#allocation2 + $0x138] sm:$0xff] %v6255_v26 }
  0x6b   : > { %3255 = vmatpush.bf16.msrb.mxu2 %v5833_v22  ;;  %3433 = vmatpush.bf16.msrb.mxu0 %v5849_v39  ;;  %776 = vst [vmem:[#allocation2 + $0x140] sm:$0xff] %v6255_v26 }
  0x6c   : > { %777 = vst [vmem:[#allocation2 + $0x148] sm:$0x3] %v6255_v26 }
  0x6d   : > { %778 = vst [vmem:[#allocation2 + $0x150] sm:$0xff] %v6255_v26 }
  0x6e   : > { %779 = vst [vmem:[#allocation2 + $0x158] sm:$0xff] %v6255_v26 }
  0x6f   : > { %3256 = vmatpush.bf16.msrb.mxu2 %v5832_v24  ;;  %3434 = vmatpush.bf16.msrb.mxu0 %v5848_v42  ;;  %780 = vst [vmem:[#allocation2 + $0x160] sm:$0x3] %v6255_v26 }
  0x70   : > { %781 = vst [vmem:[#allocation2 + $0x168] sm:$0xff] %v6255_v26 }
  0x71   : > { %782 = vst [vmem:[#allocation2 + $0x170] sm:$0xff] %v6255_v26 }
  0x72   : > { %628 = vmatmul.bf16.gmra.mxu0 %v5653_v10  ;;  %678 = vmatmul.bf16.gmra.mxu2 %v5663_v11  ;;  %783 = vst [vmem:[#allocation2 + $0x178] sm:$0x3] %v6255_v26 }
  0x73   : > { %3257 = vmatpush.bf16.msrb.mxu2 %v5831_v28  ;;  %3435 = vmatpush.bf16.msrb.mxu0 %v5847_v45  ;;  %784 = vst [vmem:[#allocation2 + $0x180] sm:$0xff] %v6255_v26 }
  0x74   : > { %785 = vst [vmem:[#allocation2 + $0x188] sm:$0xff] %v6255_v26 }
  0x75   : > { %786 = vst [vmem:[#allocation2 + $0x190] sm:$0x3] %v6255_v26 }
  0x76   : > { %787 = vst [vmem:[#allocation2 + $0x198] sm:$0xff] %v6255_v26 }
  0x77   : > { %3258 = vmatpush.bf16.msrb.mxu2 %v5830_v30  ;;  %3436 = vmatpush.bf16.msrb.mxu0 %v5846_v49  ;;  %788 = vst [vmem:[#allocation2 + $0x1a0] sm:$0xff] %v6255_v26 }
  0x78   : > { %789 = vst [vmem:[#allocation2 + $0x1a8] sm:$0x3] %v6255_v26 }
  0x79   : > { %887 = vst [vmem:[#allocation3] sm:$0xf] %v6256_v57 }
  0x7a   : > { %888 = vst [vmem:[#allocation3 + $0x24] sm:$0xf] %v6256_v57 }
  0x7b   : > { %3259 = vmatpush.bf16.msrb.mxu2 %v5829_v33  ;;  %3437 = vmatpush.bf16.msrb.mxu0 %v5845_v54  ;;  %983 = vst [vmem:[#allocation3 + $0x4] sm:$0xf] %v951_v56 }
  0x7c   : > { %984 = vst [vmem:[#allocation3 + $0x28] sm:$0xf] %v952_v58 }
  0x7f   : > { %3260 = vmatpush.bf16.msrb.mxu2 %v5828_v36  ;;  %3438 = vmatpush.bf16.msrb.mxu0 %v5844_v60 }
  0x80   : > { %v4720_v6 = vld [vmem:[#allocation3] sm:$0xf] }
  0x82   : > { %633 = vmatmul.bf16.gmra.mxu0 %v5654_v12  ;;  %683 = vmatmul.bf16.gmra.mxu2 %v5664_v13  ;;  %v5680_v13 = vld [vmem:[#allocation3 + $0x20] sm:$0xf0] }
  0x92   : > { %638 = vmatmul.bf16.gmra.mxu0 %v5655_v14  ;;  %688 = vmatmul.bf16.gmra.mxu2 %v5665_v15  ;;  %v4721_v14 = vor.u32 %v5680_v13, %v4720_v6  ;;  %v5676_v15 = vld [vmem:[#allocation3 + $0x4] sm:$0xf] }
  0x94   : > { %3172 = vmatmul.bf16.vlgmr.msra.gmra.mxu1 %v4721_v14 }
  0xa2   : > { %643 = vmatmul.bf16.gmra.mxu0 %v5656_v16  ;;  %693 = vmatmul.bf16.gmra.mxu2 %v5666_v17  ;;  %v4722_v17 = vld [vmem:[#allocation3 + $0x24] sm:$0xf0] }
  0xa3   : > { %v4725_v19 = vor.u32 %v5676_v15, %v4722_v17 }
  0xb2   : > { %648 = vmatmul.bf16.gmra.mxu0 %v5657_v21  ;;  %698 = vmatmul.bf16.gmra.mxu2 %v5667_v27 }
  0xc2   : > { %653 = vmatmul.bf16.gmra.mxu0 %v5658_v31  ;;  %3261 = vmatmul.bf16.vlgmr.msrb.gmra.mxu2 %v4725_v19 }
  0xd2   : > { %658 = vmatmul.bf16.gmra.mxu0 %v5659_v41 }
  0xdf   : > { %v624_v46 = vpop.f32.mrf.mxu0 }
  0xe0   : > { %v625_v47 = vadd.f32 %v6513_v43, %v624_v46 }
  0xe2   : > { %v704_v48 = vmax.f32 %v625_v47, 0.0  ;;  %663 = vmatmul.bf16.gmra.mxu0 %v5660_v44 }
  0xe4   : > { %791 = vst [vmem:[#allocation2 + $0x19] sm:$0xff] %v704_v48  ;;  %v953_v62 = vpack.c.bf16 %v704_v48, %v704_v48 }
  0xe5   : > { %v674_v22 = vpop.f32.mrf.mxu2 }
  0xe6   : > { %985 = vst [vmem:[#allocation3 + $0x4c] sm:$0xf] %v953_v62  ;;  %v675_v26 = vadd.f32 %v6513_v43, %v674_v22 }
  0xe7   : > { %v626_v50 = vpop.f32.mrf.mxu0 }
  0xe8   : > { %v627_v52 = vadd.f32 %v6513_v43, %v626_v50  ;;  %v6536_v31 = vmax.f32 %v675_v26, 0.0 }
  0xea   : > { %v705_v55 = vmax.f32 %v627_v52, 0.0  ;;  %811 = vst [vmem:[#allocation2 + $0x109] sm:$0xff] %v6536_v31 }
  0xeb   : > { %v825_v59 = vld [vmem:[#allocation2 + $0x18] sm:$0xff] }
  0xec   : > { %792 = vst [vmem:[#allocation2 + $0x21] sm:$0xff] %v705_v55  ;;  %v857_v61 = vpack.c.bf16 %v825_v59, %v825_v59  ;;  %v954_v0 = vpack.c.bf16 %v705_v55, %v705_v55  ;;  %v1207_v1 = vld [vmem:[#allocation2 + $0x19] sm:$0xff] }
  0xed   : > { %v1239_v4 = vpack.c.bf16 %v1207_v1, %v1207_v1  ;;  %v676_v37 = vpop.f32.mrf.mxu2  ;;  %v5685_v51 = vld [vmem:[#allocation3 + $0x4c] sm:$0xf] }
  0xee   : > { %889 = vst [vmem:[#allocation3 + $0x48] sm:$0xf] %v857_v61  ;;  %v677_v47 = vadd.f32 %v6513_v43, %v676_v37 }
  0xef   : > { %v629_v2 = vpop.f32.mrf.mxu0  ;;  %986 = vst [vmem:[#allocation3 + $0x70] sm:$0xf] %v954_v0 }
  0xf0   : > { %v630_v3 = vadd.f32 %v6513_v43, %v629_v2  ;;  %1175 = vst [vmem:[#allocation3 + $0xc] sm:$0xf] %v857_v61  ;;  %v6541_v54 = vmax.f32 %v677_v47, 0.0 }
  0xf1   : > { %1271 = vst [vmem:[#allocation3 + $0x10] sm:$0xf] %v1239_v4 }
  0xf2   : > { %v706_v5 = vmax.f32 %v630_v3, 0.0  ;;  %668 = vmatmul.bf16.gmra.mxu0 %v5661_v63  ;;  %812 = vst [vmem:[#allocation2 + $0x111] sm:$0xff] %v6541_v54 }
  0xf3   : > { %v1303_v7 = vld [vmem:[#allocation2 + $0x1a] sm:$0xff]  ;;  %v1304_v8 = vld [vmem:[#allocation2 + $0x22] sm:$0xff] }
  0xf4   : > { %v826_v9 = vld [vmem:[#allocation2 + $0x20] sm:$0xff]  ;;  %v1335_v10 = vpack.c.bf16 %v1303_v7, %v1303_v7  ;;  %v1336_v11 = vpack.c.bf16 %v1304_v8, %v1304_v8  ;;  %793 = vst [vmem:[#allocation2 + $0x31] sm:$0xff] %v706_v5  ;;  %v1528_v12 = vpack.c.bf16 %v706_v5, %v706_v5 }
  0xf5   : > { %v858_v16 = vpack.c.bf16 %v826_v9, %v826_v9  ;;  %v1208_v18 = vld [vmem:[#allocation2 + $0x21] sm:$0xff]  ;;  %v4756_v33 = vld [vmem:[#allocation3 + $0x48] sm:$0xf]  ;;  %v679_v57 = vpop.f32.mrf.mxu2 }
  0xf6   : > { %1367 = vst [vmem:[#allocation3 + $0x14] sm:$0xf] %v1335_v10  ;;  %v1240_v23 = vpack.c.bf16 %v1208_v18, %v1208_v18  ;;  %v4758_v40 = vld [vmem:[#allocation3 + $0x6c] sm:$0xf0]  ;;  %v680_v59 = vadd.f32 %v6513_v43, %v679_v57 }
  0xf7   : > { %1368 = vst [vmem:[#allocation3 + $0x38] sm:$0xf] %v1336_v11  ;;  %v631_v20 = vpop.f32.mrf.mxu0  ;;  %v5677_v35 = vld [vmem:[#allocation3 + $0xc] sm:$0xf]  ;;  %v4761_v52 = vor.u32 %v5685_v51, %v4758_v40 }
  0xf8   : > { %1560 = vst [vmem:[#allocation3 + $0x1c] sm:$0xf] %v1528_v12  ;;  %v632_v21 = vadd.f32 %v6513_v43, %v631_v20  ;;  %v6546_v1 = vmax.f32 %v680_v59, 0.0  ;;  %v1017_v3 = vld [vmem:[#allocation2 + $0x1a] sm:$0xff] }
  0xf9   : > { %890 = vst [vmem:[#allocation3 + $0x6c] sm:$0xf] %v858_v16  ;;  %3266 = vmatmul.bf16.gmra.mxu2 %v4761_v52 }
  0xfa   : > { %v707_v24 = vmax.f32 %v632_v21, 0.0  ;;  %1176 = vst [vmem:[#allocation3 + $0x30] sm:$0xf] %v858_v16 }
  0xfb   : > { %v1400_v25 = vld [vmem:[#allocation2 + $0x30] sm:$0xff]  ;;  %987 = vst [vmem:[#allocation3 + $0x94] sm:$0xf] %v1528_v12  ;;  %v1049_v12 = vpack.c.bf16 %v1017_v3, %v1017_v3 }
  0xfc   : > { %v1432_v27 = vpack.c.bf16 %v1400_v25, %v1400_v25  ;;  %794 = vst [vmem:[#allocation2 + $0x39] sm:$0xff] %v707_v24  ;;  %v1529_v28 = vpack.c.bf16 %v707_v24, %v707_v24  ;;  %v1209_v29 = vld [vmem:[#allocation2 + $0x31] sm:$0xff] }
  0xfd   : > { %1272 = vst [vmem:[#allocation3 + $0x34] sm:$0xf] %v1240_v23  ;;  %v1241_v38 = vpack.c.bf16 %v1209_v29, %v1209_v29  ;;  %v681_v11 = vpop.f32.mrf.mxu2  ;;  %v1018_v23 = vld [vmem:[#allocation2 + $0x22] sm:$0xff] }
  0xfe   : > { %1464 = vst [vmem:[#allocation3 + $0x18] sm:$0xf] %v1432_v27  ;;  %v682_v16 = vadd.f32 %v6513_v43, %v681_v11  ;;  %v1050_v29 = vpack.c.bf16 %v1018_v23, %v1018_v23 }
  0xff   : > { %1561 = vst [vmem:[#allocation3 + $0x40] sm:$0xf] %v1529_v28  ;;  %v634_v30 = vpop.f32.mrf.mxu0 }
 0x100   : > { %v635_v32 = vadd.f32 %v6513_v43, %v634_v30  ;;  %v5689_v34 = vld [vmem:[#allocation3 + $0x68] sm:$0xf0]  ;;  %891 = vst [vmem:[#allocation3 + $0x90] sm:$0xf] %v1432_v27  ;;  %v6554_v22 = vmax.f32 %v682_v16, 0.0 }
 0x101   : > { %v4730_v36 = vld [vmem:[#allocation3 + $0x2c] sm:$0xf0]  ;;  %988 = vst [vmem:[#allocation3 + $0xb8] sm:$0xf] %v1529_v28  ;;  %v4757_v46 = vor.u32 %v5689_v34, %v4756_v33 }
 0x102   : > { %v708_v39 = vmax.f32 %v635_v32, 0.0  ;;  %v4733_v41 = vor.u32 %v5677_v35, %v4730_v36  ;;  %1177 = vst [vmem:[#allocation3 + $0x54] sm:$0xf] %v1432_v27  ;;  %v5694_v20 = vld [vmem:[#allocation3 + $0x94] sm:$0xf] }
 0x103   : > { %v1401_v42 = vld [vmem:[#allocation2 + $0x38] sm:$0xff]  ;;  %1273 = vst [vmem:[#allocation3 + $0x58] sm:$0xf] %v1241_v38  ;;  %3177 = vmatmul.bf16.gmra.mxu1 %v4757_v46 }
 0x104   : > { %v1592_v44 = vld [vmem:[#allocation2 + $0x32] sm:$0xff]  ;;  %v1593_v45 = vld [vmem:[#allocation2 + $0x3a] sm:$0xff]  ;;  %v1433_v48 = vpack.c.bf16 %v1401_v42, %v1401_v42  ;;  %795 = vst [vmem:[#allocation2 + $0x49] sm:$0xff] %v708_v39  ;;  %3439 = vmatmul.bf16.vlgmr.msrb.gmra.mxu0 %v4733_v41  ;;  %v957_v56 = vpack.c.bf16 %v708_v39, %v708_v39 }
 0x105   : > { %v1624_v49 = vpack.c.bf16 %v1592_v44, %v1592_v44  ;;  %v1625_v50 = vpack.c.bf16 %v1593_v45, %v1593_v45  ;;  %v1210_v61 = vld [vmem:[#allocation2 + $0x39] sm:$0xff]  ;;  %813 = vst [vmem:[#allocation2 + $0x121] sm:$0xff] %v6546_v1  ;;  %v684_v32 = vpop.f32.mrf.mxu2 }
 0x106   : > { %1465 = vst [vmem:[#allocation3 + $0x3c] sm:$0xf] %v1433_v48  ;;  %v1242_v2 = vpack.c.bf16 %v1210_v61, %v1210_v61  ;;  %v1305_v27 = vld [vmem:[#allocation2 + $0x32] sm:$0xff]  ;;  %v685_v35 = vadd.f32 %v6513_v43, %v684_v32  ;;  %v1306_v40 = vld [vmem:[#allocation2 + $0x3a] sm:$0xff] }
 0x107   : > { %1656 = vst [vmem:[#allocation3 + $0x20] sm:$0xf] %v1624_v49  ;;  %v636_v53 = vpop.f32.mrf.mxu0  ;;  %v4792_v7 = vld [vmem:[#allocation3 + $0x90] sm:$0xf]  ;;  %v1337_v33 = vpack.c.bf16 %v1305_v27, %v1305_v27  ;;  %v1338_v46 = vpack.c.bf16 %v1306_v40, %v1306_v40 }
 0x108   : > { %1657 = vst [vmem:[#allocation3 + $0x44] sm:$0xf] %v1625_v50  ;;  %v637_v55 = vadd.f32 %v6513_v43, %v636_v53  ;;  %v4794_v14 = vld [vmem:[#allocation3 + $0xb4] sm:$0xf0]  ;;  %v6562_v41 = vmax.f32 %v685_v35, 0.0 }
 0x109   : > { %892 = vst [vmem:[#allocation3 + $0xb4] sm:$0xf] %v1433_v48  ;;  %v5686_v9 = vld [vmem:[#allocation3 + $0x54] sm:$0xf]  ;;  %v4797_v24 = vor.u32 %v5694_v20, %v4794_v14 }
 0x10a   : > { %v709_v58 = vmax.f32 %v637_v55, 0.0  ;;  %1178 = vst [vmem:[#allocation3 + $0x78] sm:$0xf] %v1433_v48 }
 0x10b   : > { %v829_v60 = vld [vmem:[#allocation2 + $0x48] sm:$0xff]  ;;  %989 = vst [vmem:[#allocation3 + $0xdc] sm:$0xf] %v957_v56  ;;  %3271 = vmatmul.bf16.gmra.mxu2 %v4797_v24 }
 0x10c   : > { %796 = vst [vmem:[#allocation2 + $0x51] sm:$0xff] %v709_v58  ;;  %v861_v62 = vpack.c.bf16 %v829_v60, %v829_v60  ;;  %v958_v63 = vpack.c.bf16 %v709_v58, %v709_v58  ;;  %v1211_v0 = vld [vmem:[#allocation2 + $0x49] sm:$0xff] }
 0x10d   : > { %v6548_v5 = vpack.c.bf16 %v1211_v0, %v1211_v0  ;;  %1274 = vst [vmem:[#allocation3 + $0x7c] sm:$0xf] %v1242_v2  ;;  %v686_v51 = vpop.f32.mrf.mxu2 }
 0x10e   : > { %893 = vst [vmem:[#allocation3 + $0xd8] sm:$0xf] %v861_v62  ;;  %v687_v56 = vadd.f32 %v6513_v43, %v686_v51 }
 0x10f   : > { %v639_v4 = vpop.f32.mrf.mxu0  ;;  %990 = vst [vmem:[#allocation3 + $0x100] sm:$0xf] %v958_v63 }
 0x110   : > { %v640_v6 = vadd.f32 %v6513_v43, %v639_v4  ;;  %v5698_v8 = vld [vmem:[#allocation3 + $0xb0] sm:$0xf0]  ;;  %1179 = vst [vmem:[#allocation3 + $0x9c] sm:$0xf] %v861_v62  ;;  %v6570_v62 = vmax.f32 %v687_v56, 0.0 }
 0x111   : > { %v4766_v10 = vld [vmem:[#allocation3 + $0x74] sm:$0xf0]  ;;  %v4793_v17 = vor.u32 %v5698_v8, %v4792_v7  ;;  %1275 = vst [vmem:[#allocation3 + $0xa0] sm:$0xf] %v6548_v5 }
 0x112   : > { %v710_v13 = vmax.f32 %v640_v6, 0.0  ;;  %v4769_v15 = vor.u32 %v5686_v9, %v4766_v10  ;;  %1081 = vst [vmem:[#allocation3 + $0x50] sm:$0xf] %v1049_v12  ;;  %v5703_v60 = vld [vmem:[#allocation3 + $0xdc] sm:$0xf] }
 0x113   : > { %v830_v18 = vld [vmem:[#allocation2 + $0x50] sm:$0xff]  ;;  %3182 = vmatmul.bf16.gmra.mxu1 %v4793_v17  ;;  %814 = vst [vmem:[#allocation2 + $0x129] sm:$0xff] %v6554_v22 }
 0x114   : > { %v1212_v19 = vld [vmem:[#allocation2 + $0x51] sm:$0xff]  ;;  %797 = vst [vmem:[#allocation2 + $0x61] sm:$0xff] %v710_v13  ;;  %3444 = vmatmul.bf16.gmra.mxu0 %v4769_v15  ;;  %v862_v21 = vpack.c.bf16 %v830_v18, %v830_v18  ;;  %v959_v25 = vpack.c.bf16 %v710_v13, %v710_v13 }
 0x115   : > { %v6556_v26 = vpack.c.bf16 %v1212_v19, %v1212_v19  ;;  %1082 = vst [vmem:[#allocation3 + $0x74] sm:$0xf] %v1050_v29  ;;  %v4828_v49 = vld [vmem:[#allocation3 + $0xd8] sm:$0xf]  ;;  %v689_v7 = vpop.f32.mrf.mxu2  ;;  %v1308_v15 = vld [vmem:[#allocation2 + $0x52] sm:$0xff] }
 0x116   : > { %894 = vst [vmem:[#allocation3 + $0xfc] sm:$0xf] %v862_v21  ;;  %v4830_v53 = vld [vmem:[#allocation3 + $0xfc] sm:$0xf0]  ;;  %v690_v10 = vadd.f32 %v6513_v43, %v689_v7  ;;  %v6585_v20 = vpack.c.bf16 %v1308_v15, %v1308_v15 }
 0x117   : > { %v641_v28 = vpop.f32.mrf.mxu0  ;;  %1180 = vst [vmem:[#allocation3 + $0xc0] sm:$0xf] %v862_v21  ;;  %v5695_v50 = vld [vmem:[#allocation3 + $0x9c] sm:$0xf]  ;;  %v4833_v63 = vor.u32 %v5703_v60, %v4830_v53 }
 0x118   : > { %v642_v30 = vadd.f32 %v6513_v43, %v641_v28  ;;  %991 = vst [vmem:[#allocation3 + $0x124] sm:$0xf] %v959_v25  ;;  %v1307_v3 = vld [vmem:[#allocation2 + $0x4a] sm:$0xff]  ;;  %v6580_v16 = vmax.f32 %v690_v10, 0.0 }
 0x119   : > { %1276 = vst [vmem:[#allocation3 + $0xc4] sm:$0xf] %v6556_v26  ;;  %v6576_v8 = vpack.c.bf16 %v1307_v3, %v1307_v3  ;;  %v5859_v53 = vld [vmem:[#allocation10 + $0x138] sm:$0xff] }
 0x11a   : > { %v711_v34 = vmax.f32 %v642_v30, 0.0  ;;  %1369 = vst [vmem:[#allocation3 + $0x5c] sm:$0xf] %v1337_v33  ;;  %3520 = vmatpush.bf16.msrb.mxu1 %v5859_v53 }
 0x11b   : > { %v831_v36 = vld [vmem:[#allocation2 + $0x60] sm:$0xff]  ;;  %815 = vst [vmem:[#allocation2 + $0x139] sm:$0xff] %v6562_v41  ;;  %3276 = vmatmul.bf16.gmra.mxu2 %v4833_v63 }
 0x11c   : > { %v1213_v37 = vld [vmem:[#allocation2 + $0x61] sm:$0xff]  ;;  %798 = vst [vmem:[#allocation2 + $0x69] sm:$0xff] %v711_v34  ;;  %v863_v38 = vpack.c.bf16 %v831_v36, %v831_v36  ;;  %v960_v39 = vpack.c.bf16 %v711_v34, %v711_v34 }
 0x11d   : > { %v6564_v42 = vpack.c.bf16 %v1213_v37, %v1213_v37  ;;  %v5707_v48 = vld [vmem:[#allocation3 + $0xf8] sm:$0xf0]  ;;  %1370 = vst [vmem:[#allocation3 + $0x80] sm:$0xf] %v1338_v46  ;;  %v691_v27 = vpop.f32.mrf.mxu2 }
 0x11e   : > { %895 = vst [vmem:[#allocation3 + $0x120] sm:$0xf] %v863_v38  ;;  %v4802_v45 = vld [vmem:[#allocation3 + $0xbc] sm:$0xf0]  ;;  %v4829_v57 = vor.u32 %v5707_v48, %v4828_v49  ;;  %v692_v32 = vadd.f32 %v6513_v43, %v691_v27 }
 0x11f   : > { %v644_v44 = vpop.f32.mrf.mxu0  ;;  %992 = vst [vmem:[#allocation3 + $0x148] sm:$0xf] %v960_v39  ;;  %v4805_v55 = vor.u32 %v5695_v50, %v4802_v45  ;;  %v5712_v36 = vld [vmem:[#allocation3 + $0x124] sm:$0xf] }
 0x120   : > { %v645_v47 = vadd.f32 %v6513_v43, %v644_v44  ;;  %1181 = vst [vmem:[#allocation3 + $0xe4] sm:$0xf] %v863_v38  ;;  %v6592_v38 = vmax.f32 %v692_v32, 0.0 }
 0x121   : > { %1277 = vst [vmem:[#allocation3 + $0xe8] sm:$0xf] %v6564_v42 }
 0x122   : > { %v712_v52 = vmax.f32 %v645_v47, 0.0  ;;  %1083 = vst [vmem:[#allocation3 + $0x98] sm:$0xf] %v1337_v33 }
 0x123   : > { %v832_v58 = vld [vmem:[#allocation2 + $0x68] sm:$0xff]  ;;  %3187 = vmatmul.bf16.gmra.mxu1 %v4829_v57  ;;  %816 = vst [vmem:[#allocation2 + $0x141] sm:$0xff] %v6570_v62 }
 0x124   : > { %v1214_v59 = vld [vmem:[#allocation2 + $0x69] sm:$0xff]  ;;  %799 = vst [vmem:[#allocation2 + $0x79] sm:$0xff] %v712_v52  ;;  %3449 = vmatmul.bf16.gmra.mxu0 %v4805_v55  ;;  %v864_v61 = vpack.c.bf16 %v832_v58, %v832_v58  ;;  %v961_v0 = vpack.c.bf16 %v712_v52, %v712_v52 }
 0x125   : > { %v6572_v2 = vpack.c.bf16 %v1214_v59, %v1214_v59  ;;  %1084 = vst [vmem:[#allocation3 + $0xbc] sm:$0xf] %v1338_v46  ;;  %v4864_v24 = vld [vmem:[#allocation3 + $0x120] sm:$0xf]  ;;  %v694_v47 = vpop.f32.mrf.mxu2  ;;  %v1309_v57 = vld [vmem:[#allocation2 + $0x62] sm:$0xff] }
 0x126   : > { %896 = vst [vmem:[#allocation3 + $0x144] sm:$0xf] %v864_v61  ;;  %v4866_v29 = vld [vmem:[#allocation3 + $0x144] sm:$0xf0]  ;;  %v695_v49 = vadd.f32 %v6513_v43, %v694_v47  ;;  %v6609_v3 = vpack.c.bf16 %v1309_v57, %v1309_v57  ;;  %v1310_v15 = vld [vmem:[#allocation2 + $0x6a] sm:$0xff] }
 0x127   : > { %v646_v4 = vpop.f32.mrf.mxu0  ;;  %1182 = vst [vmem:[#allocation3 + $0x108] sm:$0xf] %v864_v61  ;;  %v5704_v25 = vld [vmem:[#allocation3 + $0xe4] sm:$0xf]  ;;  %v4869_v39 = vor.u32 %v5712_v36, %v4866_v29 }
 0x128   : > { %v647_v6 = vadd.f32 %v6513_v43, %v646_v4  ;;  %993 = vst [vmem:[#allocation3 + $0x16c] sm:$0xf] %v961_v0  ;;  %v6602_v55 = vmax.f32 %v695_v49, 0.0 }
 0x129   : > { %1278 = vst [vmem:[#allocation3 + $0x10c] sm:$0xf] %v6572_v2 }
 0x12a   : > { %v713_v9 = vmax.f32 %v647_v6, 0.0  ;;  %1371 = vst [vmem:[#allocation3 + $0xa4] sm:$0xf] %v6576_v8 }
 0x12b   : > { %v833_v11 = vld [vmem:[#allocation2 + $0x78] sm:$0xff]  ;;  %817 = vst [vmem:[#allocation2 + $0x151] sm:$0xff] %v6580_v16  ;;  %3281 = vmatmul.bf16.gmra.mxu2 %v4869_v39 }
 0x12c   : > { %v1215_v12 = vld [vmem:[#allocation2 + $0x79] sm:$0xff]  ;;  %800 = vst [vmem:[#allocation2 + $0x81] sm:$0xff] %v713_v9  ;;  %v865_v13 = vpack.c.bf16 %v833_v11, %v833_v11  ;;  %v962_v14 = vpack.c.bf16 %v713_v9, %v713_v9 }
 0x12d   : > { %v6583_v17 = vpack.c.bf16 %v1215_v12, %v1215_v12  ;;  %v5716_v23 = vld [vmem:[#allocation3 + $0x140] sm:$0xf0]  ;;  %1372 = vst [vmem:[#allocation3 + $0xc8] sm:$0xf] %v6585_v20  ;;  %v696_v0 = vpop.f32.mrf.mxu2 }
 0x12e   : > { %897 = vst [vmem:[#allocation3 + $0x168] sm:$0xf] %v865_v13  ;;  %v4838_v19 = vld [vmem:[#allocation3 + $0x104] sm:$0xf0]  ;;  %v4865_v33 = vor.u32 %v5716_v23, %v4864_v24  ;;  %v1342_v24 = vpack.c.bf16 %v1310_v15, %v1310_v15 }
 0x12f   : > { %v649_v18 = vpop.f32.mrf.mxu0  ;;  %994 = vst [vmem:[#allocation3 + $0x190] sm:$0xf] %v962_v14  ;;  %v4841_v30 = vor.u32 %v5704_v25, %v4838_v19  ;;  %v5721_v12 = vld [vmem:[#allocation3 + $0x16c] sm:$0xf] }
 0x130   : > { %v650_v21 = vadd.f32 %v6513_v43, %v649_v18  ;;  %1183 = vst [vmem:[#allocation3 + $0x12c] sm:$0xf] %v865_v13 }
 0x131   : > { %1279 = vst [vmem:[#allocation3 + $0x130] sm:$0xf] %v6583_v17 }
 0x132   : > { %v714_v28 = vmax.f32 %v650_v21, 0.0  ;;  %1562 = vst [vmem:[#allocation3 + $0x64] sm:$0xf] %v6548_v5 }
 0x133   : > { %v834_v34 = vld [vmem:[#allocation2 + $0x80] sm:$0xff]  ;;  %3192 = vmatmul.bf16.gmra.mxu1 %v4865_v33  ;;  %818 = vst [vmem:[#allocation2 + $0x159] sm:$0xff] %v6592_v38 }
 0x134   : > { %v1216_v35 = vld [vmem:[#allocation2 + $0x81] sm:$0xff]  ;;  %801 = vst [vmem:[#allocation2 + $0x91] sm:$0xff] %v714_v28  ;;  %3454 = vmatmul.bf16.gmra.mxu0 %v4841_v30  ;;  %v866_v37 = vpack.c.bf16 %v834_v34, %v834_v34  ;;  %v963_v40 = vpack.c.bf16 %v714_v28, %v714_v28 }
 0x135   : > { %v6595_v44 = vpack.c.bf16 %v1216_v35, %v1216_v35  ;;  %1563 = vst [vmem:[#allocation3 + $0x88] sm:$0xf] %v6556_v26  ;;  %v4900_v26 = vld [vmem:[#allocation3 + $0x168] sm:$0xf]  ;;  %v699_v25 = vpop.f32.mrf.mxu2 }
 0x136   : > { %898 = vst [vmem:[#allocation3 + $0x18c] sm:$0xf] %v866_v37  ;;  %v4902_v6 = vld [vmem:[#allocation3 + $0x18c] sm:$0xf0]  ;;  %v700_v28 = vadd.f32 %v6513_v43, %v699_v25 }
 0x137   : > { %v651_v45 = vpop.f32.mrf.mxu0  ;;  %1184 = vst [vmem:[#allocation3 + $0x150] sm:$0xf] %v866_v37  ;;  %v5713_v63 = vld [vmem:[#allocation3 + $0x12c] sm:$0xf]  ;;  %v4905_v18 = vor.u32 %v5721_v12, %v4902_v6 }
 0x138   : > { %v652_v46 = vadd.f32 %v6513_v43, %v651_v45  ;;  %995 = vst [vmem:[#allocation3 + $0x1b4] sm:$0xf] %v963_v40  ;;  %v734_v34 = vmax.f32 %v700_v28, 0.0 }
 0x139   : > { %1280 = vst [vmem:[#allocation3 + $0x154] sm:$0xf] %v6595_v44 }
 0x13a   : > { %v715_v48 = vmax.f32 %v652_v46, 0.0  ;;  %1085 = vst [vmem:[#allocation3 + $0xe0] sm:$0xf] %v6576_v8  ;;  %v697_v8 = vadd.f32 %v6513_v43, %v696_v0 }
 0x13b   : > { %v835_v50 = vld [vmem:[#allocation2 + $0x90] sm:$0xff]  ;;  %819 = vst [vmem:[#allocation2 + $0x169] sm:$0xff] %v6602_v55  ;;  %3286 = vmatmul.bf16.gmra.mxu2 %v4905_v18 }
 0x13c   : > { %v1217_v5 = vld [vmem:[#allocation2 + $0x91] sm:$0xff]  ;;  %802 = vst [vmem:[#allocation2 + $0x99] sm:$0xff] %v715_v48  ;;  %v867_v51 = vpack.c.bf16 %v835_v50, %v835_v50  ;;  %v964_v52 = vpack.c.bf16 %v715_v48, %v715_v48  ;;  %v6614_v14 = vmax.f32 %v697_v8, 0.0 }
 0x13d   : > { %v6605_v56 = vpack.c.bf16 %v1217_v5, %v1217_v5  ;;  %v5725_v61 = vld [vmem:[#allocation3 + $0x188] sm:$0xf0]  ;;  %1086 = vst [vmem:[#allocation3 + $0x104] sm:$0xf] %v6585_v20  ;;  %v701_v47 = vpop.f32.mrf.mxu2 }
 0x13e   : > { %899 = vst [vmem:[#allocation3 + $0x1b0] sm:$0xf] %v867_v51  ;;  %v4874_v59 = vld [vmem:[#allocation3 + $0x14c] sm:$0xf0]  ;;  %v4901_v9 = vor.u32 %v5725_v61, %v4900_v26  ;;  %v702_v5 = vadd.f32 %v6513_v43, %v701_v47 }
 0x13f   : > { %v654_v58 = vpop.f32.mrf.mxu0  ;;  %996 = vst [vmem:[#allocation3 + $0x1d8] sm:$0xf] %v964_v52  ;;  %v4877_v7 = vor.u32 %v5713_v63, %v4874_v59  ;;  %v5730_v53 = vld [vmem:[#allocation3 + $0x1b4] sm:$0xf]  ;;  %v1311_v63 = vld [vmem:[#allocation2 + $0x7a] sm:$0xff] }
 0x140   : > { %v655_v60 = vadd.f32 %v6513_v43, %v654_v58  ;;  %1185 = vst [vmem:[#allocation3 + $0x174] sm:$0xf] %v867_v51  ;;  %v735_v58 = vmax.f32 %v702_v5, 0.0 }
 0x141   : > { %1281 = vst [vmem:[#allocation3 + $0x178] sm:$0xf] %v6605_v56 }
 0x142   : > { %v716_v4 = vmax.f32 %v655_v60, 0.0  ;;  %1373 = vst [vmem:[#allocation3 + $0xec] sm:$0xf] %v6609_v3  ;;  %v5858_v60 = vld [vmem:[#allocation10 + $0x130] sm:$0xff] }
 0x143   : > { %v836_v10 = vld [vmem:[#allocation2 + $0x98] sm:$0xff]  ;;  %3197 = vmatmul.bf16.gmra.mxu1 %v4901_v9  ;;  %820 = vst [vmem:[#allocation2 + $0x171] sm:$0xff] %v6614_v14 }
 0x144   : > { %v1218_v11 = vld [vmem:[#allocation2 + $0x99] sm:$0xff]  ;;  %803 = vst [vmem:[#allocation2 + $0xa9] sm:$0xff] %v716_v4  ;;  %3459 = vmatmul.bf16.gmra.mxu0 %v4877_v7  ;;  %v868_v13 = vpack.c.bf16 %v836_v10, %v836_v10  ;;  %v965_v19 = vpack.c.bf16 %v716_v4, %v716_v4  ;;  %3521 = vmatpush.bf16.msrb.mxu1 %v5858_v60  ;;  %v1312_v7 = vld [vmem:[#allocation2 + $0x82] sm:$0xff] }
 0x145   : > { %v6617_v21 = vpack.c.bf16 %v1218_v11, %v1218_v11  ;;  %1374 = vst [vmem:[#allocation3 + $0x110] sm:$0xf] %v1342_v24  ;;  %v4936_v45 = vld [vmem:[#allocation3 + $0x1b0] sm:$0xf]  ;;  %v5857_v10 = vld [vmem:[#allocation10 + $0x128] sm:$0xff]  ;;  %v1344_v11 = vpack.c.bf16 %v1312_v7, %v1312_v7 }
 0x146   : > { %900 = vst [vmem:[#allocation3 + $0x1d4] sm:$0xf] %v868_v13  ;;  %v4938_v49 = vld [vmem:[#allocation3 + $0x1d4] sm:$0xf0]  ;;  %v5853_v60 = vld [vmem:[#allocation10 + $0x108] sm:$0xff] }
 0x147   : > { %v656_v23 = vpop.f32.mrf.mxu0  ;;  %1186 = vst [vmem:[#allocation3 + $0x198] sm:$0xf] %v868_v13  ;;  %v5722_v46 = vld [vmem:[#allocation3 + $0x174] sm:$0xf]  ;;  %v4941_v59 = vor.u32 %v5730_v53, %v4938_v49 }
 0x148   : > { %v657_v20 = vadd.f32 %v6513_v43, %v656_v23  ;;  %997 = vst [vmem:[#allocation3 + $0x1fc] sm:$0xf] %v965_v19  ;;  %3522 = vmatpush.bf16.msrb.mxu1 %v5857_v10 }
 0x149   : > { %1282 = vst [vmem:[#allocation3 + $0x19c] sm:$0xf] %v6617_v21 }
 0x14a   : > { %v717_v27 = vmax.f32 %v657_v20, 0.0  ;;  %1564 = vst [vmem:[#allocation3 + $0xac] sm:$0xf] %v6564_v42 }
 0x14b   : > { %v837_v29 = vld [vmem:[#allocation2 + $0xa8] sm:$0xff]  ;;  %821 = vst [vmem:[#allocation2 + $0x181] sm:$0xff] %v734_v34  ;;  %3291 = vmatmul.bf16.gmra.mxu2 %v4941_v59 }
 0x14c   : > { %v1219_v30 = vld [vmem:[#allocation2 + $0xa9] sm:$0xff]  ;;  %804 = vst [vmem:[#allocation2 + $0xb1] sm:$0xff] %v717_v27  ;;  %v869_v32 = vpack.c.bf16 %v837_v29, %v837_v29  ;;  %v966_v33 = vpack.c.bf16 %v717_v27, %v717_v27 }
 0x14d   : > { %v6624_v35 = vpack.c.bf16 %v1219_v30, %v1219_v30  ;;  %v5734_v40 = vld [vmem:[#allocation3 + $0x1d0] sm:$0xf0]  ;;  %1565 = vst [vmem:[#allocation3 + $0xd0] sm:$0xf] %v6572_v2  ;;  %v1343_v2 = vpack.c.bf16 %v1311_v63, %v1311_v63 }
 0x14e   : > { %901 = vst [vmem:[#allocation3 + $0x1f8] sm:$0xf] %v869_v32  ;;  %v4910_v37 = vld [vmem:[#allocation3 + $0x194] sm:$0xf0]  ;;  %v4937_v42 = vor.u32 %v5734_v40, %v4936_v45 }
 0x14f   : > { %v659_v36 = vpop.f32.mrf.mxu0  ;;  %998 = vst [vmem:[#allocation3 + $0x220] sm:$0xf] %v966_v33  ;;  %v4913_v50 = vor.u32 %v5722_v46, %v4910_v37  ;;  %v5856_v37 = vld [vmem:[#allocation10 + $0x120] sm:$0xff]  ;;  %v5855_v46 = vld [vmem:[#allocation10 + $0x118] sm:$0xff] }
 0x150   : > { %v660_v39 = vadd.f32 %v6513_v43, %v659_v36  ;;  %1187 = vst [vmem:[#allocation3 + $0x1bc] sm:$0xf] %v869_v32  ;;  %v5739_v32 = vld [vmem:[#allocation3 + $0x1fc] sm:$0xf]  ;;  %3523 = vmatpush.bf16.msrb.mxu1 %v5856_v37 }
 0x151   : > { %1283 = vst [vmem:[#allocation3 + $0x1c0] sm:$0xf] %v6624_v35 }
 0x152   : > { %v718_v48 = vmax.f32 %v660_v39, 0.0  ;;  %1087 = vst [vmem:[#allocation3 + $0x128] sm:$0xf] %v6609_v3  ;;  %v1313_v39 = vld [vmem:[#allocation2 + $0x92] sm:$0xff] }
 0x153   : > { %v838_v51 = vld [vmem:[#allocation2 + $0xb0] sm:$0xff]  ;;  %3202 = vmatmul.bf16.gmra.mxu1 %v4937_v42  ;;  %822 = vst [vmem:[#allocation2 + $0x189] sm:$0xff] %v735_v58 }
 0x154   : > { %v1220_v52 = vld [vmem:[#allocation2 + $0xb1] sm:$0xff]  ;;  %805 = vst [vmem:[#allocation2 + $0xc1] sm:$0xff] %v718_v48  ;;  %3464 = vmatmul.bf16.gmra.mxu0 %v4913_v50  ;;  %v870_v57 = vpack.c.bf16 %v838_v51, %v838_v51  ;;  %v967_v61 = vpack.c.bf16 %v718_v48, %v718_v48  ;;  %v6644_v48 = vpack.c.bf16 %v1313_v39, %v1313_v39  ;;  %v5854_v51 = vld [vmem:[#allocation10 + $0x110] sm:$0xff] }
 0x155   : > { %v6631_v26 = vpack.c.bf16 %v1220_v52, %v1220_v52  ;;  %1088 = vst [vmem:[#allocation3 + $0x14c] sm:$0xf] %v1342_v24  ;;  %v4972_v23 = vld [vmem:[#allocation3 + $0x1f8] sm:$0xf]  ;;  %3524 = vmatpush.bf16.msrb.mxu1 %v5855_v46 }
 0x156   : > { %902 = vst [vmem:[#allocation3 + $0x21c] sm:$0xf] %v870_v57  ;;  %v4974_v27 = vld [vmem:[#allocation3 + $0x21c] sm:$0xf0] }
 0x157   : > { %v661_v0 = vpop.f32.mrf.mxu0  ;;  %1188 = vst [vmem:[#allocation3 + $0x1e0] sm:$0xf] %v870_v57  ;;  %v5731_v20 = vld [vmem:[#allocation3 + $0x1bc] sm:$0xf]  ;;  %v4977_v36 = vor.u32 %v5739_v32, %v4974_v27 }
 0x158   : > { %v662_v4 = vadd.f32 %v6513_v43, %v661_v0  ;;  %999 = vst [vmem:[#allocation3 + $0x244] sm:$0xf] %v967_v61 }
 0x159   : > { %1284 = vst [vmem:[#allocation3 + $0x1e4] sm:$0xf] %v6631_v26  ;;  %3525 = vmatpush.bf16.msrb.mxu1 %v5854_v51 }
 0x15a   : > { %v719_v6 = vmax.f32 %v662_v4, 0.0  ;;  %1375 = vst [vmem:[#allocation3 + $0x134] sm:$0xf] %v1343_v2 }
 0x15b   : > { %v839_v8 = vld [vmem:[#allocation2 + $0xc0] sm:$0xff]  ;;  %1376 = vst [vmem:[#allocation3 + $0x158] sm:$0xf] %v1344_v11  ;;  %3296 = vmatmul.bf16.gmra.mxu2 %v4977_v36 }
 0x15c   : > { %806 = vst [vmem:[#allocation2 + $0xc9] sm:$0xff] %v719_v6  ;;  %v871_v3 = vpack.c.bf16 %v839_v8, %v839_v8  ;;  %v968_v9 = vpack.c.bf16 %v719_v6, %v719_v6  ;;  %v1221_v19 = vld [vmem:[#allocation2 + $0xc1] sm:$0xff] }
 0x15d   : > { %v5743_v18 = vld [vmem:[#allocation3 + $0x218] sm:$0xf0]  ;;  %v6636_v25 = vpack.c.bf16 %v1221_v19, %v1221_v19  ;;  %1566 = vst [vmem:[#allocation3 + $0xf4] sm:$0xf] %v6583_v17  ;;  %3526 = vmatpush.bf16.msrb.mxu1 %v5853_v60  ;;  %v6664_v19 = vld [vmem:[%s7451_s4] ss:$0 sm:$0xff] }
 0x15e   : > { %903 = vst [vmem:[#allocation3 + $0x240] sm:$0xf] %v871_v3  ;;  %v4946_v13 = vld [vmem:[#allocation3 + $0x1dc] sm:$0xf0]  ;;  %v4973_v29 = vor.u32 %v5743_v18, %v4972_v23  ;;  %v973_v18 = vpack.c.bf16 %v6536_v31, %v6536_v31 }
 0x15f   : > { %v664_v12 = vpop.f32.mrf.mxu0  ;;  %1000 = vst [vmem:[#allocation3 + $0x268] sm:$0xf] %v968_v9  ;;  %v4949_v28 = vor.u32 %v5731_v20, %v4946_v13  ;;  %v3173_v9 = vpop.f32.mrf.mxu1  ;;  %v5748_v10 = vld [vmem:[#allocation3 + $0x244] sm:$0xf] }
 0x160   : > { %v665_v15 = vadd.f32 %v6513_v43, %v664_v12  ;;  %1189 = vst [vmem:[#allocation3 + $0x204] sm:$0xf] %v871_v3  ;;  %v3174_v31 = vadd.f32 %v6664_v19, %v3173_v9 }
 0x161   : > { %1285 = vst [vmem:[#allocation3 + $0x208] sm:$0xf] %v6636_v25 }
 0x162   : > { %v720_v24 = vmax.f32 %v665_v15, 0.0  ;;  %1567 = vst [vmem:[#allocation3 + $0x118] sm:$0xf] %v6595_v44  ;;  %v1314_v44 = vld [vmem:[#allocation2 + $0x9a] sm:$0xff]  ;;  %v5852_v15 = vld [vmem:[#allocation10 + $0x100] sm:$0xff] }
 0x163   : > { %v840_v30 = vld [vmem:[#allocation2 + $0xc8] sm:$0xff]  ;;  %3207 = vmatmul.bf16.gmra.mxu1 %v4973_v29  ;;  %1089 = vst [vmem:[#allocation3 + $0x170] sm:$0xf] %v1343_v2  ;;  %v6647_v52 = vpack.c.bf16 %v1314_v44, %v1314_v44  ;;  %v3262_v29 = vpop.f32.mrf.mxu2 }
 0x164   : > { %807 = vst [vmem:[#allocation2 + $0xd9] sm:$0xff] %v720_v24  ;;  %3469 = vmatmul.bf16.gmra.mxu0 %v4949_v28  ;;  %v872_v33 = vpack.c.bf16 %v840_v30, %v840_v30  ;;  %v969_v34 = vpack.c.bf16 %v720_v24, %v720_v24  ;;  %v1222_v45 = vld [vmem:[#allocation2 + $0xc9] sm:$0xff]  ;;  %3527 = vmatpush.bf16.msrb.mxu1 %v5852_v15 }
 0x165   : > { %v6642_v47 = vpack.c.bf16 %v1222_v45, %v1222_v45  ;;  %1090 = vst [vmem:[#allocation3 + $0x194] sm:$0xf] %v1344_v11  ;;  %v5008_v63 = vld [vmem:[#allocation3 + $0x240] sm:$0xf]  ;;  %v6671_v36 = vadd.f32 %v3262_v29, %v3174_v31 }
 0x166   : > { %904 = vst [vmem:[#allocation3 + $0x264] sm:$0xf] %v872_v33  ;;  %v5010_v6 = vld [vmem:[#allocation3 + $0x264] sm:$0xf0] }
 0x167   : > { %v666_v40 = vpop.f32.mrf.mxu0  ;;  %1190 = vst [vmem:[#allocation3 + $0x228] sm:$0xf] %v872_v33  ;;  %v5740_v0 = vld [vmem:[#allocation3 + $0x204] sm:$0xf]  ;;  %v5013_v13 = vor.u32 %v5748_v10, %v5010_v6  ;;  %v3175_v30 = vpop.f32.mrf.mxu1  ;;  %v845_v33 = vld [vmem:[#allocation2 + $0x108] sm:$0xff] }
 0x168   : > { %v667_v17 = vadd.f32 %v6513_v43, %v666_v40  ;;  %1001 = vst [vmem:[#allocation3 + $0x28c] sm:$0xf] %v969_v34  ;;  %v846_v34 = vld [vmem:[#allocation2 + $0x110] sm:$0xff]  ;;  %v877_v37 = vpack.c.bf16 %v845_v33, %v845_v33  ;;  %v3176_v45 = vadd.f32 %v6664_v19, %v3175_v30 }
 0x169   : > { %1286 = vst [vmem:[#allocation3 + $0x22c] sm:$0xf] %v6642_v47  ;;  %v878_v39 = vpack.c.bf16 %v846_v34, %v846_v34  ;;  %v1316_v6 = vld [vmem:[#allocation2 + $0xb2] sm:$0xff] }
 0x16a   : > { %v721_v49 = vmax.f32 %v667_v17, 0.0  ;;  %1377 = vst [vmem:[#allocation3 + $0x17c] sm:$0xf] %v6644_v48 }
 0x16b   : > { %v841_v50 = vld [vmem:[#allocation2 + $0xd8] sm:$0xff]  ;;  %1378 = vst [vmem:[#allocation3 + $0x1a0] sm:$0xf] %v6647_v52  ;;  %3301 = vmatmul.bf16.gmra.mxu2 %v5013_v13  ;;  %v848_v13 = vld [vmem:[#allocation2 + $0x128] sm:$0xff] }
 0x16c   : > { %808 = vst [vmem:[#allocation2 + $0xe1] sm:$0xff] %v721_v49  ;;  %v873_v5 = vpack.c.bf16 %v841_v50, %v841_v50  ;;  %v970_v42 = vpack.c.bf16 %v721_v49, %v721_v49  ;;  %v1223_v61 = vld [vmem:[#allocation2 + $0xd9] sm:$0xff] }
 0x16d   : > { %v5752_v59 = vld [vmem:[#allocation3 + $0x260] sm:$0xf0]  ;;  %v6651_v4 = vpack.c.bf16 %v1223_v61, %v1223_v61  ;;  %1568 = vst [vmem:[#allocation3 + $0x13c] sm:$0xf] %v6605_v56  ;;  %v974_v56 = vpack.c.bf16 %v6541_v54, %v6541_v54 }
 0x16e   : > { %905 = vst [vmem:[#allocation3 + $0x288] sm:$0xf] %v873_v5  ;;  %v4982_v57 = vld [vmem:[#allocation3 + $0x224] sm:$0xf0]  ;;  %v5009_v8 = vor.u32 %v5752_v59, %v5008_v63  ;;  %v5842_v63 = vld [vmem:[#allocation10 + $0xb0] sm:$0xff] }
 0x16f   : > { %v669_v53 = vpop.f32.mrf.mxu0  ;;  %1002 = vst [vmem:[#allocation3 + $0x2b0] sm:$0xf] %v970_v42  ;;  %v4985_v7 = vor.u32 %v5740_v0, %v4982_v57  ;;  %v975_v0 = vpack.c.bf16 %v6546_v1, %v6546_v1 }
 0x170   : > { %v670_v58 = vadd.f32 %v6513_v43, %v669_v53  ;;  %1191 = vst [vmem:[#allocation3 + $0x24c] sm:$0xf] %v873_v5  ;;  %v3264_v53 = vpop.f32.mrf.mxu2 }
 0x171   : > { %1287 = vst [vmem:[#allocation3 + $0x250] sm:$0xf] %v6651_v4  ;;  %v6677_v60 = vadd.f32 %v3264_v53, %v3176_v45 }
 0x172   : > { %v722_v2 = vmax.f32 %v670_v58, 0.0  ;;  %1569 = vst [vmem:[#allocation3 + $0x160] sm:$0xf] %v6617_v21  ;;  %v5843_v21 = vld [vmem:[#allocation10 + $0xb8] sm:$0xff]  ;;  %v5757_v58 = vld [vmem:[#allocation3 + $0x28c] sm:$0xf] }
 0x173   : > { %v842_v3 = vld [vmem:[#allocation2 + $0xe0] sm:$0xff]  ;;  %3212 = vmatmul.bf16.gmra.mxu1 %v5009_v8  ;;  %1005 = vst [vmem:[#allocation3 + $0x31c] sm:$0xf] %v973_v18  ;;  %3342 = vmatpush.bf16.msrb.mxu3 %v5843_v21 }
 0x174   : > { %809 = vst [vmem:[#allocation2 + $0xf1] sm:$0xff] %v722_v2  ;;  %3474 = vmatmul.bf16.gmra.mxu0 %v4985_v7  ;;  %v874_v11 = vpack.c.bf16 %v842_v3, %v842_v3  ;;  %v971_v12 = vpack.c.bf16 %v722_v2, %v722_v2  ;;  %v1224_v24 = vld [vmem:[#allocation2 + $0xe1] sm:$0xff]  ;;  %v976_v2 = vpack.c.bf16 %v6554_v22, %v6554_v22 }
 0x175   : > { %v6668_v27 = vpack.c.bf16 %v1224_v24, %v1224_v24  ;;  %1006 = vst [vmem:[#allocation3 + $0x340] sm:$0xf] %v974_v56  ;;  %v5044_v44 = vld [vmem:[#allocation3 + $0x288] sm:$0xf]  ;;  %v1348_v3 = vpack.c.bf16 %v1316_v6, %v1316_v6  ;;  %v1317_v21 = vld [vmem:[#allocation2 + $0xc2] sm:$0xff] }
 0x176   : > { %906 = vst [vmem:[#allocation3 + $0x2ac] sm:$0xf] %v874_v11  ;;  %v5046_v50 = vld [vmem:[#allocation3 + $0x2ac] sm:$0xf0]  ;;  %v5841_v56 = vld [vmem:[#allocation10 + $0xa8] sm:$0xff] }
 0x177   : > { %v671_v23 = vpop.f32.mrf.mxu0  ;;  %1192 = vst [vmem:[#allocation3 + $0x270] sm:$0xf] %v874_v11  ;;  %v5749_v49 = vld [vmem:[#allocation3 + $0x24c] sm:$0xf]  ;;  %v5049_v61 = vor.u32 %v5757_v58, %v5046_v50  ;;  %3343 = vmatpush.bf16.msrb.mxu3 %v5842_v63  ;;  %v850_v63 = vld [vmem:[#allocation2 + $0x140] sm:$0xff] }
 0x178   : > { %v672_v20 = vadd.f32 %v6513_v43, %v671_v23  ;;  %1003 = vst [vmem:[#allocation3 + $0x2d4] sm:$0xf] %v971_v12  ;;  %v847_v12 = vld [vmem:[#allocation2 + $0x120] sm:$0xff] }
 0x179   : > { %1288 = vst [vmem:[#allocation3 + $0x274] sm:$0xf] %v6668_v27  ;;  %v879_v23 = vpack.c.bf16 %v847_v12, %v847_v12 }
 0x17a   : > { %v723_v54 = vmax.f32 %v672_v20, 0.0  ;;  %1091 = vst [vmem:[#allocation3 + $0x1b8] sm:$0xf] %v6644_v48  ;;  %v1315_v48 = vld [vmem:[#allocation2 + $0xaa] sm:$0xff]  ;;  %v880_v20 = vpack.c.bf16 %v848_v13, %v848_v13 }
 0x17b   : > { %v843_v28 = vld [vmem:[#allocation2 + $0xf0] sm:$0xff]  ;;  %909 = vst [vmem:[#allocation3 + $0x318] sm:$0xf] %v877_v37  ;;  %v1347_v7 = vpack.c.bf16 %v1315_v48, %v1315_v48  ;;  %3306 = vmatmul.bf16.gmra.mxu2 %v5049_v61  ;;  %3344 = vmatpush.bf16.msrb.mxu3 %v5841_v56  ;;  %v849_v61 = vld [vmem:[#allocation2 + $0x138] sm:$0xff]  ;;  %v5691_v56 = vld [vmem:[#allocation3 + $0x78] sm:$0xf0] }
 0x17c   : > { %810 = vst [vmem:[#allocation2 + $0xf9] sm:$0xff] %v723_v54  ;;  %v875_v43 = vpack.c.bf16 %v843_v28, %v843_v28  ;;  %v972_v32 = vpack.c.bf16 %v723_v54, %v723_v54  ;;  %v1225_v8 = vld [vmem:[#allocation2 + $0xf1] sm:$0xff]  ;;  %v3267_v22 = vpop.f32.mrf.mxu2  ;;  %v5682_v54 = vld [vmem:[#allocation3 + $0x30] sm:$0xf0]  ;;  %v881_v6 = vpack.c.bf16 %v849_v61, %v849_v61 }
 0x17d   : > { %v5761_v17 = vld [vmem:[#allocation3 + $0x2a8] sm:$0xf0]  ;;  %910 = vst [vmem:[#allocation3 + $0x33c] sm:$0xf] %v878_v39  ;;  %v6687_v1 = vpack.c.bf16 %v1225_v8, %v1225_v8  ;;  %v1320_v8 = vld [vmem:[#allocation2 + $0xe2] sm:$0xff] }
 0x17e   : > { %907 = vst [vmem:[#allocation3 + $0x2d0] sm:$0xf] %v875_v43  ;;  %v5018_v40 = vld [vmem:[#allocation3 + $0x26c] sm:$0xf0]  ;;  %v5045_v42 = vor.u32 %v5761_v17, %v5044_v44 }
 0x17f   : > { %1004 = vst [vmem:[#allocation3 + $0x2f8] sm:$0xf] %v972_v32  ;;  %v5021_v5 = vor.u32 %v5749_v49, %v5018_v40  ;;  %v5766_v17 = vld [vmem:[#allocation3 + $0x2d4] sm:$0xf] }
 0x180   : > { %1193 = vst [vmem:[#allocation3 + $0x294] sm:$0xf] %v875_v43  ;;  %v3178_v57 = vpop.f32.mrf.mxu1  ;;  %v1229_v61 = vld [vmem:[#allocation2 + $0x121] sm:$0xff] }
 0x181   : > { %v6675_v46 = vpop.f32.mrf.mxu0  ;;  %1195 = vst [vmem:[#allocation3 + $0x2dc] sm:$0xf] %v877_v37  ;;  %v3179_v9 = vadd.f32 %v6664_v19, %v3178_v57  ;;  %v4736_v37 = vld [vmem:[#allocation3 + $0x10] sm:$0xf] }
 0x182   : > { %1196 = vst [vmem:[#allocation3 + $0x300] sm:$0xf] %v878_v39  ;;  %v4737_v45 = vor.u32 %v5682_v54, %v4736_v37  ;;  %v5116_v57 = vld [vmem:[#allocation3 + $0x318] sm:$0xf]  ;;  %v5118_v54 = vld [vmem:[#allocation3 + $0x33c] sm:$0xf0] }
 0x183   : > { %v844_v51 = vld [vmem:[#allocation2 + $0xf8] sm:$0xff]  ;;  %1092 = vst [vmem:[#allocation3 + $0x1dc] sm:$0xf] %v6647_v52  ;;  %3217 = vmatmul.bf16.gmra.mxu1 %v5045_v42  ;;  %v6690_v15 = vadd.f32 %v3267_v22, %v3179_v9  ;;  %v978_v42 = vpack.c.bf16 %v6570_v62, %v6570_v62 }
 0x184   : > { %3479 = vmatmul.bf16.gmra.mxu0 %v5021_v5  ;;  %v876_v59 = vpack.c.bf16 %v844_v51, %v844_v51  ;;  %1007 = vst [vmem:[#allocation3 + $0x364] sm:$0xf] %v975_v0  ;;  %v1226_v28 = vld [vmem:[#allocation2 + $0xf9] sm:$0xff]  ;;  %v3269_v39 = vpop.f32.mrf.mxu2  ;;  %v977_v5 = vpack.c.bf16 %v6562_v41, %v6562_v41  ;;  %v5779_v62 = vld [vmem:[#allocation3 + $0x338] sm:$0xf0]  ;;  %v1228_v22 = vld [vmem:[#allocation2 + $0x111] sm:$0xff] }
 0x185   : > { %1008 = vst [vmem:[#allocation3 + $0x388] sm:$0xf] %v976_v2  ;;  %v5080_v11 = vld [vmem:[#allocation3 + $0x2d0] sm:$0xf]  ;;  %v6697_v32 = vpack.c.bf16 %v1226_v28, %v1226_v28  ;;  %v5840_v2 = vld [vmem:[#allocation10 + $0xa0] sm:$0xff]  ;;  %v6729_v13 = vpack.c.bf16 %v1228_v22, %v1228_v22 }
 0x186   : > { %908 = vst [vmem:[#allocation3 + $0x2f4] sm:$0xf] %v876_v59  ;;  %v5082_v33 = vld [vmem:[#allocation3 + $0x2f4] sm:$0xf0]  ;;  %v1319_v51 = vld [vmem:[#allocation2 + $0xda] sm:$0xff]  ;;  %3345 = vmatpush.bf16.msrb.mxu3 %v5840_v2 }
 0x187   : > { %1194 = vst [vmem:[#allocation3 + $0x2b8] sm:$0xf] %v876_v59  ;;  %v5758_v43 = vld [vmem:[#allocation3 + $0x294] sm:$0xf]  ;;  %v5085_v50 = vor.u32 %v5766_v17, %v5082_v33  ;;  %v6716_v41 = vpack.c.bf16 %v1319_v51, %v1319_v51  ;;  %v1321_v33 = vld [vmem:[#allocation2 + $0xf2] sm:$0xff] }
 0x188   : > { %1379 = vst [vmem:[#allocation3 + $0x1c4] sm:$0xf] %v1347_v7  ;;  %v3180_v52 = vpop.f32.mrf.mxu1  ;;  %v852_v51 = vld [vmem:[#allocation2 + $0x158] sm:$0xff] }
 0x189   : > { %v6685_v10 = vpop.f32.mrf.mxu0  ;;  %1289 = vst [vmem:[#allocation3 + $0x298] sm:$0xf] %v6687_v1  ;;  %v3181_v29 = vadd.f32 %v6664_v19, %v3180_v52  ;;  %v5090_v9 = vld [vmem:[#allocation3 + $0x2fc] sm:$0xf0] }
 0x18a   : > { %1380 = vst [vmem:[#allocation3 + $0x1e8] sm:$0xf] %v1348_v3 }
 0x18b   : > { %1570 = vst [vmem:[#allocation3 + $0x184] sm:$0xf] %v6624_v35  ;;  %v1318_v35 = vld [vmem:[#allocation2 + $0xca] sm:$0xff]  ;;  %v6704_v44 = vadd.f32 %v3269_v39, %v3181_v29  ;;  %3311 = vmatmul.bf16.gmra.mxu2 %v5085_v50  ;;  %v6743_v39 = vpack.c.bf16 %v1321_v33, %v1321_v33 }
 0x18c   : > { %1571 = vst [vmem:[#allocation3 + $0x1a8] sm:$0xf] %v6631_v26  ;;  %v6699_v26 = vpack.c.bf16 %v1317_v21, %v1317_v21  ;;  %v6702_v49 = vpack.c.bf16 %v1318_v35, %v1318_v35  ;;  %v5775_v21 = vld [vmem:[#allocation3 + $0x31c] sm:$0xf]  ;;  %v980_v35 = vpack.c.bf16 %v6592_v38, %v6592_v38 }
 0x18d   : > { %v5770_v18 = vld [vmem:[#allocation3 + $0x2f0] sm:$0xf0]  ;;  %911 = vst [vmem:[#allocation3 + $0x360] sm:$0xf] %v879_v23  ;;  %v5121_v37 = vor.u32 %v5775_v21, %v5118_v54  ;;  %v981_v21 = vpack.c.bf16 %v6602_v55, %v6602_v55  ;;  %v982_v54 = vpack.c.bf16 %v6614_v14, %v6614_v14  ;;  %v5867_v33 = vld [vmem:[#allocation10 + $0x178] sm:$0xff] }
 0x18e   : > { %v5081_v24 = vor.u32 %v5770_v18, %v5080_v11  ;;  %v5054_v31 = vld [vmem:[#allocation3 + $0x2b4] sm:$0xf0]  ;;  %912 = vst [vmem:[#allocation3 + $0x384] sm:$0xf] %v880_v20  ;;  %v3272_v58 = vpop.f32.mrf.mxu2  ;;  %v6731_v18 = vpack.c.bf16 %v1320_v8, %v1320_v8  ;;  %v4808_v8 = vld [vmem:[#allocation3 + $0xa0] sm:$0xf]  ;;  %3609 = vmatpush.bf16.msra.mxu2 %v5867_v33 }
 0x18f   : > { %1197 = vst [vmem:[#allocation3 + $0x324] sm:$0xf] %v879_v23  ;;  %v5057_v34 = vor.u32 %v5758_v43, %v5054_v31  ;;  %v979_v43 = vpack.c.bf16 %v6580_v16, %v6580_v16  ;;  %v5839_v16 = vld [vmem:[#allocation10 + $0x98] sm:$0xff] }
 0x190   : > { %3222 = vmatmul.bf16.vlgmr.msra.gmra.mxu3 %v5081_v24  ;;  %1198 = vst [vmem:[#allocation3 + $0x348] sm:$0xf] %v880_v20  ;;  %v3183_v40 = vpop.f32.mrf.mxu1  ;;  %v4772_v20 = vld [vmem:[#allocation3 + $0x58] sm:$0xf] }
 0x191   : > { %v6695_v30 = vpop.f32.mrf.mxu0  ;;  %1290 = vst [vmem:[#allocation3 + $0x2bc] sm:$0xf] %v6697_v32  ;;  %v3184_v48 = vadd.f32 %v6664_v19, %v3183_v40  ;;  %v4773_v29 = vor.u32 %v5691_v56, %v4772_v20  ;;  %3346 = vmatpush.bf16.msrb.mxu3 %v5839_v16  ;;  %v5154_v56 = vld [vmem:[#allocation3 + $0x384] sm:$0xf0]  ;;  %v5866_v16 = vld [vmem:[#allocation10 + $0x170] sm:$0xff] }
 0x192   : > { %1093 = vst [vmem:[#allocation3 + $0x200] sm:$0xf] %v1347_v7  ;;  %v882_v7 = vpack.c.bf16 %v850_v63, %v850_v63  ;;  %v1230_v63 = vld [vmem:[#allocation2 + $0x129] sm:$0xff]  ;;  %3610 = vmatpush.bf16.msra.mxu2 %v5866_v16 }
 0x193   : > { %1094 = vst [vmem:[#allocation3 + $0x224] sm:$0xf] %v1348_v3  ;;  %3528 = vmatmul.bf16.vlgmr.msrb.gmra.mxu1 %v4737_v45  ;;  %v6720_v0 = vadd.f32 %v3272_v58, %v3184_v48  ;;  %v5767_v3 = vld [vmem:[#allocation3 + $0x2dc] sm:$0xf]  ;;  %v1596_v33 = vld [vmem:[#allocation2 + $0x62] sm:$0xff] }
 0x194   : > { %3484 = vmatmul.bf16.gmra.mxu0 %v5057_v34  ;;  %1381 = vst [vmem:[#allocation3 + $0x20c] sm:$0xf] %v6699_v26  ;;  %v5093_v23 = vor.u32 %v5767_v3, %v5090_v9  ;;  %v1322_v34 = vld [vmem:[#allocation2 + $0xfa] sm:$0xff]  ;;  %v5700_v3 = vld [vmem:[#allocation3 + $0xc0] sm:$0xf0] }
 0x195   : > { %1009 = vst [vmem:[#allocation3 + $0x3ac] sm:$0xf] %v977_v5  ;;  %v6749_v38 = vpack.c.bf16 %v1322_v34, %v1322_v34  ;;  %v5788_v45 = vld [vmem:[#allocation3 + $0x380] sm:$0xf0] }
 0x196   : > { %1010 = vst [vmem:[#allocation3 + $0x3d0] sm:$0xf] %v978_v42  ;;  %v3274_v24 = vpop.f32.mrf.mxu2  ;;  %v851_v42 = vld [vmem:[#allocation2 + $0x150] sm:$0xff] }
 0x197   : > { %1382 = vst [vmem:[#allocation3 + $0x230] sm:$0xf] %v6702_v49  ;;  %v5776_v58 = vld [vmem:[#allocation3 + $0x324] sm:$0xf] }
 0x198   : > { %1572 = vst [vmem:[#allocation3 + $0x1cc] sm:$0xf] %v6636_v25  ;;  %v3185_v59 = vpop.f32.mrf.mxu1  ;;  %v5117_v25 = vor.u32 %v5779_v62, %v5116_v57  ;;  %v883_v57 = vpack.c.bf16 %v851_v42, %v851_v42  ;;  %v884_v62 = vpack.c.bf16 %v852_v51, %v852_v51 }
 0x199   : > { %v6712_v53 = vpop.f32.mrf.mxu0  ;;  %1573 = vst [vmem:[#allocation3 + $0x1f0] sm:$0xf] %v6642_v47  ;;  %v1227_v47 = vld [vmem:[#allocation2 + $0x109] sm:$0xff]  ;;  %v3186_v52 = vadd.f32 %v6664_v19, %v3185_v59  ;;  %v5126_v59 = vld [vmem:[#allocation3 + $0x344] sm:$0xf0] }
 0x19a   : > { %1095 = vst [vmem:[#allocation3 + $0x248] sm:$0xf] %v6699_v26  ;;  %v6727_v12 = vpack.c.bf16 %v1227_v47, %v1227_v47  ;;  %v5129_v9 = vor.u32 %v5776_v58, %v5126_v59  ;;  %v1323_v47 = vld [vmem:[#allocation2 + $0x10a] sm:$0xff] }
 0x19b   : > { %1096 = vst [vmem:[#allocation3 + $0x26c] sm:$0xf] %v6702_v49  ;;  %v6735_v28 = vadd.f32 %v3274_v24, %v3186_v52  ;;  %3316 = vmatmul.bf16.gmra.mxu2 %v5121_v37  ;;  %v4809_v24 = vor.u32 %v5700_v3, %v4808_v8  ;;  %v1326_v58 = vld [vmem:[#allocation2 + $0x12a] sm:$0xff] }
 0x19c   : > { %1383 = vst [vmem:[#allocation3 + $0x254] sm:$0xf] %v6716_v41  ;;  %v1594_v59 = vld [vmem:[#allocation2 + $0x4a] sm:$0xff]  ;;  %v6795_v3 = vpack.c.bf16 %v1326_v58, %v1326_v58 }
 0x19d   : > { %913 = vst [vmem:[#allocation3 + $0x3a8] sm:$0xf] %v881_v6 }
 0x19e   : > { %914 = vst [vmem:[#allocation3 + $0x3cc] sm:$0xf] %v882_v7  ;;  %v3277_v50 = vpop.f32.mrf.mxu2 }
 0x19f   : > { %1199 = vst [vmem:[#allocation3 + $0x36c] sm:$0xf] %v881_v6 }
 0x1a0   : > { %3227 = vmatmul.bf16.gmra.mxu3 %v5117_v25  ;;  %1200 = vst [vmem:[#allocation3 + $0x390] sm:$0xf] %v882_v7  ;;  %v3188_v31 = vpop.f32.mrf.mxu1  ;;  %v6761_v7 = vpack.c.bf16 %v1229_v61, %v1229_v61  ;;  %v6763_v25 = vpack.c.bf16 %v1230_v63, %v1230_v63 }
 0x1a1   : > { %v6725_v11 = vpop.f32.mrf.mxu0  ;;  %1291 = vst [vmem:[#allocation3 + $0x2e0] sm:$0xf] %v6727_v12  ;;  %v3189_v40 = vadd.f32 %v6664_v19, %v3188_v31  ;;  %v5838_v31 = vld [vmem:[#allocation10 + $0x90] sm:$0xff] }
 0x1a2   : > { %1292 = vst [vmem:[#allocation3 + $0x304] sm:$0xf] %v6729_v13  ;;  %3347 = vmatpush.bf16.msrb.mxu3 %v5838_v31  ;;  %v5190_v31 = vld [vmem:[#allocation3 + $0x3cc] sm:$0xf0] }
 0x1a3   : > { %1384 = vst [vmem:[#allocation3 + $0x278] sm:$0xf] %v6731_v18  ;;  %3533 = vmatmul.bf16.gmra.mxu1 %v4773_v29  ;;  %v6754_v48 = vadd.f32 %v3277_v50, %v3189_v40  ;;  %v6775_v29 = vpack.c.bf16 %v1323_v47, %v1323_v47  ;;  %v1626_v47 = vpack.c.bf16 %v1594_v59, %v1594_v59 }
 0x1a4   : > { %3489 = vmatmul.bf16.gmra.mxu0 %v5093_v23  ;;  %1574 = vst [vmem:[#allocation3 + $0x214] sm:$0xf] %v6651_v4  ;;  %v5152_v4 = vld [vmem:[#allocation3 + $0x360] sm:$0xf]  ;;  %v5188_v14 = vld [vmem:[#allocation3 + $0x3a8] sm:$0xf] }
 0x1a5   : > { %1011 = vst [vmem:[#allocation3 + $0x3f4] sm:$0xf] %v979_v43  ;;  %v1324_v23 = vld [vmem:[#allocation2 + $0x112] sm:$0xff] }
 0x1a6   : > { %1012 = vst [vmem:[#allocation3 + $0x418] sm:$0xf] %v980_v35  ;;  %v3279_v22 = vpop.f32.mrf.mxu2  ;;  %v6777_v35 = vpack.c.bf16 %v1324_v23, %v1324_v23  ;;  %v5785_v61 = vld [vmem:[#allocation3 + $0x36c] sm:$0xf] }
 0x1a7   : > { %1575 = vst [vmem:[#allocation3 + $0x238] sm:$0xf] %v6668_v27  ;;  %v5153_v27 = vor.u32 %v5788_v45, %v5152_v4  ;;  %v853_v4 = vld [vmem:[#allocation2 + $0x168] sm:$0xff]  ;;  %v854_v45 = vld [vmem:[#allocation2 + $0x170] sm:$0xff]  ;;  %v5162_v63 = vld [vmem:[#allocation3 + $0x38c] sm:$0xf0] }
 0x1a8   : > { %1097 = vst [vmem:[#allocation3 + $0x290] sm:$0xf] %v6716_v41  ;;  %v3190_v5 = vpop.f32.mrf.mxu1  ;;  %v885_v42 = vpack.c.bf16 %v853_v4, %v853_v4  ;;  %v886_v51 = vpack.c.bf16 %v854_v45, %v854_v45 }
 0x1a9   : > { %v6746_v17 = vpop.f32.mrf.mxu0  ;;  %1098 = vst [vmem:[#allocation3 + $0x2b4] sm:$0xf] %v6731_v18  ;;  %v3191_v2 = vadd.f32 %v6664_v19, %v3190_v5  ;;  %v5837_v5 = vld [vmem:[#allocation10 + $0x88] sm:$0xff] }
 0x1aa   : > { %1385 = vst [vmem:[#allocation3 + $0x29c] sm:$0xf] %v6743_v39  ;;  %3348 = vmatpush.bf16.msrb.mxu3 %v5837_v5 }
 0x1ab   : > { %1386 = vst [vmem:[#allocation3 + $0x2c0] sm:$0xf] %v6749_v38  ;;  %v6767_v20 = vadd.f32 %v3279_v22, %v3191_v2  ;;  %v1595_v2 = vld [vmem:[#allocation2 + $0x52] sm:$0xff]  ;;  %v5793_v22 = vld [vmem:[#allocation3 + $0x3ac] sm:$0xf] }
 0x1ac   : > { %1576 = vst [vmem:[#allocation3 + $0x25c] sm:$0xf] %v6687_v1  ;;  %v5784_v1 = vld [vmem:[#allocation3 + $0x364] sm:$0xf] }
 0x1ad   : > { %915 = vst [vmem:[#allocation3 + $0x3f0] sm:$0xf] %v883_v57  ;;  %v5157_v43 = vor.u32 %v5784_v1, %v5154_v56  ;;  %v5165_v1 = vor.u32 %v5785_v61, %v5162_v63  ;;  %v1627_v56 = vpack.c.bf16 %v1595_v2, %v1595_v2  ;;  %v5883_v63 = vld [vmem:[#allocation10 + $0x1f8] sm:$0xff]  ;;  %v5836_v2 = vld [vmem:[#allocation10 + $0x80] sm:$0xff] }
 0x1ae   : > { %916 = vst [vmem:[#allocation3 + $0x414] sm:$0xf] %v884_v62  ;;  %v3282_v37 = vpop.f32.mrf.mxu2  ;;  %3787 = vmatpush.bf16.msra.mxu0 %v5883_v63  ;;  %3349 = vmatpush.bf16.msrb.mxu3 %v5836_v2  ;;  %v5880_v63 = vld [vmem:[#allocation10 + $0x1e0] sm:$0xff] }
 0x1af   : > { %1201 = vst [vmem:[#allocation3 + $0x3b4] sm:$0xf] %v883_v57  ;;  %3321 = vmatmul.bf16.gmra.mxu2 %v5157_v43  ;;  %v1325_v57 = vld [vmem:[#allocation2 + $0x122] sm:$0xff] }
 0x1b0   : > { %3232 = vmatmul.bf16.gmra.mxu3 %v5153_v27  ;;  %1202 = vst [vmem:[#allocation3 + $0x3d8] sm:$0xf] %v884_v62  ;;  %v3193_v52 = vpop.f32.mrf.mxu1  ;;  %v5865_v27 = vld [vmem:[#allocation10 + $0x168] sm:$0xff] }
 0x1b1   : > { %v6759_v6 = vpop.f32.mrf.mxu0  ;;  %1293 = vst [vmem:[#allocation3 + $0x328] sm:$0xf] %v6761_v7  ;;  %v3194_v34 = vadd.f32 %v6664_v19, %v3193_v52  ;;  %3611 = vmatpush.bf16.msra.mxu2 %v5865_v27  ;;  %v4844_v52 = vld [vmem:[#allocation3 + $0xe8] sm:$0xf]  ;;  %v5862_v27 = vld [vmem:[#allocation10 + $0x150] sm:$0xff] }
 0x1b2   : > { %1294 = vst [vmem:[#allocation3 + $0x34c] sm:$0xf] %v6763_v25 }
 0x1b3   : > { %1577 = vst [vmem:[#allocation3 + $0x280] sm:$0xf] %v6697_v32  ;;  %3538 = vmatmul.bf16.gmra.mxu1 %v4809_v24  ;;  %v5797_v32 = vld [vmem:[#allocation3 + $0x3c8] sm:$0xf0]  ;;  %v6786_v50 = vadd.f32 %v3282_v37, %v3194_v34  ;;  %v1597_v34 = vld [vmem:[#allocation2 + $0x6a] sm:$0xff]  ;;  %v1628_v37 = vpack.c.bf16 %v1596_v33, %v1596_v33 }
 0x1b4   : > { %3494 = vmatmul.bf16.gmra.mxu0 %v5129_v9  ;;  %1099 = vst [vmem:[#allocation3 + $0x2d8] sm:$0xf] %v6743_v39  ;;  %v5189_v62 = vor.u32 %v5797_v32, %v5188_v14  ;;  %v5709_v9 = vld [vmem:[#allocation3 + $0x108] sm:$0xf0]  ;;  %v5193_v14 = vor.u32 %v5793_v22, %v5190_v31  ;;  %v5863_v32 = vld [vmem:[#allocation10 + $0x158] sm:$0xff]  ;;  %v1629_v16 = vpack.c.bf16 %v1597_v34, %v1597_v34 }
 0x1b5   : > { %1013 = vst [vmem:[#allocation3 + $0x43c] sm:$0xf] %v981_v21  ;;  %v5864_v21 = vld [vmem:[#allocation10 + $0x160] sm:$0xff]  ;;  %v4845_v43 = vor.u32 %v5709_v9, %v4844_v52  ;;  %v5224_v4 = vld [vmem:[#allocation3 + $0x3f0] sm:$0xf] }
 0x1b6   : > { %1014 = vst [vmem:[#allocation3 + $0x460] sm:$0xf] %v982_v54  ;;  %v3284_v23 = vpop.f32.mrf.mxu2  ;;  %3612 = vmatpush.bf16.msra.mxu2 %v5864_v21  ;;  %v5806_v45 = vld [vmem:[#allocation3 + $0x410] sm:$0xf0]  ;;  %v4880_v31 = vld [vmem:[#allocation3 + $0x130] sm:$0xf] }
 0x1b7   : > { %1100 = vst [vmem:[#allocation3 + $0x2fc] sm:$0xf] %v6749_v38  ;;  %v5794_v9 = vld [vmem:[#allocation3 + $0x3b4] sm:$0xf]  ;;  %v5198_v22 = vld [vmem:[#allocation3 + $0x3d4] sm:$0xf0] }
 0x1b8   : > { %1387 = vst [vmem:[#allocation3 + $0x2e4] sm:$0xf] %v6775_v29  ;;  %v3195_v40 = vpop.f32.mrf.mxu1  ;;  %v5882_v52 = vld [vmem:[#allocation10 + $0x1f0] sm:$0xff] }
 0x1b9   : > { %v6780_v55 = vpop.f32.mrf.mxu0  ;;  %1388 = vst [vmem:[#allocation3 + $0x308] sm:$0xf] %v6777_v35  ;;  %v3196_v8 = vadd.f32 %v6664_v19, %v3195_v40  ;;  %v5718_v21 = vld [vmem:[#allocation3 + $0x150] sm:$0xf0]  ;;  %3788 = vmatpush.bf16.msra.mxu0 %v5882_v52 }
 0x1ba   : > { %1578 = vst [vmem:[#allocation3 + $0x2a4] sm:$0xf] %v6727_v12  ;;  %v6790_v12 = vpack.c.bf16 %v1325_v57, %v1325_v57  ;;  %3613 = vmatpush.bf16.msra.mxu2 %v5863_v32  ;;  %v1598_v57 = vld [vmem:[#allocation2 + $0x7a] sm:$0xff]  ;;  %v5802_v34 = vld [vmem:[#allocation3 + $0x3f4] sm:$0xf] }
 0x1bb   : > { %1579 = vst [vmem:[#allocation3 + $0x2c8] sm:$0xf] %v6729_v13  ;;  %v6799_v54 = vadd.f32 %v3284_v23, %v3196_v8  ;;  %v5225_v8 = vor.u32 %v5806_v45, %v5224_v4  ;;  %v1402_v23 = vld [vmem:[#allocation2 + $0x48] sm:$0xff] }
 0x1bc   : > { %1101 = vst [vmem:[#allocation3 + $0x320] sm:$0xf] %v6775_v29  ;;  %v1434_v33 = vpack.c.bf16 %v1402_v23, %v1402_v23  ;;  %v1016_v4 = vld [vmem:[#allocation2 + $0xa] sm:$0xff] }
 0x1bd   : > { %917 = vst [vmem:[#allocation3 + $0x438] sm:$0xf] %v885_v42 }
 0x1be   : > { %918 = vst [vmem:[#allocation3 + $0x45c] sm:$0xf] %v886_v51  ;;  %3614 = vmatpush.bf16.msra.mxu2 %v5862_v27  ;;  %v1141_v27 = vld [vmem:[#allocation2 + $0x180] sm:$0xff] }
 0x1bf   : > { %1203 = vst [vmem:[#allocation3 + $0x3fc] sm:$0xf] %v885_v42  ;;  %3326 = vmatmul.bf16.gmra.mxu2 %v5193_v14  ;;  %v1231_v42 = vld [vmem:[#allocation2 + $0x139] sm:$0xff]  ;;  %v5226_v14 = vld [vmem:[#allocation3 + $0x414] sm:$0xf0] }
 0x1c0   : > { %3237 = vmatmul.bf16.gmra.mxu3 %v5189_v62  ;;  %1204 = vst [vmem:[#allocation3 + $0x420] sm:$0xf] %v886_v51  ;;  %v3198_v24 = vpop.f32.mrf.mxu1  ;;  %v1232_v51 = vld [vmem:[#allocation2 + $0x141] sm:$0xff]  ;;  %v1263_v58 = vpack.c.bf16 %v1231_v42, %v1231_v42 }
 0x1c1   : > { %v6793_v13 = vpop.f32.mrf.mxu0  ;;  %1102 = vst [vmem:[#allocation3 + $0x344] sm:$0xf] %v6777_v35  ;;  %v3199_v40 = vadd.f32 %v6664_v19, %v3198_v24  ;;  %v1264_v59 = vpack.c.bf16 %v1232_v51, %v1232_v51  ;;  %v4881_v51 = vor.u32 %v5718_v21, %v4880_v31  ;;  %v1234_v31 = vld [vmem:[#allocation2 + $0x159] sm:$0xff] }
 0x1c2   : > { %7473 = vst [vmem:[#allocation19_spill] sm:$0xff] %v6793_v13 }
 0x1c3   : > { %1389 = vst [vmem:[#allocation3 + $0x32c] sm:$0xf] %v6790_v12  ;;  %3543 = vmatmul.bf16.gmra.mxu1 %v4845_v43  ;;  %v5201_v43 = vor.u32 %v5794_v9, %v5198_v22  ;;  %v1601_v9 = vld [vmem:[#allocation2 + $0x9a] sm:$0xff] }
 0x1c4   : > { %3499 = vmatmul.bf16.gmra.mxu0 %v5165_v1  ;;  %1390 = vst [vmem:[#allocation3 + $0x350] sm:$0xf] %v6795_v3  ;;  %v5861_v1 = vld [vmem:[#allocation10 + $0x148] sm:$0xff] }
 0x1c5   : > { %1658 = vst [vmem:[#allocation3 + $0x68] sm:$0xf] %v1626_v47  ;;  %v1630_v47 = vpack.c.bf16 %v1598_v57, %v1598_v57  ;;  %3615 = vmatpush.bf16.msra.mxu2 %v5861_v1  ;;  %v5881_v57 = vld [vmem:[#allocation10 + $0x1e8] sm:$0xff]  ;;  %v5815_v23 = vld [vmem:[#allocation3 + $0x458] sm:$0xf0] }
 0x1c6   : > { %1659 = vst [vmem:[#allocation3 + $0x8c] sm:$0xf] %v1627_v56  ;;  %3789 = vmatpush.bf16.msra.mxu0 %v5881_v57 }
 0x1c7   : > { %1580 = vst [vmem:[#allocation3 + $0x2ec] sm:$0xf] %v6761_v7  ;;  %v3287_v7 = vpop.f32.mrf.mxu2 }
 0x1c8   : > { %1581 = vst [vmem:[#allocation3 + $0x310] sm:$0xf] %v6763_v25  ;;  %v3200_v62 = vpop.f32.mrf.mxu1  ;;  %v1599_v25 = vld [vmem:[#allocation2 + $0x82] sm:$0xff]  ;;  %v6809_v61 = vadd.f32 %v3287_v7, %v3199_v40  ;;  %v5860_v40 = vld [vmem:[#allocation10 + $0x140] sm:$0xff] }
 0x1c9   : > { %1103 = vst [vmem:[#allocation3 + $0x368] sm:$0xf] %v6790_v12  ;;  %v6806_v5 = vpop.f32.mrf.mxu0  ;;  %v1631_v56 = vpack.c.bf16 %v1599_v25, %v1599_v25  ;;  %v3201_v24 = vadd.f32 %v6664_v19, %v3200_v62  ;;  %v1048_v62 = vpack.c.bf16 %v1016_v4, %v1016_v4  ;;  %3616 = vmatpush.bf16.msra.mxu2 %v5860_v40  ;;  %v1404_v40 = vld [vmem:[#allocation2 + $0x60] sm:$0xff]  ;;  %v5803_v4 = vld [vmem:[#allocation3 + $0x3fc] sm:$0xf] }
 0x1ca   : > { %7474 = vst [vmem:[#allocation20_spill] sm:$0xff] %v6806_v5  ;;  %v5229_v25 = vor.u32 %v5802_v34, %v5226_v14  ;;  %3790 = vmatpush.bf16.msra.mxu0 %v5880_v63  ;;  %v1266_v34 = vpack.c.bf16 %v1234_v31, %v1234_v31  ;;  %v5727_v63 = vld [vmem:[#allocation3 + $0x198] sm:$0xf0] }
 0x1cb   : > { %1104 = vst [vmem:[#allocation3 + $0x38c] sm:$0xf] %v6795_v3  ;;  %v1602_v31 = vld [vmem:[#allocation2 + $0xaa] sm:$0xff] }
 0x1cc   : > { %1660 = vst [vmem:[#allocation3 + $0xb0] sm:$0xf] %v1628_v37 }
 0x1cd   : > { %1661 = vst [vmem:[#allocation3 + $0xd4] sm:$0xf] %v1629_v16  ;;  %v1015_v16 = vld [vmem:[#allocation2 + $0x2] sm:$0xff] }
 0x1ce   : > { %1295 = vst [vmem:[#allocation3 + $0x370] sm:$0xf] %v1263_v58  ;;  %v1047_v7 = vpack.c.bf16 %v1015_v16, %v1015_v16 }
 0x1cf   : > { %1296 = vst [vmem:[#allocation3 + $0x394] sm:$0xf] %v1264_v59  ;;  %v3289_v32 = vpop.f32.mrf.mxu2  ;;  %3331 = vmatmul.bf16.gmra.mxu2 %v5229_v25  ;;  %v1406_v25 = vld [vmem:[#allocation2 + $0x78] sm:$0xff] }
 0x1d0   : > { %3242 = vmatmul.bf16.gmra.mxu3 %v5225_v8  ;;  %1582 = vst [vmem:[#allocation3 + $0x334] sm:$0xf] %v1263_v58  ;;  %v3203_v37 = vpop.f32.mrf.mxu1  ;;  %v6813_v45 = vadd.f32 %v3289_v32, %v3201_v24  ;;  %v1142_v58 = vld [vmem:[#allocation2 + $0x188] sm:$0xff]  ;;  %v1600_v8 = vld [vmem:[#allocation2 + $0x92] sm:$0xff] }
 0x1d1   : > { %1583 = vst [vmem:[#allocation3 + $0x358] sm:$0xf] %v1264_v59  ;;  %v6815_v42 = vpop.f32.mrf.mxu0  ;;  %v1403_v59 = vld [vmem:[#allocation2 + $0x50] sm:$0xff]  ;;  %v1174_v2 = vpack.c.bf16 %v1142_v58, %v1142_v58  ;;  %v1632_v1 = vpack.c.bf16 %v1600_v8, %v1600_v8  ;;  %v3204_v22 = vadd.f32 %v6664_v19, %v3203_v37  ;;  %v5879_v32 = vld [vmem:[#allocation10 + $0x1d8] sm:$0xff] }
 0x1d2   : > { %1662 = vst [vmem:[#allocation3 + $0xf8] sm:$0xf] %v1630_v47  ;;  %v1633_v47 = vpack.c.bf16 %v1601_v9, %v1601_v9  ;;  %v1435_v52 = vpack.c.bf16 %v1403_v59, %v1403_v59  ;;  %v1233_v24 = vld [vmem:[#allocation2 + $0x151] sm:$0xff]  ;;  %v5891_v37 = vld [vmem:[#allocation10 + $0x238] sm:$0xff]  ;;  %3791 = vmatpush.bf16.msra.mxu0 %v5879_v32 }
 0x1d3   : > { %1663 = vst [vmem:[#allocation3 + $0x11c] sm:$0xf] %v1631_v56  ;;  %3548 = vmatmul.bf16.gmra.mxu1 %v4881_v51  ;;  %v5260_v56 = vld [vmem:[#allocation3 + $0x438] sm:$0xf]  ;;  %v5262_v8 = vld [vmem:[#allocation3 + $0x45c] sm:$0xf0] }
 0x1d4   : > { %3504 = vmatmul.bf16.gmra.mxu0 %v5201_v43  ;;  %1668 = vst [vmem:[#allocation3 + $0x1d0] sm:$0xf] %v6699_v26  ;;  %v1173_v26 = vpack.c.bf16 %v1141_v27, %v1141_v27  ;;  %v5261_v16 = vor.u32 %v5815_v23, %v5260_v56  ;;  %v1405_v51 = vld [vmem:[#allocation2 + $0x68] sm:$0xff]  ;;  %3876 = vmatpush.bf16.msra.mxu1 %v5891_v37  ;;  %v5877_v23 = vld [vmem:[#allocation10 + $0x1c8] sm:$0xff] }
 0x1d5   : > { %7475 = vst [vmem:[#allocation21_spill] sm:$0xff] %v6815_v42  ;;  %v1436_v27 = vpack.c.bf16 %v1404_v40, %v1404_v40  ;;  %v1437_v59 = vpack.c.bf16 %v1405_v51, %v1405_v51  ;;  %v5735_v42 = vld [vmem:[#allocation3 + $0x1d8] sm:$0xf0] }
 0x1d6   : > { %1669 = vst [vmem:[#allocation3 + $0x1f4] sm:$0xf] %v6702_v49  ;;  %v5875_v49 = vld [vmem:[#allocation10 + $0x1b8] sm:$0xff] }
 0x1d7   : > { %1466 = vst [vmem:[#allocation3 + $0x60] sm:$0xf] %v1434_v33  ;;  %3698 = vmatpush.bf16.msra.mxu3 %v5875_v49  ;;  %v3292_v21 = vpop.f32.mrf.mxu2  ;;  %v1265_v33 = vpack.c.bf16 %v1233_v24, %v1233_v24  ;;  %v1438_v49 = vpack.c.bf16 %v1406_v25, %v1406_v25 }
 0x1d8   : > { %1079 = vst [vmem:[#allocation3 + $0x8] sm:$0xf] %v1047_v7  ;;  %v3205_v43 = vpop.f32.mrf.mxu1  ;;  %v6819_v14 = vadd.f32 %v3292_v21, %v3204_v22  ;;  %v5234_v7 = vld [vmem:[#allocation3 + $0x41c] sm:$0xf0]  ;;  %v1407_v22 = vld [vmem:[#allocation2 + $0x80] sm:$0xff]  ;;  %v1634_v21 = vpack.c.bf16 %v1602_v31, %v1602_v31 }
 0x1d9   : > { %1080 = vst [vmem:[#allocation3 + $0x2c] sm:$0xf] %v1048_v62  ;;  %v6821_v57 = vpop.f32.mrf.mxu0  ;;  %v5878_v62 = vld [vmem:[#allocation10 + $0x1d0] sm:$0xff]  ;;  %v3206_v58 = vadd.f32 %v6664_v19, %v3205_v43 }
 0x1da   : > { %1205 = vst [vmem:[#allocation3 + $0x444] sm:$0xf] %v1173_v26  ;;  %v5237_v26 = vor.u32 %v5803_v4, %v5234_v7  ;;  %3792 = vmatpush.bf16.msra.mxu0 %v5878_v62  ;;  %v1408_v4 = vld [vmem:[#allocation2 + $0x90] sm:$0xff] }
 0x1db   : > { %1206 = vst [vmem:[#allocation3 + $0x468] sm:$0xf] %v1174_v2  ;;  %v5811_v2 = vld [vmem:[#allocation3 + $0x43c] sm:$0xf] }
 0x1dc   : > { %1664 = vst [vmem:[#allocation3 + $0x140] sm:$0xf] %v1632_v1  ;;  %v5265_v24 = vor.u32 %v5811_v2, %v5262_v8 }
 0x1dd   : > { %1665 = vst [vmem:[#allocation3 + $0x164] sm:$0xf] %v1633_v47  ;;  %v4916_v47 = vld [vmem:[#allocation3 + $0x178] sm:$0xf] }
 0x1de   : > { %1467 = vst [vmem:[#allocation3 + $0x84] sm:$0xf] %v1435_v52  ;;  %v4917_v56 = vor.u32 %v5727_v63, %v4916_v47  ;;  %3793 = vmatpush.bf16.msra.mxu0 %v5877_v23  ;;  %v5678_v47 = vld [vmem:[#allocation3 + $0x14] sm:$0xf]  ;;  %v1410_v23 = vld [vmem:[#allocation2 + $0xa8] sm:$0xff] }
 0x1df   : > { %1297 = vst [vmem:[#allocation3 + $0x3b8] sm:$0xf] %v1265_v33  ;;  %v3294_v9 = vpop.f32.mrf.mxu2  ;;  %3336 = vmatmul.bf16.gmra.mxu2 %v5265_v24  ;;  %v4728_v37 = vld [vmem:[#allocation3 + $0x8] sm:$0xf] }
 0x1e0   : > { %7476 = vst [vmem:[#allocation22_spill] sm:$0xff] %v6821_v57  ;;  %3247 = vmatmul.bf16.gmra.mxu3 %v5261_v16  ;;  %v3208_v1 = vpop.f32.mrf.mxu1  ;;  %v6826_v52 = vadd.f32 %v3294_v9, %v3206_v58  ;;  %v5681_v40 = vld [vmem:[#allocation3 + $0x28] sm:$0xf0]  ;;  %v1236_v16 = vld [vmem:[#allocation2 + $0x171] sm:$0xff]  ;;  %v4944_v57 = vld [vmem:[#allocation3 + $0x1b8] sm:$0xf] }
 0x1e1   : > { %1298 = vst [vmem:[#allocation3 + $0x3dc] sm:$0xf] %v1266_v34  ;;  %v6831_v32 = vpop.f32.mrf.mxu0  ;;  %v4729_v62 = vor.u32 %v5681_v40, %v4728_v37  ;;  %v1409_v58 = vld [vmem:[#allocation2 + $0x98] sm:$0xff]  ;;  %v5812_v25 = vld [vmem:[#allocation3 + $0x444] sm:$0xf] }
 0x1e2   : > { %1584 = vst [vmem:[#allocation3 + $0x37c] sm:$0xf] %v1265_v33  ;;  %v1439_v33 = vpack.c.bf16 %v1407_v22, %v1407_v22  ;;  %v5270_v63 = vld [vmem:[#allocation3 + $0x464] sm:$0xf0]  ;;  %v1441_v2 = vpack.c.bf16 %v1409_v58, %v1409_v58  ;;  %v4738_v22 = vld [vmem:[#allocation3 + $0x34] sm:$0xf0] }
 0x1e3   : > { %1585 = vst [vmem:[#allocation3 + $0x3a0] sm:$0xf] %v1266_v34  ;;  %3553 = vmatmul.bf16.gmra.mxu1 %v4917_v56  ;;  %v3209_v34 = vadd.f32 %v6664_v19, %v3208_v1  ;;  %v5273_v8 = vor.u32 %v5812_v25, %v5270_v63  ;;  %v5736_v1 = vld [vmem:[#allocation3 + $0x1e0] sm:$0xf0]  ;;  %v5687_v25 = vld [vmem:[#allocation3 + $0x5c] sm:$0xf] }
 0x1e4   : > { %1670 = vst [vmem:[#allocation3 + $0x218] sm:$0xf] %v6716_v41  ;;  %3509 = vmatmul.bf16.gmra.mxu0 %v5237_v26  ;;  %v1603_v41 = vld [vmem:[#allocation2 + $0xb2] sm:$0xff]  ;;  %v1440_v26 = vpack.c.bf16 %v1408_v4, %v1408_v4 }
 0x1e5   : > { %1671 = vst [vmem:[#allocation3 + $0x23c] sm:$0xf] %v6731_v18  ;;  %v5876_v18 = vld [vmem:[#allocation10 + $0x1c0] sm:$0xff]  ;;  %v1635_v43 = vpack.c.bf16 %v1603_v41, %v1603_v41  ;;  %v4741_v41 = vor.u32 %v5678_v47, %v4738_v22 }
 0x1e6   : > { %1468 = vst [vmem:[#allocation3 + $0xa8] sm:$0xf] %v1436_v27  ;;  %3794 = vmatpush.bf16.msra.mxu0 %v5876_v18  ;;  %v1268_v27 = vpack.c.bf16 %v1236_v16, %v1236_v16  ;;  %v6847_v18 = vld [vmem:[%s7451_s4] ss:$0 sm:$0xff]  ;;  %v1411_v40 = vld [vmem:[#allocation2 + $0xb0] sm:$0xff] }
 0x1e7   : > { %1469 = vst [vmem:[#allocation3 + $0xcc] sm:$0xf] %v1437_v59  ;;  %v3297_v51 = vpop.f32.mrf.mxu2  ;;  %v5890_v16 = vld [vmem:[#allocation10 + $0x230] sm:$0xff]  ;;  %v1443_v4 = vpack.c.bf16 %v1411_v40, %v1411_v40 }
 0x1e8   : > { %1672 = vst [vmem:[#allocation3 + $0x260] sm:$0xf] %v6743_v39  ;;  %v1235_v39 = vld [vmem:[#allocation2 + $0x169] sm:$0xff]  ;;  %v3210_v7 = vpop.f32.mrf.mxu1  ;;  %v6834_v59 = vadd.f32 %v3297_v51, %v3209_v34  ;;  %3877 = vmatpush.bf16.msra.mxu1 %v5890_v16  ;;  %v5688_v16 = vld [vmem:[#allocation3 + $0x64] sm:$0xf] }
 0x1e9   : > { %1673 = vst [vmem:[#allocation3 + $0x284] sm:$0xf] %v6749_v38  ;;  %v1267_v38 = vpack.c.bf16 %v1235_v39, %v1235_v39  ;;  %v3211_v9 = vadd.f32 %v6664_v19, %v3210_v7  ;;  %v1442_v19 = vpack.c.bf16 %v1410_v23, %v1410_v23  ;;  %v4746_v7 = vld [vmem:[#allocation3 + $0x3c] sm:$0xf0]  ;;  %v4800_v23 = vld [vmem:[#allocation3 + $0x98] sm:$0xf] }
 0x1ea   : > { %1470 = vst [vmem:[#allocation3 + $0xf0] sm:$0xf] %v1438_v49 }
 0x1eb   : > { %7477 = vst [vmem:[#allocation23_spill] sm:$0xff] %v6831_v32 }
 0x1ec   : > { %1666 = vst [vmem:[#allocation3 + $0x188] sm:$0xf] %v1634_v21 }
 0x1ed   : > { %1667 = vst [vmem:[#allocation3 + $0x1ac] sm:$0xf] %v1635_v43  ;;  %v5874_v43 = vld [vmem:[#allocation10 + $0x1b0] sm:$0xff] }
 0x1ee   : > { %1471 = vst [vmem:[#allocation3 + $0x114] sm:$0xf] %v1439_v33  ;;  %v5690_v33 = vld [vmem:[#allocation3 + $0x70] sm:$0xf0]  ;;  %3699 = vmatpush.bf16.msra.mxu3 %v5874_v43 }
 0x1ef   : > { %1674 = vst [vmem:[#allocation3 + $0x2a8] sm:$0xf] %v6775_v29  ;;  %v6838_v29 = vpop.f32.mrf.mxu0  ;;  %v3299_v49 = vpop.f32.mrf.mxu2  ;;  %3617 = vmatmul.bf16.vlgmr.msra.gmra.mxu2 %v4741_v41 }
 0x1f0   : > { %1675 = vst [vmem:[#allocation3 + $0x2cc] sm:$0xf] %v6777_v35  ;;  %3350 = vmatmul.bf16.vlgmr.msrb.gmra.mxu3 %v4729_v62  ;;  %v3213_v56 = vpop.f32.mrf.mxu1  ;;  %v4952_v35 = vld [vmem:[#allocation3 + $0x1c0] sm:$0xf]  ;;  %v6841_v24 = vadd.f32 %v3299_v49, %v3211_v9  ;;  %v1412_v9 = vld [vmem:[#allocation2 + $0xc0] sm:$0xff] }
 0x1f1   : > { %1299 = vst [vmem:[#allocation3 + $0x400] sm:$0xf] %v1267_v38  ;;  %v4953_v31 = vor.u32 %v5736_v1, %v4952_v35  ;;  %v3214_v21 = vadd.f32 %v6847_v18, %v3213_v56  ;;  %v1444_v22 = vpack.c.bf16 %v1412_v9, %v1412_v9 }
 0x1f2   : > { %1300 = vst [vmem:[#allocation3 + $0x424] sm:$0xf] %v1268_v27 }
 0x1f3   : > { %1586 = vst [vmem:[#allocation3 + $0x3c4] sm:$0xf] %v1267_v38  ;;  %3558 = vmatmul.bf16.gmra.mxu1 %v4953_v31  ;;  %v5679_v38 = vld [vmem:[#allocation3 + $0x1c] sm:$0xf] }
 0x1f4   : > { %1587 = vst [vmem:[#allocation3 + $0x3e8] sm:$0xf] %v1268_v27  ;;  %3514 = vmatmul.bf16.gmra.mxu0 %v5273_v8  ;;  %v5745_v27 = vld [vmem:[#allocation3 + $0x228] sm:$0xf0]  ;;  %v4749_v58 = vor.u32 %v5679_v38, %v4746_v7  ;;  %v4774_v8 = vld [vmem:[#allocation3 + $0x7c] sm:$0xf0] }
 0x1f5   : > { %1472 = vst [vmem:[#allocation3 + $0x138] sm:$0xf] %v1440_v26  ;;  %v4777_v56 = vor.u32 %v5687_v25, %v4774_v8  ;;  %v5699_v31 = vld [vmem:[#allocation3 + $0xb8] sm:$0xf0]  ;;  %v5696_v7 = vld [vmem:[#allocation3 + $0xa4] sm:$0xf] }
 0x1f6   : > { %7478 = vst [vmem:[#allocation24_spill] sm:$0xff] %v6838_v29  ;;  %v4810_v25 = vld [vmem:[#allocation3 + $0xc4] sm:$0xf0] }
 0x1f7   : > { %1473 = vst [vmem:[#allocation3 + $0x15c] sm:$0xf] %v1441_v2  ;;  %v3302_v34 = vpop.f32.mrf.mxu2  ;;  %v4988_v2 = vld [vmem:[#allocation3 + $0x208] sm:$0xf]  ;;  %v4813_v9 = vor.u32 %v5696_v7, %v4810_v25  ;;  %v5763_v7 = vld [vmem:[#allocation3 + $0x2b8] sm:$0xf0] }
 0x1f8   : > { %1676 = vst [vmem:[#allocation3 + $0x2f0] sm:$0xf] %v6790_v12  ;;  %v4764_v12 = vld [vmem:[#allocation3 + $0x50] sm:$0xf]  ;;  %v3215_v37 = vpop.f32.mrf.mxu1  ;;  %v6852_v39 = vadd.f32 %v3302_v34, %v3214_v21  ;;  %v4989_v47 = vor.u32 %v5745_v27, %v4988_v2  ;;  %v1413_v21 = vld [vmem:[#allocation2 + $0xc8] sm:$0xff] }
 0x1f9   : > { %1677 = vst [vmem:[#allocation3 + $0x314] sm:$0xf] %v6795_v3  ;;  %v6850_v3 = vpop.f32.mrf.mxu0  ;;  %v4765_v51 = vor.u32 %v5690_v33, %v4764_v12  ;;  %v3216_v62 = vadd.f32 %v6847_v18, %v3215_v37  ;;  %v1445_v12 = vpack.c.bf16 %v1413_v21, %v1413_v21  ;;  %v4801_v33 = vor.u32 %v5699_v31, %v4800_v23  ;;  %v4782_v34 = vld [vmem:[#allocation3 + $0x84] sm:$0xf0]  ;;  %v4836_v23 = vld [vmem:[#allocation3 + $0xe0] sm:$0xf] }
 0x1fa   : > { %1474 = vst [vmem:[#allocation3 + $0x180] sm:$0xf] %v1442_v19  ;;  %v5708_v31 = vld [vmem:[#allocation3 + $0x100] sm:$0xf0]  ;;  %v1415_v21 = vld [vmem:[#allocation2 + $0xe0] sm:$0xff] }
 0x1fb   : > { %7479 = vst [vmem:[#allocation25_spill] sm:$0xff] %v6850_v3 }
 0x1fc   : > { %1475 = vst [vmem:[#allocation3 + $0x1a4] sm:$0xf] %v1443_v4  ;;  %v5754_v4 = vld [vmem:[#allocation3 + $0x270] sm:$0xf0] }
 0x1fd   : > { %1476 = vst [vmem:[#allocation3 + $0x1c8] sm:$0xf] %v1444_v22  ;;  %v5873_v22 = vld [vmem:[#allocation10 + $0x1a8] sm:$0xff] }
 0x1fe   : > { %1477 = vst [vmem:[#allocation3 + $0x1ec] sm:$0xf] %v1445_v12  ;;  %3700 = vmatpush.bf16.msra.mxu3 %v5873_v22 }
 0x1ff   : > { %v3304_v63 = vpop.f32.mrf.mxu2  ;;  %3622 = vmatmul.bf16.gmra.mxu2 %v4777_v56 }
 0x200   : > { %3355 = vmatmul.bf16.gmra.mxu3 %v4765_v51  ;;  %v3218_v26 = vpop.f32.mrf.mxu1  ;;  %v6855_v1 = vadd.f32 %v3304_v63, %v3216_v62  ;;  %v4785_v51 = vor.u32 %v5688_v16, %v4782_v34  ;;  %v1414_v63 = vld [vmem:[#allocation2 + $0xd8] sm:$0xff]  ;;  %v1447_v34 = vpack.c.bf16 %v1415_v21, %v1415_v21  ;;  %v4818_v16 = vld [vmem:[#allocation3 + $0xcc] sm:$0xf0] }
 0x201   : > { %v6857_v49 = vpop.f32.mrf.mxu0  ;;  %v3219_v35 = vadd.f32 %v6847_v18, %v3218_v26  ;;  %v1446_v8 = vpack.c.bf16 %v1414_v63, %v1414_v63 }
 0x202   : > { %7480 = vst [vmem:[#allocation26_spill] sm:$0xff] %v6857_v49  ;;  %v4908_v49 = vld [vmem:[#allocation3 + $0x170] sm:$0xf] }
 0x203   : > { %3563 = vmatmul.bf16.gmra.mxu1 %v4989_v47  ;;  %1478 = vst [vmem:[#allocation3 + $0x210] sm:$0xf] %v1446_v8  ;;  %v4846_v8 = vld [vmem:[#allocation3 + $0x10c] sm:$0xf0] }
 0x204   : > { %3795 = vmatmul.bf16.vlgmr.msra.gmra.mxu0 %v4749_v58  ;;  %v5024_v58 = vld [vmem:[#allocation3 + $0x250] sm:$0xf]  ;;  %1479 = vst [vmem:[#allocation3 + $0x234] sm:$0xf] %v1447_v34  ;;  %v5717_v34 = vld [vmem:[#allocation3 + $0x148] sm:$0xf0] }
 0x205   : > { %v5025_v2 = vor.u32 %v5754_v4, %v5024_v58 }
 0x207   : > { %v3307_v19 = vpop.f32.mrf.mxu2 }
 0x208   : > { %v3220_v41 = vpop.f32.mrf.mxu1  ;;  %v6860_v43 = vadd.f32 %v3307_v19, %v3219_v35 }
 0x209   : > { %v6862_v37 = vpop.f32.mrf.mxu0  ;;  %v3221_v40 = vadd.f32 %v6847_v18, %v3220_v41 }
 0x20a   : > { %7481 = vst [vmem:[#allocation27_spill] sm:$0xff] %v6862_v37 }
 0x20f   : > { %v3309_v38 = vpop.f32.mrf.mxu2  ;;  %3627 = vmatmul.bf16.gmra.mxu2 %v4813_v9  ;;  %v1416_v9 = vld [vmem:[#allocation2 + $0xf0] sm:$0xff] }
 0x210   : > { %3360 = vmatmul.bf16.gmra.mxu3 %v4801_v33  ;;  %v6865_v27 = vpop.f32.mrf.mxu1  ;;  %v6867_v26 = vadd.f32 %v3309_v38, %v3221_v40  ;;  %v5889_v33 = vld [vmem:[#allocation10 + $0x228] sm:$0xff]  ;;  %v4837_v40 = vor.u32 %v5708_v31, %v4836_v23  ;;  %v1448_v31 = vpack.c.bf16 %v1416_v9, %v1416_v9 }
 0x211   : > { %v6870_v56 = vpop.f32.mrf.mxu0  ;;  %3878 = vmatpush.bf16.msra.mxu1 %v5889_v33  ;;  %v5705_v38 = vld [vmem:[#allocation3 + $0xec] sm:$0xf]  ;;  %v4872_v33 = vld [vmem:[#allocation3 + $0x128] sm:$0xf] }
 0x212   : > { %7482 = vst [vmem:[#allocation28_spill] sm:$0xff] %v6870_v56 }
 0x213   : > { %v3223_v62 = vpop.f32.mrf.mxu3  ;;  %3568 = vmatmul.bf16.gmra.mxu1 %v5025_v2  ;;  %v5060_v2 = vld [vmem:[#allocation3 + $0x298] sm:$0xf]  ;;  %1480 = vst [vmem:[#allocation3 + $0x258] sm:$0xf] %v1448_v31 }
 0x214   : > { %3800 = vmatmul.bf16.gmra.mxu0 %v4785_v51  ;;  %v3224_v47 = vadd.f32 %v6847_v18, %v3223_v62  ;;  %v5697_v51 = vld [vmem:[#allocation3 + $0xac] sm:$0xf]  ;;  %v5061_v23 = vor.u32 %v5763_v7, %v5060_v2  ;;  %v4854_v7 = vld [vmem:[#allocation3 + $0x114] sm:$0xf0]  ;;  %v5706_v2 = vld [vmem:[#allocation3 + $0xf4] sm:$0xf] }
 0x215   : > { %v4821_v62 = vor.u32 %v5697_v51, %v4818_v16  ;;  %v1417_v51 = vld [vmem:[#allocation2 + $0xf8] sm:$0xff]  ;;  %v4857_v9 = vor.u32 %v5706_v2, %v4854_v7  ;;  %v5872_v2 = vld [vmem:[#allocation10 + $0x1a0] sm:$0xff] }
 0x216   : > { %3701 = vmatpush.bf16.msra.mxu3 %v5872_v2 }
 0x217   : > { %v3312_v19 = vpop.f32.mrf.mxu2 }
 0x218   : > { %v6872_v41 = vpop.f32.mrf.mxu1  ;;  %v6874_v12 = vadd.f32 %v3312_v19, %v3224_v47 }
 0x219   : > { %v6879_v47 = vpop.f32.mrf.mxu0 }
 0x21a   : > { %7483 = vst [vmem:[#allocation29_spill] sm:$0xff] %v6879_v47  ;;  %v1449_v47 = vpack.c.bf16 %v1417_v51, %v1417_v51 }
 0x21b   : > { %v3225_v35 = vpop.f32.mrf.mxu3 }
 0x21c   : > { %v3226_v4 = vadd.f32 %v6847_v18, %v3225_v35  ;;  %v4849_v35 = vor.u32 %v5705_v38, %v4846_v8  ;;  %1481 = vst [vmem:[#allocation3 + $0x27c] sm:$0xf] %v1449_v47  ;;  %v5772_v8 = vld [vmem:[#allocation3 + $0x300] sm:$0xf0] }
 0x21f   : > { %v3314_v25 = vpop.f32.mrf.mxu2  ;;  %3632 = vmatmul.bf16.gmra.mxu2 %v4849_v35 }
 0x220   : > { %3365 = vmatmul.bf16.gmra.mxu3 %v4837_v40  ;;  %v6877_v63 = vpop.f32.mrf.mxu1  ;;  %v6881_v22 = vadd.f32 %v3314_v25, %v3226_v4  ;;  %v4873_v4 = vor.u32 %v5717_v34, %v4872_v33  ;;  %v1419_v33 = vld [vmem:[#allocation2 + $0x110] sm:$0xff] }
 0x221   : > { %v6888_v25 = vpop.f32.mrf.mxu0 }
 0x222   : > { %7484 = vst [vmem:[#allocation30_spill] sm:$0xff] %v6888_v25 }
 0x223   : > { %v3228_v58 = vpop.f32.mrf.mxu3  ;;  %3573 = vmatmul.bf16.gmra.mxu1 %v5061_v23  ;;  %v5714_v23 = vld [vmem:[#allocation3 + $0x134] sm:$0xf] }
 0x224   : > { %3805 = vmatmul.bf16.gmra.mxu0 %v4821_v62  ;;  %v3229_v19 = vadd.f32 %v6847_v18, %v3228_v58  ;;  %v5096_v58 = vld [vmem:[#allocation3 + $0x2e0] sm:$0xf] }
 0x225   : > { %v5097_v51 = vor.u32 %v5772_v8, %v5096_v58  ;;  %v5888_v8 = vld [vmem:[#allocation10 + $0x220] sm:$0xff] }
 0x226   : > { %3879 = vmatpush.bf16.msra.mxu1 %v5888_v8  ;;  %v1420_v8 = vld [vmem:[#allocation2 + $0x120] sm:$0xff] }
 0x227   : > { %v3317_v40 = vpop.f32.mrf.mxu2  ;;  %v1452_v29 = vpack.c.bf16 %v1420_v8, %v1420_v8  ;;  %v5168_v8 = vld [vmem:[#allocation3 + $0x370] sm:$0xf] }
 0x228   : > { %v6884_v16 = vpop.f32.mrf.mxu1  ;;  %v6886_v62 = vadd.f32 %v3317_v40, %v3229_v19  ;;  %v4882_v19 = vld [vmem:[#allocation3 + $0x154] sm:$0xf0] }
 0x229   : > { %v1418_v40 = vld [vmem:[#allocation2 + $0x108] sm:$0xff]  ;;  %v6895_v25 = vpop.f32.mrf.mxu0  ;;  %1484 = vst [vmem:[#allocation3 + $0x2e8] sm:$0xf] %v1452_v29  ;;  %v4926_v29 = vld [vmem:[#allocation3 + $0x1a4] sm:$0xf0] }
 0x22a   : > { %v1450_v47 = vpack.c.bf16 %v1418_v40, %v1418_v40  ;;  %7485 = vst [vmem:[#allocation31_spill] sm:$0xff] %v6895_v25 }
 0x22b   : > { %v3230_v21 = vpop.f32.mrf.mxu3 }
 0x22c   : > { %v3231_v38 = vadd.f32 %v6847_v18, %v3230_v21  ;;  %v4885_v21 = vor.u32 %v5714_v23, %v4882_v19  ;;  %1482 = vst [vmem:[#allocation3 + $0x2a0] sm:$0xf] %v1450_v47  ;;  %v1328_v23 = vld [vmem:[#allocation2 + $0x142] sm:$0xff]  ;;  %v5715_v47 = vld [vmem:[#allocation3 + $0x13c] sm:$0xf] }
 0x22f   : > { %v3319_v35 = vpop.f32.mrf.mxu2  ;;  %3637 = vmatmul.bf16.gmra.mxu2 %v4885_v21  ;;  %v5781_v21 = vld [vmem:[#allocation3 + $0x348] sm:$0xf0] }
 0x230   : > { %3370 = vmatmul.bf16.gmra.mxu3 %v4873_v4  ;;  %v6891_v56 = vpop.f32.mrf.mxu1  ;;  %v6893_v34 = vadd.f32 %v3319_v35, %v3231_v38  ;;  %v1451_v4 = vpack.c.bf16 %v1419_v33, %v1419_v33  ;;  %v1327_v35 = vld [vmem:[#allocation2 + $0x13a] sm:$0xff]  ;;  %v1360_v33 = vpack.c.bf16 %v1328_v23, %v1328_v23  ;;  %v1421_v23 = vld [vmem:[#allocation2 + $0x128] sm:$0xff] }
 0x231   : > { %v1359_v40 = vpack.c.bf16 %v1327_v35, %v1327_v35  ;;  %v4918_v35 = vld [vmem:[#allocation3 + $0x19c] sm:$0xf0] }
 0x232   : > { %1483 = vst [vmem:[#allocation3 + $0x2c4] sm:$0xf] %v1451_v4  ;;  %v5132_v4 = vld [vmem:[#allocation3 + $0x328] sm:$0xf] }
 0x233   : > { %v3233_v31 = vpop.f32.mrf.mxu3  ;;  %3578 = vmatmul.bf16.gmra.mxu1 %v5097_v51  ;;  %v4890_v51 = vld [vmem:[#allocation3 + $0x15c] sm:$0xf0]  ;;  %1391 = vst [vmem:[#allocation3 + $0x374] sm:$0xf] %v1359_v40 }
 0x234   : > { %3810 = vmatmul.bf16.gmra.mxu0 %v4857_v9  ;;  %v3234_v7 = vadd.f32 %v6847_v18, %v3233_v31  ;;  %v5726_v9 = vld [vmem:[#allocation3 + $0x190] sm:$0xf0]  ;;  %1392 = vst [vmem:[#allocation3 + $0x398] sm:$0xf] %v1360_v33  ;;  %v4893_v2 = vor.u32 %v5715_v47, %v4890_v51  ;;  %v1453_v51 = vpack.c.bf16 %v1421_v23, %v1421_v23 }
 0x235   : > { %v4909_v19 = vor.u32 %v5726_v9, %v4908_v49  ;;  %1105 = vst [vmem:[#allocation3 + $0x3b0] sm:$0xf] %v1359_v40  ;;  %v5790_v23 = vld [vmem:[#allocation3 + $0x390] sm:$0xf0] }
 0x236   : > { %1106 = vst [vmem:[#allocation3 + $0x3d4] sm:$0xf] %v1360_v33 }
 0x237   : > { %v3322_v3 = vpop.f32.mrf.mxu2  ;;  %1678 = vst [vmem:[#allocation3 + $0x338] sm:$0xf] %v1359_v40 }
 0x238   : > { %v6898_v38 = vpop.f32.mrf.mxu1  ;;  %v6900_v58 = vadd.f32 %v3322_v3, %v3234_v7  ;;  %v6903_v3 = vpop.f32.mrf.mxu0  ;;  %v5723_v7 = vld [vmem:[#allocation3 + $0x17c] sm:$0xf]  ;;  %1679 = vst [vmem:[#allocation3 + $0x35c] sm:$0xf] %v1360_v33  ;;  %v1329_v33 = vld [vmem:[#allocation2 + $0x152] sm:$0xff] }
 0x239   : > { %7486 = vst [vmem:[#allocation32_spill] sm:$0xff] %v6903_v3  ;;  %v4921_v47 = vor.u32 %v5723_v7, %v4918_v35  ;;  %v5724_v35 = vld [vmem:[#allocation3 + $0x184] sm:$0xf] }
 0x23a   : > { %1485 = vst [vmem:[#allocation3 + $0x30c] sm:$0xf] %v1453_v51  ;;  %v5732_v51 = vld [vmem:[#allocation3 + $0x1c4] sm:$0xf] }
 0x23b   : > { %v3235_v37 = vpop.f32.mrf.mxu3 }
 0x23c   : > { %v3236_v31 = vadd.f32 %v6847_v18, %v3235_v37 }
 0x23f   : > { %v3324_v49 = vpop.f32.mrf.mxu2  ;;  %3642 = vmatmul.bf16.gmra.mxu2 %v4921_v47 }
 0x240   : > { %3375 = vmatmul.bf16.gmra.mxu3 %v4909_v19  ;;  %v6905_v9 = vpop.f32.mrf.mxu1  ;;  %v6907_v37 = vadd.f32 %v3324_v49, %v3236_v31  ;;  %v5133_v19 = vor.u32 %v5781_v21, %v5132_v4  ;;  %v6912_v5 = vpop.f32.mrf.mxu0  ;;  %v1330_v4 = vld [vmem:[#allocation2 + $0x15a] sm:$0xff]  ;;  %v4945_v21 = vor.u32 %v5735_v42, %v4944_v57  ;;  %v1361_v49 = vpack.c.bf16 %v1329_v33, %v1329_v33 }
 0x241   : > { %7487 = vst [vmem:[#allocation33_spill] sm:$0xff] %v6912_v5  ;;  %v1362_v7 = vpack.c.bf16 %v1330_v4, %v1330_v4  ;;  %v4954_v42 = vld [vmem:[#allocation3 + $0x1e4] sm:$0xf0]  ;;  %v1423_v33 = vld [vmem:[#allocation2 + $0x140] sm:$0xff] }
 0x242   : > { %1393 = vst [vmem:[#allocation3 + $0x3bc] sm:$0xf] %v1361_v49  ;;  %v1422_v57 = vld [vmem:[#allocation2 + $0x138] sm:$0xff]  ;;  %v1455_v5 = vpack.c.bf16 %v1423_v33, %v1423_v33 }
 0x243   : > { %v3238_v25 = vpop.f32.mrf.mxu3  ;;  %3583 = vmatmul.bf16.gmra.mxu1 %v5133_v19  ;;  %1394 = vst [vmem:[#allocation3 + $0x3e0] sm:$0xf] %v1362_v7  ;;  %v4929_v19 = vor.u32 %v5724_v35, %v4926_v29  ;;  %v4957_v29 = vor.u32 %v5732_v51, %v4954_v42 }
 0x244   : > { %3815 = vmatmul.bf16.gmra.mxu0 %v4893_v2  ;;  %v3239_v3 = vadd.f32 %v6847_v18, %v3238_v25  ;;  %1107 = vst [vmem:[#allocation3 + $0x3f8] sm:$0xf] %v1361_v49 }
 0x245   : > { %1108 = vst [vmem:[#allocation3 + $0x41c] sm:$0xf] %v1362_v7 }
 0x246   : > { %1680 = vst [vmem:[#allocation3 + $0x380] sm:$0xf] %v1361_v49  ;;  %v4980_v49 = vld [vmem:[#allocation3 + $0x200] sm:$0xf] }
 0x247   : > { %v3327_v2 = vpop.f32.mrf.mxu2  ;;  %1681 = vst [vmem:[#allocation3 + $0x3a4] sm:$0xf] %v1362_v7 }
 0x248   : > { %v6910_v40 = vpop.f32.mrf.mxu1  ;;  %v6914_v31 = vadd.f32 %v3327_v2, %v3239_v3  ;;  %v6921_v13 = vpop.f32.mrf.mxu0  ;;  %1487 = vst [vmem:[#allocation3 + $0x354] sm:$0xf] %v1455_v5 }
 0x249   : > { %7491 = vst [vmem:[#allocation37_spill] sm:$0xff] %v6921_v13 }
 0x24a   : > { %7488 = vst [vmem:[#allocation34_spill] sm:$0xff] %v6914_v31  ;;  %v5744_v31 = vld [vmem:[#allocation3 + $0x220] sm:$0xf0] }
 0x24b   : > { %v3240_v32 = vpop.f32.mrf.mxu3  ;;  %v4981_v33 = vor.u32 %v5744_v31, %v4980_v49  ;;  %v5741_v49 = vld [vmem:[#allocation3 + $0x20c] sm:$0xf] }
 0x24c   : > { %v3241_v25 = vadd.f32 %v6847_v18, %v3240_v32  ;;  %v5169_v32 = vor.u32 %v5790_v23, %v5168_v8  ;;  %v5887_v8 = vld [vmem:[#allocation10 + $0x218] sm:$0xff] }
 0x24d   : > { %v1331_v23 = vld [vmem:[#allocation2 + $0x16a] sm:$0xff]  ;;  %3880 = vmatpush.bf16.msra.mxu1 %v5887_v8 }
 0x24e   : > { %v1363_v51 = vpack.c.bf16 %v1331_v23, %v1331_v23  ;;  %v4990_v23 = vld [vmem:[#allocation3 + $0x22c] sm:$0xf0] }
 0x24f   : > { %v3329_v3 = vpop.f32.mrf.mxu2  ;;  %3647 = vmatmul.bf16.gmra.mxu2 %v4957_v29  ;;  %v5799_v29 = vld [vmem:[#allocation3 + $0x3d8] sm:$0xf0] }
 0x250   : > { %3380 = vmatmul.bf16.gmra.mxu3 %v4945_v21  ;;  %v6917_v2 = vpop.f32.mrf.mxu1  ;;  %v6919_v4 = vadd.f32 %v3329_v3, %v3241_v25  ;;  %v1454_v21 = vpack.c.bf16 %v1422_v57, %v1422_v57  ;;  %v1332_v57 = vld [vmem:[#allocation2 + $0x172] sm:$0xff]  ;;  %1395 = vst [vmem:[#allocation3 + $0x404] sm:$0xf] %v1363_v51  ;;  %v6928_v5 = vpop.f32.mrf.mxu0 }
 0x251   : > { %7489 = vst [vmem:[#allocation35_spill] sm:$0xff] %v6917_v2  ;;  %v5871_v2 = vld [vmem:[#allocation10 + $0x198] sm:$0xff]  ;;  %v1364_v42 = vpack.c.bf16 %v1332_v57, %v1332_v57 }
 0x252   : > { %7490 = vst [vmem:[#allocation36_spill] sm:$0xff] %v6919_v4  ;;  %3702 = vmatpush.bf16.msra.mxu3 %v5871_v2  ;;  %v5733_v2 = vld [vmem:[#allocation3 + $0x1cc] sm:$0xf] }
 0x253   : > { %v3243_v47 = vpop.f32.mrf.mxu3  ;;  %3588 = vmatmul.bf16.gmra.mxu1 %v5169_v32  ;;  %1486 = vst [vmem:[#allocation3 + $0x330] sm:$0xf] %v1454_v21  ;;  %v4962_v32 = vld [vmem:[#allocation3 + $0x1ec] sm:$0xf0]  ;;  %v5204_v21 = vld [vmem:[#allocation3 + $0x3b8] sm:$0xf] }
 0x254   : > { %3820 = vmatmul.bf16.gmra.mxu0 %v4929_v19  ;;  %v3244_v35 = vadd.f32 %v6847_v18, %v3243_v47  ;;  %7494 = vst [vmem:[#allocation40_spill] sm:$0xff] %v6928_v5  ;;  %v5205_v57 = vor.u32 %v5799_v29, %v5204_v21  ;;  %v1424_v5 = vld [vmem:[#allocation2 + $0x150] sm:$0xff]  ;;  %v5753_v21 = vld [vmem:[#allocation3 + $0x268] sm:$0xf0] }
 0x255   : > { %1396 = vst [vmem:[#allocation3 + $0x428] sm:$0xf] %v1364_v42  ;;  %v1456_v4 = vpack.c.bf16 %v1424_v5, %v1424_v5 }
 0x256   : > { %1109 = vst [vmem:[#allocation3 + $0x440] sm:$0xf] %v1363_v51 }
 0x257   : > { %v3332_v25 = vpop.f32.mrf.mxu2  ;;  %1110 = vst [vmem:[#allocation3 + $0x464] sm:$0xf] %v1364_v42 }
 0x258   : > { %v6924_v3 = vpop.f32.mrf.mxu1  ;;  %v6926_v7 = vadd.f32 %v3332_v25, %v3244_v35  ;;  %v4965_v35 = vor.u32 %v5733_v2, %v4962_v32  ;;  %1682 = vst [vmem:[#allocation3 + $0x3c8] sm:$0xf] %v1363_v51  ;;  %v1425_v32 = vld [vmem:[#allocation2 + $0x158] sm:$0xff]  ;;  %v4993_v2 = vor.u32 %v5741_v49, %v4990_v23  ;;  %v5886_v49 = vld [vmem:[#allocation10 + $0x210] sm:$0xff]  ;;  %v4998_v23 = vld [vmem:[#allocation3 + $0x234] sm:$0xf0] }
 0x259   : > { %7492 = vst [vmem:[#allocation38_spill] sm:$0xff] %v6924_v3  ;;  %3881 = vmatpush.bf16.msra.mxu1 %v5886_v49 }
 0x25a   : > { %7493 = vst [vmem:[#allocation39_spill] sm:$0xff] %v6926_v7 }
 0x25b   : > { %v3245_v19 = vpop.f32.mrf.mxu3  ;;  %1683 = vst [vmem:[#allocation3 + $0x3ec] sm:$0xf] %v1364_v42 }
 0x25c   : > { %v3246_v47 = vadd.f32 %v6847_v18, %v3245_v19  ;;  %v1238_v19 = vld [vmem:[#allocation2 + $0x189] sm:$0xff]  ;;  %1488 = vst [vmem:[#allocation3 + $0x378] sm:$0xf] %v1456_v4 }
 0x25d   : > { %v1270_v7 = vpack.c.bf16 %v1238_v19, %v1238_v19  ;;  %v5240_v19 = vld [vmem:[#allocation3 + $0x400] sm:$0xf] }
 0x25f   : > { %v3334_v13 = vpop.f32.mrf.mxu2  ;;  %3652 = vmatmul.bf16.gmra.mxu2 %v4993_v2  ;;  %1302 = vst [vmem:[#allocation3 + $0x46c] sm:$0xf] %v1270_v7 }
 0x260   : > { %3385 = vmatmul.bf16.gmra.mxu3 %v4981_v33  ;;  %v6931_v31 = vpop.f32.mrf.mxu1  ;;  %v6933_v8 = vadd.f32 %v3334_v13, %v3246_v47  ;;  %v1237_v33 = vld [vmem:[#allocation2 + $0x181] sm:$0xff]  ;;  %v6936_v13 = vpop.f32.mrf.mxu0  ;;  %v5016_v47 = vld [vmem:[#allocation3 + $0x248] sm:$0xf]  ;;  %1589 = vst [vmem:[#allocation3 + $0x430] sm:$0xf] %v1270_v7 }
 0x261   : > { %7495 = vst [vmem:[#allocation41_spill] sm:$0xff] %v6931_v31  ;;  %v1269_v3 = vpack.c.bf16 %v1237_v33, %v1237_v33  ;;  %v5017_v5 = vor.u32 %v5753_v21, %v5016_v47  ;;  %v5742_v33 = vld [vmem:[#allocation3 + $0x214] sm:$0xf]  ;;  %v1426_v47 = vld [vmem:[#allocation2 + $0x168] sm:$0xff]  ;;  %v1427_v21 = vld [vmem:[#allocation2 + $0x170] sm:$0xff] }
 0x262   : > { %7496 = vst [vmem:[#allocation42_spill] sm:$0xff] %v6936_v13  ;;  %v5001_v2 = vor.u32 %v5742_v33, %v4998_v23  ;;  %v5750_v7 = vld [vmem:[#allocation3 + $0x254] sm:$0xf] }
 0x263   : > { %v3248_v25 = vpop.f32.mrf.mxu3  ;;  %3593 = vmatmul.bf16.gmra.mxu1 %v5205_v57  ;;  %1301 = vst [vmem:[#allocation3 + $0x448] sm:$0xf] %v1269_v3 }
 0x264   : > { %3825 = vmatmul.bf16.gmra.mxu0 %v4965_v35  ;;  %v3249_v31 = vadd.f32 %v6847_v18, %v3248_v25  ;;  %v1457_v35 = vpack.c.bf16 %v1425_v32, %v1425_v32  ;;  %1588 = vst [vmem:[#allocation3 + $0x40c] sm:$0xf] %v1269_v3  ;;  %v5885_v25 = vld [vmem:[#allocation10 + $0x208] sm:$0xff]  ;;  %v5808_v32 = vld [vmem:[#allocation3 + $0x420] sm:$0xf0] }
 0x265   : > { %3882 = vmatpush.bf16.msra.mxu1 %v5885_v25  ;;  %v5241_v49 = vor.u32 %v5808_v32, %v5240_v19 }
 0x266   : > { %1489 = vst [vmem:[#allocation3 + $0x39c] sm:$0xf] %v1457_v35 }
 0x267   : > { %v3337_v42 = vpop.f32.mrf.mxu2 }
 0x268   : > { %v6938_v29 = vpop.f32.mrf.mxu1  ;;  %v6940_v57 = vadd.f32 %v3337_v42, %v3249_v31  ;;  %v5026_v31 = vld [vmem:[#allocation3 + $0x274] sm:$0xf0] }
 0x269   : > { %7497 = vst [vmem:[#allocation43_spill] sm:$0xff] %v6938_v29  ;;  %v5029_v25 = vor.u32 %v5750_v7, %v5026_v31  ;;  %v5034_v31 = vld [vmem:[#allocation3 + $0x27c] sm:$0xf0] }
 0x26a   : > { %7498 = vst [vmem:[#allocation44_spill] sm:$0xff] %v6940_v57  ;;  %v6948_v57 = vpop.f32.mrf.mxu0 }
 0x26b   : > { %v3250_v51 = vpop.f32.mrf.mxu3  ;;  %7499 = vst [vmem:[#allocation45_spill] sm:$0xff] %v6948_v57 }
 0x26c   : > { %v3251_v3 = vadd.f32 %v6847_v18, %v3250_v51  ;;  %v5884_v18 = vld [vmem:[#allocation10 + $0x200] sm:$0xff]  ;;  %v1458_v51 = vpack.c.bf16 %v1426_v47, %v1426_v47 }
 0x26d   : > { %3883 = vmatpush.bf16.msra.mxu1 %v5884_v18  ;;  %v5817_v18 = vld [vmem:[#allocation3 + $0x468] sm:$0xf0] }
 0x26e   : > { %1490 = vst [vmem:[#allocation3 + $0x3c0] sm:$0xf] %v1458_v51 }
 0x26f   : > { %v3339_v29 = vpop.f32.mrf.mxu2  ;;  %3657 = vmatmul.bf16.gmra.mxu2 %v5029_v25  ;;  %v5062_v25 = vld [vmem:[#allocation3 + $0x2bc] sm:$0xf0] }
 0x270   : > { %3390 = vmatmul.bf16.gmra.mxu3 %v5017_v5  ;;  %v6943_v4 = vpop.f32.mrf.mxu1  ;;  %v6946_v42 = vadd.f32 %v3339_v29, %v3251_v3  ;;  %v1459_v5 = vpack.c.bf16 %v1427_v21, %v1427_v21  ;;  %v5052_v29 = vld [vmem:[#allocation3 + $0x290] sm:$0xf]  ;;  %v5762_v3 = vld [vmem:[#allocation3 + $0x2b0] sm:$0xf0]  ;;  %v5751_v21 = vld [vmem:[#allocation3 + $0x25c] sm:$0xf] }
 0x271   : > { %v5053_v7 = vor.u32 %v5762_v3, %v5052_v29  ;;  %v5037_v51 = vor.u32 %v5751_v21, %v5034_v31 }
 0x272   : > { %1491 = vst [vmem:[#allocation3 + $0x3e4] sm:$0xf] %v1459_v5 }
 0x273   : > { %v3351_v13 = vpop.f32.mrf.mxu3  ;;  %3598 = vmatmul.bf16.gmra.mxu1 %v5241_v49  ;;  %v5276_v49 = vld [vmem:[#allocation3 + $0x448] sm:$0xf] }
 0x274   : > { %3830 = vmatmul.bf16.gmra.mxu0 %v5001_v2  ;;  %v3352_v35 = vadd.f32 %v3351_v13, %v6671_v36  ;;  %v5870_v13 = vld [vmem:[#allocation10 + $0x190] sm:$0xff] }
 0x275   : > { %3703 = vmatpush.bf16.msra.mxu3 %v5870_v13 }
 0x276   : > { %v3441_v23 = vadd.f32 %v6675_v46, %v3352_v35  ;;  %v6958_v35 = vpop.f32.mrf.mxu0 }
 0x277   : > { %v3618_v19 = vpop.f32.mrf.mxu2  ;;  %7500 = vst [vmem:[#allocation46_spill] sm:$0xff] %v6958_v35  ;;  %v5738_v35 = vld [vmem:[#allocation3 + $0x1f0] sm:$0xf0] }
 0x278   : > { %v3530_v36 = vadd.f32 %v6865_v27, %v3441_v23  ;;  %v6955_v47 = vpop.f32.mrf.mxu1 }
 0x27a   : > { %v6953_v2 = vadd.f32 %v3618_v19, %v3530_v36 }
 0x27b   : > { %v3353_v33 = vpop.f32.mrf.mxu3 }
 0x27c   : > { %v3354_v32 = vadd.f32 %v3353_v33, %v6677_v60  ;;  %v5759_v60 = vld [vmem:[#allocation3 + $0x29c] sm:$0xf] }
 0x27e   : > { %v3443_v46 = vadd.f32 %v6685_v10, %v3354_v32  ;;  %v5277_v10 = vor.u32 %v5817_v18, %v5276_v49  ;;  %v6968_v19 = vpop.f32.mrf.mxu0  ;;  %v5760_v49 = vld [vmem:[#allocation3 + $0x2a4] sm:$0xf]  ;;  %v5070_v18 = vld [vmem:[#allocation3 + $0x2c4] sm:$0xf0] }
 0x27f   : > { %v3620_v23 = vpop.f32.mrf.mxu2  ;;  %7501 = vst [vmem:[#allocation47_spill] sm:$0xff] %v6968_v19  ;;  %v4968_v19 = vld [vmem:[#allocation3 + $0x1d0] sm:$0xf] }
 0x280   : > { %3395 = vmatmul.bf16.gmra.mxu3 %v5053_v7  ;;  %v3532_v27 = vadd.f32 %v6872_v41, %v3443_v46  ;;  %v6965_v29 = vpop.f32.mrf.mxu1  ;;  %v5065_v41 = vor.u32 %v5759_v60, %v5062_v25  ;;  %v5088_v46 = vld [vmem:[#allocation3 + $0x2d8] sm:$0xf]  ;;  %v5771_v7 = vld [vmem:[#allocation3 + $0x2f8] sm:$0xf0]  ;;  %v5073_v60 = vor.u32 %v5760_v49, %v5070_v18 }
 0x282   : > { %v6962_v13 = vadd.f32 %v3620_v23, %v3532_v27  ;;  %3662 = vmatmul.bf16.gmra.mxu2 %v5065_v41  ;;  %v5684_v23 = vld [vmem:[#allocation3 + $0x40] sm:$0xf0] }
 0x283   : > { %v3356_v5 = vpop.f32.mrf.mxu3  ;;  %3603 = vmatmul.bf16.gmra.mxu1 %v5277_v10 }
 0x284   : > { %3835 = vmatmul.bf16.gmra.mxu0 %v5037_v51  ;;  %v3357_v36 = vadd.f32 %v3356_v5, %v6690_v15  ;;  %v4752_v5 = vld [vmem:[#allocation3 + $0x20] sm:$0xf] }
 0x286   : > { %v3446_v33 = vadd.f32 %v6695_v30, %v3357_v36  ;;  %v5089_v30 = vor.u32 %v5771_v7, %v5088_v46  ;;  %v6977_v36 = vpop.f32.mrf.mxu0  ;;  %v5869_v7 = vld [vmem:[#allocation10 + $0x188] sm:$0xff] }
 0x287   : > { %v3623_v31 = vpop.f32.mrf.mxu2  ;;  %7502 = vst [vmem:[#allocation48_spill] sm:$0xff] %v6977_v36  ;;  %3704 = vmatpush.bf16.msra.mxu3 %v5869_v7 }
 0x288   : > { %v3535_v3 = vadd.f32 %v6877_v63, %v3446_v33  ;;  %v6974_v51 = vpop.f32.mrf.mxu1  ;;  %v5098_v33 = vld [vmem:[#allocation3 + $0x304] sm:$0xf0] }
 0x28a   : > { %v6971_v27 = vadd.f32 %v3623_v31, %v3535_v3  ;;  %v4753_v3 = vor.u32 %v5684_v23, %v4752_v5  ;;  %v5769_v23 = vld [vmem:[#allocation3 + $0x2ec] sm:$0xf] }
 0x28b   : > { %v3358_v32 = vpop.f32.mrf.mxu3 }
 0x28c   : > { %v3359_v15 = vadd.f32 %v3358_v32, %v6704_v44  ;;  %v5768_v44 = vld [vmem:[#allocation3 + $0x2e4] sm:$0xf] }
 0x28d   : > { %v5101_v46 = vor.u32 %v5768_v44, %v5098_v33 }
 0x28e   : > { %v3448_v21 = vadd.f32 %v6712_v53, %v3359_v15 }
 0x28f   : > { %v3625_v10 = vpop.f32.mrf.mxu2 }
 0x290   : > { %3400 = vmatmul.bf16.gmra.mxu3 %v5089_v30  ;;  %v3537_v63 = vadd.f32 %v6884_v16, %v3448_v21  ;;  %v6984_v31 = vpop.f32.mrf.mxu1  ;;  %v5124_v21 = vld [vmem:[#allocation3 + $0x320] sm:$0xf]  ;;  %v5780_v30 = vld [vmem:[#allocation3 + $0x340] sm:$0xf0] }
 0x291   : > { %v5125_v5 = vor.u32 %v5780_v30, %v5124_v21 }
 0x292   : > { %v6980_v41 = vadd.f32 %v3625_v10, %v3537_v63  ;;  %3667 = vmatmul.bf16.gmra.mxu2 %v5101_v46  ;;  %v6989_v63 = vpop.f32.mrf.mxu0  ;;  %v5693_v10 = vld [vmem:[#allocation3 + $0x88] sm:$0xf0] }
 0x293   : > { %v3361_v25 = vpop.f32.mrf.mxu3  ;;  %3884 = vmatmul.bf16.vlgmr.msra.gmra.mxu1 %v4753_v3  ;;  %7503 = vst [vmem:[#allocation49_spill] sm:$0xff] %v6989_v63  ;;  %v5777_v3 = vld [vmem:[#allocation3 + $0x32c] sm:$0xf] }
 0x294   : > { %3840 = vmatmul.bf16.gmra.mxu0 %v5073_v60  ;;  %v3362_v53 = vadd.f32 %v3361_v25, %v6720_v0  ;;  %v5106_v60 = vld [vmem:[#allocation3 + $0x30c] sm:$0xf0]  ;;  %v4788_v25 = vld [vmem:[#allocation3 + $0x68] sm:$0xf] }
 0x295   : > { %v5109_v44 = vor.u32 %v5769_v23, %v5106_v60 }
 0x296   : > { %v3451_v32 = vadd.f32 %v6725_v11, %v3362_v53 }
 0x297   : > { %v3628_v49 = vpop.f32.mrf.mxu2 }
 0x298   : > { %v3540_v16 = vadd.f32 %v6891_v56, %v3451_v32  ;;  %v5134_v32 = vld [vmem:[#allocation3 + $0x34c] sm:$0xf0]  ;;  %v6994_v46 = vpop.f32.mrf.mxu1 }
 0x29a   : > { %v6987_v18 = vadd.f32 %v3628_v49, %v3540_v16  ;;  %v5160_v49 = vld [vmem:[#allocation3 + $0x368] sm:$0xf] }
 0x29b   : > { %v3363_v15 = vpop.f32.mrf.mxu3 }
 0x29c   : > { %v3364_v0 = vadd.f32 %v3363_v15, %v6735_v28  ;;  %v5137_v15 = vor.u32 %v5777_v3, %v5134_v32 }
 0x29e   : > { %v3453_v11 = vadd.f32 %v6746_v17, %v3364_v0  ;;  %v4789_v17 = vor.u32 %v5693_v10, %v4788_v25  ;;  %v5789_v0 = vld [vmem:[#allocation3 + $0x388] sm:$0xf0]  ;;  %v5142_v25 = vld [vmem:[#allocation3 + $0x354] sm:$0xf0] }
 0x29f   : > { %v3630_v53 = vpop.f32.mrf.mxu2  ;;  %v5161_v60 = vor.u32 %v5789_v0, %v5160_v49  ;;  %v5196_v49 = vld [vmem:[#allocation3 + $0x3b0] sm:$0xf]  ;;  %v5798_v0 = vld [vmem:[#allocation3 + $0x3d0] sm:$0xf0] }
 0x2a0   : > { %3405 = vmatmul.bf16.gmra.mxu3 %v5125_v5  ;;  %v3542_v56 = vadd.f32 %v6898_v38, %v3453_v11  ;;  %v6999_v38 = vpop.f32.mrf.mxu0 }
 0x2a1   : > { %7504 = vst [vmem:[#allocation50_spill] sm:$0xff] %v6999_v38  ;;  %v5805_v38 = vld [vmem:[#allocation3 + $0x40c] sm:$0xf] }
 0x2a2   : > { %v6996_v16 = vadd.f32 %v3630_v53, %v3542_v56  ;;  %3672 = vmatmul.bf16.gmra.mxu2 %v5137_v15  ;;  %v7006_v56 = vpop.f32.mrf.mxu1 }
 0x2a3   : > { %v3366_v33 = vpop.f32.mrf.mxu3  ;;  %3889 = vmatmul.bf16.gmra.mxu1 %v4789_v17 }
 0x2a4   : > { %3845 = vmatmul.bf16.gmra.mxu0 %v5109_v44  ;;  %v3367_v28 = vadd.f32 %v3366_v33, %v6754_v48  ;;  %v5702_v33 = vld [vmem:[#allocation3 + $0xd0] sm:$0xf0] }
 0x2a6   : > { %v3456_v7 = vadd.f32 %v6759_v6, %v3367_v28  ;;  %v5778_v6 = vld [vmem:[#allocation3 + $0x334] sm:$0xf]  ;;  %v5170_v28 = vld [vmem:[#allocation3 + $0x394] sm:$0xf0] }
 0x2a7   : > { %v3633_v11 = vpop.f32.mrf.mxu2  ;;  %v5145_v53 = vor.u32 %v5778_v6, %v5142_v25  ;;  %v4860_v6 = vld [vmem:[#allocation3 + $0xf8] sm:$0xf]  ;;  %v5711_v25 = vld [vmem:[#allocation3 + $0x118] sm:$0xf0] }
 0x2a8   : > { %v3545_v21 = vadd.f32 %v6905_v9, %v3456_v7  ;;  %v7009_v44 = vpop.f32.mrf.mxu0  ;;  %v4824_v9 = vld [vmem:[#allocation3 + $0xb0] sm:$0xf] }
 0x2a9   : > { %v4825_v7 = vor.u32 %v5702_v33, %v4824_v9 }
 0x2aa   : > { %v7003_v5 = vadd.f32 %v3633_v11, %v3545_v21  ;;  %v7016_v21 = vpop.f32.mrf.mxu1 }
 0x2ab   : > { %v3368_v30 = vpop.f32.mrf.mxu3 }
 0x2ac   : > { %v3369_v48 = vadd.f32 %v3368_v30, %v6767_v20  ;;  %v5786_v20 = vld [vmem:[#allocation3 + $0x374] sm:$0xf] }
 0x2ad   : > { %v5173_v15 = vor.u32 %v5786_v20, %v5170_v28  ;;  %v4861_v20 = vor.u32 %v5711_v25, %v4860_v6  ;;  %v1333_v28 = vld [vmem:[#allocation2 + $0x182] sm:$0xff]  ;;  %v5796_v6 = vld [vmem:[#allocation3 + $0x3c4] sm:$0xf]  ;;  %v5214_v25 = vld [vmem:[#allocation3 + $0x3e4] sm:$0xf0] }
 0x2ae   : > { %v3458_v23 = vadd.f32 %v6780_v55, %v3369_v48 }
 0x2af   : > { %v3635_v32 = vpop.f32.mrf.mxu2 }
 0x2b0   : > { %3410 = vmatmul.bf16.gmra.mxu3 %v5161_v60  ;;  %v3547_v10 = vadd.f32 %v6910_v40, %v3458_v23  ;;  %v5868_v40 = vld [vmem:[#allocation10 + $0x180] sm:$0xff]  ;;  %v7018_v11 = vpop.f32.mrf.mxu0  ;;  %v5787_v23 = vld [vmem:[#allocation3 + $0x37c] sm:$0xf] }
 0x2b1   : > { %3705 = vmatpush.bf16.msra.mxu3 %v5868_v40  ;;  %v5178_v60 = vld [vmem:[#allocation3 + $0x39c] sm:$0xf0] }
 0x2b2   : > { %v7014_v17 = vadd.f32 %v3635_v32, %v3547_v10  ;;  %3677 = vmatmul.bf16.gmra.mxu2 %v5173_v15  ;;  %v5181_v10 = vor.u32 %v5787_v23, %v5178_v60  ;;  %v7023_v9 = vpop.f32.mrf.mxu1  ;;  %v1365_v15 = vpack.c.bf16 %v1333_v28, %v1333_v28  ;;  %v5804_v28 = vld [vmem:[#allocation3 + $0x404] sm:$0xf] }
 0x2b3   : > { %v3371_v3 = vpop.f32.mrf.mxu3  ;;  %3894 = vmatmul.bf16.gmra.mxu1 %v4825_v7 }
 0x2b4   : > { %3850 = vmatmul.bf16.gmra.mxu0 %v5145_v53  ;;  %v7012_v55 = vadd.f32 %v3371_v3, %v6786_v50  ;;  %v5197_v50 = vor.u32 %v5798_v0, %v5196_v49  ;;  %v5795_v53 = vld [vmem:[#allocation3 + $0x3bc] sm:$0xf]  ;;  %v5206_v3 = vld [vmem:[#allocation3 + $0x3dc] sm:$0xf0]  ;;  %1397 = vst [vmem:[#allocation3 + $0x44c] sm:$0xf] %v1365_v15 }
 0x2b5   : > { %1684 = vst [vmem:[#allocation3 + $0x410] sm:$0xf] %v1365_v15  ;;  %v5232_v0 = vld [vmem:[#allocation3 + $0x3f8] sm:$0xf] }
 0x2b8   : > { %v7028_v7 = vpop.f32.mrf.mxu0 }
 0x2ba   : > { %v7033_v23 = vpop.f32.mrf.mxu1 }
 0x2bb   : > { %v3373_v30 = vpop.f32.mrf.mxu3 }
 0x2bc   : > { %v7021_v48 = vadd.f32 %v3373_v30, %v6799_v54  ;;  %v1334_v54 = vld [vmem:[#allocation2 + $0x18a] sm:$0xff]  ;;  %v5209_v30 = vor.u32 %v5795_v53, %v5206_v3  ;;  %v5720_v53 = vld [vmem:[#allocation3 + $0x160] sm:$0xf0]  ;;  %v5217_v3 = vor.u32 %v5796_v6, %v5214_v25 }
 0x2bd   : > { %v1366_v40 = vpack.c.bf16 %v1334_v54, %v1334_v54  ;;  %v5242_v54 = vld [vmem:[#allocation3 + $0x424] sm:$0xf0] }
 0x2bf   : > { %1398 = vst [vmem:[#allocation3 + $0x470] sm:$0xf] %v1366_v40 }
 0x2c0   : > { %3415 = vmatmul.bf16.gmra.mxu3 %v5197_v50  ;;  %v5807_v50 = vld [vmem:[#allocation3 + $0x418] sm:$0xf0]  ;;  %1685 = vst [vmem:[#allocation3 + $0x434] sm:$0xf] %v1366_v40 }
 0x2c1   : > { %v5233_v60 = vor.u32 %v5807_v50, %v5232_v0  ;;  %v5268_v50 = vld [vmem:[#allocation3 + $0x440] sm:$0xf] }
 0x2c2   : > { %3682 = vmatmul.bf16.gmra.mxu2 %v5209_v30  ;;  %v7040_v40 = vpop.f32.mrf.mxu1  ;;  %v5245_v30 = vor.u32 %v5804_v28, %v5242_v54 }
 0x2c3   : > { %v3376_v33 = vpop.f32.mrf.mxu3  ;;  %3899 = vmatmul.bf16.gmra.mxu1 %v4861_v20 }
 0x2c4   : > { %3855 = vmatmul.bf16.gmra.mxu0 %v5181_v10  ;;  %v7026_v32 = vadd.f32 %v3376_v33, %v6809_v61  ;;  %v7035_v10 = vpop.f32.mrf.mxu0  ;;  %v4896_v33 = vld [vmem:[#allocation3 + $0x140] sm:$0xf] }
 0x2cb   : > { %v3378_v49 = vpop.f32.mrf.mxu3 }
 0x2cc   : > { %v7031_v61 = vadd.f32 %v3378_v49, %v6813_v45  ;;  %v4897_v45 = vor.u32 %v5720_v53, %v4896_v33  ;;  %v7042_v49 = vpop.f32.mrf.mxu0  ;;  %v4932_v33 = vld [vmem:[#allocation3 + $0x188] sm:$0xf]  ;;  %v5729_v53 = vld [vmem:[#allocation3 + $0x1a8] sm:$0xf0] }
 0x2d0   : > { %3420 = vmatmul.bf16.gmra.mxu3 %v5233_v60  ;;  %v5816_v60 = vld [vmem:[#allocation3 + $0x460] sm:$0xf0] }
 0x2d1   : > { %v5269_v25 = vor.u32 %v5816_v60, %v5268_v50 }
 0x2d2   : > { %3687 = vmatmul.bf16.gmra.mxu2 %v5245_v30  ;;  %v5278_v30 = vld [vmem:[#allocation3 + $0x46c] sm:$0xf0] }
 0x2d3   : > { %v3381_v20 = vpop.f32.mrf.mxu3  ;;  %3904 = vmatmul.bf16.gmra.mxu1 %v4897_v45  ;;  %v5813_v45 = vld [vmem:[#allocation3 + $0x44c] sm:$0xf] }
 0x2d4   : > { %3860 = vmatmul.bf16.gmra.mxu0 %v5217_v3  ;;  %v7038_v15 = vadd.f32 %v3381_v20, %v6819_v14  ;;  %v5250_v3 = vld [vmem:[#allocation3 + $0x42c] sm:$0xf0]  ;;  %v7047_v14 = vpop.f32.mrf.mxu1  ;;  %v7049_v54 = vpop.f32.mrf.mxu0 }
 0x2d5   : > { %7505 = vst [vmem:[#allocation51_spill] sm:$0xff] %v7047_v14  ;;  %v5253_v20 = vor.u32 %v5805_v38, %v5250_v3  ;;  %v4744_v38 = vld [vmem:[#allocation3 + $0x18] sm:$0xf]  ;;  %v423_v14 = vld [vmem:[%s6442_s25 + $0x10] sm:$0xff]  }
 0x2db   : > { %v3383_v0 = vpop.f32.mrf.mxu3 }
 0x2dc   : > { %v7045_v6 = vadd.f32 %v3383_v0, %v6826_v52  ;;  %v4933_v52 = vor.u32 %v5729_v53, %v4932_v33  ;;  %v5281_v0 = vor.u32 %v5813_v45, %v5278_v30  ;;  %v7054_v50 = vpop.f32.mrf.mxu1  ;;  %v4969_v53 = vor.u32 %v5738_v35, %v4968_v19  ;;  %v5692_v45 = vld [vmem:[#allocation3 + $0x80] sm:$0xf0] }
 0x2dd   : > { %7506 = vst [vmem:[#allocation52_spill] sm:$0xff] %v7054_v50 }
 0x2e0   : > { %3425 = vmatmul.bf16.gmra.mxu3 %v5269_v25  ;;  %v5683_v25 = vld [vmem:[#allocation3 + $0x38] sm:$0xf0] }
 0x2e1   : > { %v4745_v3 = vor.u32 %v5683_v25, %v4744_v38  ;;  %v5747_v25 = vld [vmem:[#allocation3 + $0x238] sm:$0xf0] }
 0x2e2   : > { %3692 = vmatmul.bf16.gmra.mxu2 %v5281_v0 }
 0x2e3   : > { %v3386_v28 = vpop.f32.mrf.mxu3  ;;  %3909 = vmatmul.bf16.gmra.mxu1 %v4933_v52 }
 0x2e4   : > { %3865 = vmatmul.bf16.gmra.mxu0 %v5253_v20  ;;  %v7052_v63 = vadd.f32 %v3386_v28, %v6834_v59  ;;  %v7062_v33 = vpop.f32.mrf.mxu1 }
 0x2e5   : > { %7507 = vst [vmem:[#allocation53_spill] sm:$0xff] %v7062_v33 }
 0x2eb   : > { %v3388_v60 = vpop.f32.mrf.mxu3 }
 0x2ec   : > { %v7057_v36 = vadd.f32 %v3388_v60, %v6841_v24  ;;  %v4780_v24 = vld [vmem:[#allocation3 + $0x60] sm:$0xf]  ;;  %v7067_v0 = vpop.f32.mrf.mxu1  ;;  %v5004_v60 = vld [vmem:[#allocation3 + $0x218] sm:$0xf] }
 0x2ed   : > { %v4781_v52 = vor.u32 %v5692_v45, %v4780_v24  ;;  %7508 = vst [vmem:[#allocation54_spill] sm:$0xff] %v7067_v0  ;;  %v5040_v45 = vld [vmem:[#allocation3 + $0x260] sm:$0xf]  ;;  %v5756_v24 = vld [vmem:[#allocation3 + $0x280] sm:$0xf0] }
 0x2f0   : > { %3706 = vmatmul.bf16.vlgmr.msra.gmra.mxu3 %v4745_v3  ;;  %v5005_v3 = vor.u32 %v5747_v25, %v5004_v60  ;;  %v5041_v60 = vor.u32 %v5756_v24, %v5040_v45  ;;  %v1428_v25 = vld [vmem:[#allocation2 + $0x180] sm:$0xff] }
 0x2f3   : > { %v3391_v20 = vpop.f32.mrf.mxu3  ;;  %3914 = vmatmul.bf16.gmra.mxu1 %v4969_v53  ;;  %v4816_v53 = vld [vmem:[#allocation3 + $0xa8] sm:$0xf] }
 0x2f4   : > { %v7060_v59 = vadd.f32 %v3391_v20, %v6852_v39  ;;  %v7072_v35 = vpop.f32.mrf.mxu1  ;;  %v5701_v20 = vld [vmem:[#allocation3 + $0xc8] sm:$0xf0] }
 0x2f5   : > { %7509 = vst [vmem:[#allocation55_spill] sm:$0xff] %v7072_v35 }
 0x2fb   : > { %v3393_v28 = vpop.f32.mrf.mxu3 }
 0x2fc   : > { %v7065_v30 = vadd.f32 %v3393_v28, %v6855_v1  ;;  %v4817_v28 = vor.u32 %v5701_v20, %v4816_v53 }
 0x300   : > { %3711 = vmatmul.bf16.gmra.mxu3 %v4781_v52  ;;  %v7077_v52 = vpop.f32.mrf.mxu1 }
 0x301   : > { %7510 = vst [vmem:[#allocation56_spill] sm:$0xff] %v7077_v52 }
 0x303   : > { %v3396_v38 = vpop.f32.mrf.mxu3  ;;  %3919 = vmatmul.bf16.gmra.mxu1 %v5005_v3  ;;  %v1460_v3 = vpack.c.bf16 %v1428_v25, %v1428_v25 }
 0x304   : > { %v7070_v39 = vadd.f32 %v3396_v38, %v6860_v43  ;;  %v1429_v38 = vld [vmem:[#allocation2 + $0x188] sm:$0xff] }
 0x305   : > { %v1461_v35 = vpack.c.bf16 %v1429_v38, %v1429_v38  ;;  %1492 = vst [vmem:[#allocation3 + $0x408] sm:$0xf] %v1460_v3  ;;  %v5719_v38 = vld [vmem:[#allocation3 + $0x158] sm:$0xf0]  ;;  %v4888_v3 = vld [vmem:[#allocation3 + $0x138] sm:$0xf] }
 0x307   : > { %1493 = vst [vmem:[#allocation3 + $0x42c] sm:$0xf] %v1461_v35 }
 0x308   : > { %v7085_v53 = vpop.f32.mrf.mxu1 }
 0x309   : > { %7511 = vst [vmem:[#allocation57_spill] sm:$0xff] %v7085_v53 }
 0x30b   : > { %v3398_v19 = vpop.f32.mrf.mxu3 }
 0x30c   : > { %v7075_v1 = vadd.f32 %v3398_v19, %v6867_v26  ;;  %v5710_v19 = vld [vmem:[#allocation3 + $0x110] sm:$0xf0] }
 0x310   : > { %3716 = vmatmul.bf16.gmra.mxu3 %v4817_v28  ;;  %v4852_v28 = vld [vmem:[#allocation3 + $0xf0] sm:$0xf]  ;;  %v7090_v25 = vpop.f32.mrf.mxu1 }
 0x311   : > { %v4853_v52 = vor.u32 %v5710_v19, %v4852_v28  ;;  %7512 = vst [vmem:[#allocation58_spill] sm:$0xff] %v7090_v25  ;;  %v5774_v28 = vld [vmem:[#allocation3 + $0x310] sm:$0xf0]  ;;  %v7517_v25 = vld [vmem:[#allocation34_spill] sm:$0xff] }
 0x313   : > { %v3401_v0 = vpop.f32.mrf.mxu3  ;;  %3924 = vmatmul.bf16.gmra.mxu1 %v5041_v60 }
 0x314   : > { %v7080_v43 = vadd.f32 %v3401_v0, %v6874_v12  ;;  %v5076_v12 = vld [vmem:[#allocation3 + $0x2a8] sm:$0xf]  ;;  %v5765_v0 = vld [vmem:[#allocation3 + $0x2c8] sm:$0xf0] }
 0x315   : > { %v5077_v60 = vor.u32 %v5765_v0, %v5076_v12 }
 0x318   : > { %v7095_v19 = vpop.f32.mrf.mxu1 }
 0x319   : > { %7514 = vst [vmem:[#allocation60_spill] sm:$0xff] %v7095_v19 }
 0x31b   : > { %v3403_v26 = vpop.f32.mrf.mxu3 }
 0x31c   : > { %v7083_v20 = vadd.f32 %v3403_v26, %v6881_v22  ;;  %v4889_v26 = vor.u32 %v5719_v38, %v4888_v3  ;;  %v5148_v3 = vld [vmem:[#allocation3 + $0x338] sm:$0xf] }
 0x320   : > { %3721 = vmatmul.bf16.gmra.mxu3 %v4853_v52  ;;  %v5112_v52 = vld [vmem:[#allocation3 + $0x2f0] sm:$0xf]  ;;  %v7100_v0 = vpop.f32.mrf.mxu1 }
 0x321   : > { %v5113_v12 = vor.u32 %v5774_v28, %v5112_v52  ;;  %v5899_v52 = vld [vmem:[#allocation11 + $0x38] sm:$0xff] }
 0x322   : > { %v5907_v28 = vld [vmem:[#allocation13 + $0x38] sm:$0xff]  ;;  %4324 = vmatpush.bf16.msrb.mxu2 %v5899_v52 }
 0x323   : > { %v3406_v45 = vpop.f32.mrf.mxu3  ;;  %3929 = vmatmul.bf16.gmra.mxu1 %v5077_v60  ;;  %v5728_v60 = vld [vmem:[#allocation3 + $0x1a0] sm:$0xf0]  ;;  %4425 = vmatpush.bf16.msrb.mxu3 %v5907_v28  ;;  %v5746_v28 = vld [vmem:[#allocation3 + $0x230] sm:$0xf0] }
 0x324   : > { %v7088_v24 = vadd.f32 %v3406_v45, %v6886_v62 }
 0x32b   : > { %v3408_v35 = vpop.f32.mrf.mxu3 }
 0x32c   : > { %v7093_v22 = vadd.f32 %v3408_v35, %v6893_v34  ;;  %v4924_v35 = vld [vmem:[#allocation3 + $0x180] sm:$0xf] }
 0x32d   : > { %v4925_v38 = vor.u32 %v5728_v60, %v4924_v35  ;;  %v4960_v60 = vld [vmem:[#allocation3 + $0x1c8] sm:$0xf] }
 0x32e   : > { %7513 = vst [vmem:[#allocation59_spill] sm:$0xff] %v7093_v22  ;;  %v7528_v22 = vld [vmem:[#allocation35_spill] sm:$0xff] }
 0x330   : > { %3726 = vmatmul.bf16.gmra.mxu3 %v4889_v26  ;;  %v5783_v26 = vld [vmem:[#allocation3 + $0x358] sm:$0xf0] }
 0x333   : > { %v3411_v53 = vpop.f32.mrf.mxu3  ;;  %3934 = vmatmul.bf16.gmra.mxu1 %v5113_v12 }
 0x334   : > { %v7098_v62 = vadd.f32 %v3411_v53, %v6900_v58  ;;  %v7108_v58 = vpop.f32.mrf.mxu1  ;;  %v5149_v53 = vor.u32 %v5783_v26, %v5148_v3 }
 0x336   : > { %7515 = vst [vmem:[#allocation61_spill] sm:$0xff] %v7098_v62  ;;  %v7524_v62 = vld [vmem:[#allocation44_spill] sm:$0xff] }
 0x33b   : > { %v3413_v45 = vpop.f32.mrf.mxu3 }
 0x33c   : > { %v7103_v34 = vadd.f32 %v3413_v45, %v6907_v37  ;;  %v5737_v37 = vld [vmem:[#allocation3 + $0x1e8] sm:$0xf0] }
 0x33d   : > { %v7519_v45 = vld [vmem:[#allocation36_spill] sm:$0xff]  ;;  %v4961_v35 = vor.u32 %v5737_v37, %v4960_v60 }
 0x33e   : > { %7516 = vst [vmem:[#allocation62_spill] sm:$0xff] %v7103_v34  ;;  %v7521_v34 = vld [vmem:[#allocation39_spill] sm:$0xff]  ;;  %v5220_v60 = vld [vmem:[#allocation3 + $0x3c8] sm:$0xf] }
 0x340   : > { %3731 = vmatmul.bf16.gmra.mxu3 %v4925_v38  ;;  %v7113_v38 = vpop.f32.mrf.mxu1 }
 0x343   : > { %v3416_v19 = vpop.f32.mrf.mxu3  ;;  %3939 = vmatmul.bf16.gmra.mxu1 %v5149_v53 }
 0x344   : > { %v7106_v57 = vadd.f32 %v3416_v19, %v7517_v25  ;;  %v5184_v25 = vld [vmem:[#allocation3 + $0x380] sm:$0xf]  ;;  %v5792_v19 = vld [vmem:[#allocation3 + $0x3a0] sm:$0xf0] }
 0x345   : > { %v5185_v26 = vor.u32 %v5792_v19, %v5184_v25  ;;  %v5755_v19 = vld [vmem:[#allocation3 + $0x278] sm:$0xf0] }
 0x346   : > { %7518 = vst [vmem:[#allocation34_spill] sm:$0xff] %v7106_v57 }
 0x348   : > { %v7118_v53 = vpop.f32.mrf.mxu1 }
 0x34b   : > { %v3418_v12 = vpop.f32.mrf.mxu3 }
 0x34c   : > { %v7111_v33 = vadd.f32 %v3418_v12, %v7519_v45  ;;  %v4996_v45 = vld [vmem:[#allocation3 + $0x210] sm:$0xf] }
 0x34d   : > { %v4997_v37 = vor.u32 %v5746_v28, %v4996_v45  ;;  %v5898_v28 = vld [vmem:[#allocation11 + $0x30] sm:$0xff] }
 0x34e   : > { %7520 = vst [vmem:[#allocation36_spill] sm:$0xff] %v7111_v33  ;;  %v5906_v45 = vld [vmem:[#allocation13 + $0x30] sm:$0xff]  ;;  %4325 = vmatpush.bf16.msrb.mxu2 %v5898_v28  ;;  %v5764_v28 = vld [vmem:[#allocation3 + $0x2c0] sm:$0xf0] }
 0x34f   : > { %4426 = vmatpush.bf16.msrb.mxu3 %v5906_v45 }
 0x350   : > { %3736 = vmatmul.bf16.gmra.mxu3 %v4961_v35  ;;  %v5801_v35 = vld [vmem:[#allocation3 + $0x3e8] sm:$0xf0]  ;;  %v7123_v33 = vpop.f32.mrf.mxu1 }
 0x353   : > { %v3421_v57 = vpop.f32.mrf.mxu3  ;;  %3944 = vmatmul.bf16.gmra.mxu1 %v5185_v26 }
 0x354   : > { %v7116_v3 = vadd.f32 %v3421_v57, %v7521_v34  ;;  %v5221_v34 = vor.u32 %v5801_v35, %v5220_v60  ;;  %v7134_v60 = vpop.f32.mrf.mxu0 }
 0x356   : > { %7522 = vst [vmem:[#allocation39_spill] sm:$0xff] %v7116_v3  ;;  %v5810_v3 = vld [vmem:[#allocation3 + $0x430] sm:$0xf0] }
 0x35b   : > { %v3423_v52 = vpop.f32.mrf.mxu3 }
 0x35c   : > { %v7121_v12 = vadd.f32 %v3423_v52, %v6933_v8  ;;  %v7131_v8 = vpop.f32.mrf.mxu1  ;;  %v5032_v52 = vld [vmem:[#allocation3 + $0x258] sm:$0xf] }
 0x35e   : > { %7523 = vst [vmem:[#allocation63_spill] sm:$0xff] %v7121_v12  ;;  %v5256_v12 = vld [vmem:[#allocation3 + $0x410] sm:$0xf] }
 0x35f   : > { %v5257_v35 = vor.u32 %v5810_v3, %v5256_v12  ;;  %v7144_v3 = vpop.f32.mrf.mxu2 }
 0x360   : > { %3741 = vmatmul.bf16.gmra.mxu3 %v4997_v37  ;;  %v5033_v37 = vor.u32 %v5755_v19, %v5032_v52  ;;  %v5068_v52 = vld [vmem:[#allocation3 + $0x2a0] sm:$0xf] }
 0x363   : > { %v3426_v50 = vpop.f32.mrf.mxu3  ;;  %3949 = vmatmul.bf16.gmra.mxu1 %v5221_v34 }
 0x364   : > { %v7126_v57 = vadd.f32 %v3426_v50, %v7524_v62  ;;  %v7137_v34 = vpop.f32.mrf.mxu1 }
 0x366   : > { %7525 = vst [vmem:[#allocation44_spill] sm:$0xff] %v7126_v57 }
 0x36b   : > { %v3428_v25 = vpop.f32.mrf.mxu3 }
 0x36c   : > { %v7129_v26 = vadd.f32 %v3428_v25, %v6946_v42  ;;  %v7147_v12 = vpop.f32.mrf.mxu1 }
 0x36e   : > { %7526 = vst [vmem:[#allocation64_spill] sm:$0xff] %v7129_v26 }
 0x370   : > { %3746 = vmatmul.bf16.gmra.mxu3 %v5033_v37  ;;  %v5069_v37 = vor.u32 %v5764_v28, %v5068_v52  ;;  %v7155_v52 = vpop.f32.mrf.mxu2  ;;  %v5104_v28 = vld [vmem:[#allocation3 + $0x2e8] sm:$0xf] }
 0x373   : > { %v3707_v50 = vpop.f32.mrf.mxu3  ;;  %3954 = vmatmul.bf16.gmra.mxu1 %v5257_v35 }
 0x374   : > { %v3708_v62 = vadd.f32 %v3707_v50, %v6953_v2  ;;  %v7142_v50 = vpop.f32.mrf.mxu0 }
 0x376   : > { %v3797_v42 = vadd.f32 %v7009_v44, %v3708_v62 }
 0x378   : > { %v3886_v25 = vadd.f32 %v7100_v0, %v3797_v42 }
 0x37a   : > { %v3965_v26 = vmax.f32 %v3886_v25, 0.0 }
 0x37b   : > { %v3709_v19 = vpop.f32.mrf.mxu3 }
 0x37c   : > { %3997 = vst [vmem:[#allocation4] sm:$0xff] %v3965_v26  ;;  %v3710_v45 = vadd.f32 %v3709_v19, %v6962_v13  ;;  %v419_v26 = vld [vmem:[%s6442_s25] sm:$0xff]   ;;  %v7153_v25 = vpop.f32.mrf.mxu0 }
 0x37d   : > { %v4124_v42 = vunpack.c.l.bf16 %v419_v26  ;;  %v4125_v19 = vunpack.c.h.bf16 %v419_v26 }
 0x37e   : > { %v3799_v2 = vadd.f32 %v7018_v11, %v3710_v45  ;;  %v7157_v45 = vpop.f32.mrf.mxu1 }
 0x380   : > { %v3888_v44 = vadd.f32 %v7108_v58, %v3799_v2  ;;  %3751 = vmatmul.bf16.gmra.mxu3 %v5069_v37 }
 0x382   : > { %v3966_v0 = vmax.f32 %v3888_v44, 0.0  ;;  %v5773_v44 = vld [vmem:[#allocation3 + $0x308] sm:$0xf0] }
 0x383   : > { %v3712_v62 = vpop.f32.mrf.mxu3 }
 0x384   : > { %3998 = vst [vmem:[#allocation4 + $0x8] sm:$0xff] %v3966_v0  ;;  %v3713_v35 = vadd.f32 %v3712_v62, %v6971_v27  ;;  %v5905_v0 = vld [vmem:[#allocation13 + $0x28] sm:$0xff] }
 0x385   : > { %4427 = vmatpush.bf16.msrb.mxu3 %v5905_v0 }
 0x386   : > { %v3802_v13 = vadd.f32 %v7028_v7, %v3713_v35  ;;  %v5105_v35 = vor.u32 %v5773_v44, %v5104_v28 }
 0x388   : > { %v3891_v11 = vadd.f32 %v7113_v38, %v3802_v13  ;;  %v5897_v38 = vld [vmem:[#allocation11 + $0x28] sm:$0xff] }
 0x389   : > { %4326 = vmatpush.bf16.msrb.mxu2 %v5897_v38 }
 0x38a   : > { %v3967_v58 = vmax.f32 %v3891_v11, 0.0  ;;  %v7166_v11 = vpop.f32.mrf.mxu0 }
 0x38b   : > { %v7159_v2 = vld [vmem:[#allocation4] ss:$2 sm:$0xff]  ;;  %v7161_v37 = vld [vmem:[#allocation4 + $0x1] ss:$2 sm:$0xff]  ;;  %v3714_v27 = vpop.f32.mrf.mxu3 }
 0x38c   : > { %4156 = vst [vmem:[#allocation4] sm:$0xff] %v4124_v42  ;;  %v3715_v7 = vadd.f32 %v3714_v27, %v6980_v41  ;;  %v7168_v42 = vpop.f32.mrf.mxu2 }
 0x38d   : > { %4157 = vst [vmem:[#allocation4 + $0x8] sm:$0xff] %v4125_v19  ;;  %v7171_v19 = vpop.f32.mrf.mxu1 }
 0x38e   : > { %3999 = vst [vmem:[#allocation4 + $0x10] sm:$0xff] %v3967_v58  ;;  %v3804_v62 = vadd.f32 %v7035_v10, %v3715_v7  ;;  %v421_v58 = vld [vmem:[%s6442_s25 + $0x8] sm:$0xff]   ;;  %v5140_v7 = vld [vmem:[#allocation3 + $0x330] sm:$0xf] }
 0x38f   : > { %v4126_v28 = vunpack.c.l.bf16 %v421_v58  ;;  %v4127_v44 = vunpack.c.h.bf16 %v421_v58  ;;  %v5895_v58 = vld [vmem:[#allocation11 + $0x18] sm:$0xff] }
 0x390   : > { %v3893_v26 = vadd.f32 %v7118_v53, %v3804_v62  ;;  %3756 = vmatmul.bf16.gmra.mxu3 %v5105_v35  ;;  %v5782_v35 = vld [vmem:[#allocation3 + $0x350] sm:$0xf0] }
 0x392   : > { %v3968_v13 = vmax.f32 %v3893_v26, 0.0  ;;  %v5896_v26 = vld [vmem:[#allocation11 + $0x20] sm:$0xff] }
 0x393   : > { %v3717_v57 = vpop.f32.mrf.mxu3  ;;  %4327 = vmatpush.bf16.msrb.mxu2 %v5896_v26 }
 0x394   : > { %4000 = vst [vmem:[#allocation4 + $0x18] sm:$0xff] %v3968_v13  ;;  %v3718_v41 = vadd.f32 %v3717_v57, %v6987_v18  ;;  %v7181_v57 = vpop.f32.mrf.mxu0  ;;  %v5141_v13 = vor.u32 %v5782_v35, %v5140_v7  ;;  %v5893_v7 = vld [vmem:[#allocation11 + $0x8] sm:$0xff] }
 0x396   : > { %v3807_v10 = vadd.f32 %v7042_v49, %v3718_v41  ;;  %v7183_v49 = vpop.f32.mrf.mxu2  ;;  %v7186_v41 = vpop.f32.mrf.mxu1 }
 0x397   : > { %4328 = vmatpush.bf16.msrb.mxu2 %v5895_v58 }
 0x398   : > { %v3896_v27 = vadd.f32 %v7123_v33, %v3807_v10 }
 0x39a   : > { %v3969_v53 = vmax.f32 %v3896_v27, 0.0  ;;  %v5894_v27 = vld [vmem:[#allocation11 + $0x10] sm:$0xff] }
 0x39b   : > { %v7176_v38 = vld [vmem:[#allocation4 + $0x10] ss:$2 sm:$0xff]  ;;  %v7178_v0 = vld [vmem:[#allocation4 + $0x11] ss:$2 sm:$0xff]  ;;  %v3719_v62 = vpop.f32.mrf.mxu3  ;;  %4329 = vmatpush.bf16.msrb.mxu2 %v5894_v27  ;;  %v5892_v27 = vld [vmem:[#allocation11] sm:$0xff] }
 0x39c   : > { %4158 = vst [vmem:[#allocation4 + $0x10] sm:$0xff] %v4126_v28  ;;  %v3720_v18 = vadd.f32 %v3719_v62, %v6996_v16  ;;  %v5904_v62 = vld [vmem:[#allocation13 + $0x20] sm:$0xff] }
 0x39d   : > { %4159 = vst [vmem:[#allocation4 + $0x18] sm:$0xff] %v4127_v44  ;;  %4428 = vmatpush.bf16.msrb.mxu3 %v5904_v62 }
 0x39e   : > { %4001 = vst [vmem:[#allocation4 + $0x20] sm:$0xff] %v3969_v53  ;;  %v3809_v33 = vadd.f32 %v7049_v54, %v3720_v18  ;;  %v7192_v54 = vpop.f32.mrf.mxu0  ;;  %v7194_v35 = vpop.f32.mrf.mxu2 }
 0x39f   : > { %v7197_v26 = vpop.f32.mrf.mxu1  ;;  %4330 = vmatpush.bf16.msrb.mxu2 %v5893_v7 }
 0x3a0   : > { %v3898_v10 = vadd.f32 %v7131_v8, %v3809_v33  ;;  %3761 = vmatmul.bf16.gmra.mxu3 %v5141_v13  ;;  %v4128_v8 = vunpack.c.l.bf16 %v423_v14  ;;  %v4129_v33 = vunpack.c.h.bf16 %v423_v14  ;;  %v7527_v13 = vld [vmem:[#allocation19_spill] sm:$0xff] }
 0x3a2   : > { %v3970_v28 = vmax.f32 %v3898_v10, 0.0  ;;  %v5176_v10 = vld [vmem:[#allocation3 + $0x378] sm:$0xf] }
 0x3a3   : > { %v3722_v16 = vpop.f32.mrf.mxu3  ;;  %4331 = vmatpush.bf16.msrb.mxu2 %v5892_v27 }
 0x3a4   : > { %4002 = vst [vmem:[#allocation4 + $0x28] sm:$0xff] %v3970_v28  ;;  %v3723_v44 = vadd.f32 %v3722_v16, %v7003_v5  ;;  %v3461_v5 = vadd.f32 %v7527_v13, %v7012_v55  ;;  %v5791_v28 = vld [vmem:[#allocation3 + $0x398] sm:$0xf0] }
 0x3a6   : > { %v3812_v53 = vadd.f32 %v7134_v60, %v3723_v44 }
 0x3a8   : > { %v3901_v18 = vadd.f32 %v7137_v34, %v3812_v53  ;;  %v3550_v34 = vadd.f32 %v7528_v22, %v3461_v5  ;;  %v5177_v53 = vor.u32 %v5791_v28, %v5176_v10  ;;  %v7212_v22 = vpop.f32.mrf.mxu1  ;;  %v7530_v10 = vld [vmem:[#allocation38_spill] sm:$0xff] }
 0x3aa   : > { %v3971_v58 = vmax.f32 %v3901_v18, 0.0  ;;  %v7205_v18 = vpop.f32.mrf.mxu0  ;;  %v3639_v7 = vadd.f32 %v7144_v3, %v3550_v34  ;;  %v4093_v3 = vadd.f32 %v7178_v0, %v7176_v38  ;;  %v7531_v34 = vld [vmem:[#allocation21_spill] sm:$0xff] }
 0x3ab   : > { %v4033_v60 = vld [vmem:[#allocation4 + $0x20] ss:$2 sm:$0xff]  ;;  %v4065_v16 = vld [vmem:[#allocation4 + $0x21] ss:$2 sm:$0xff]  ;;  %v3724_v44 = vpop.f32.mrf.mxu3 }
 0x3ac   : > { %4160 = vst [vmem:[#allocation4 + $0x20] sm:$0xff] %v4128_v8  ;;  %v3725_v62 = vadd.f32 %v3724_v44, %v7014_v17  ;;  %v7529_v8 = vld [vmem:[#allocation20_spill] sm:$0xff]  ;;  %v7210_v17 = vpop.f32.mrf.mxu2  ;;  %v4094_v0 = vadd.f32 %v4065_v16, %v4033_v60  ;;  %v7533_v60 = vld [vmem:[#allocation22_spill] sm:$0xff] }
 0x3ad   : > { %4161 = vst [vmem:[#allocation4 + $0x28] sm:$0xff] %v4129_v33  ;;  %v3463_v13 = vadd.f32 %v7529_v8, %v7021_v48  ;;  %v3468_v16 = vadd.f32 %v7533_v60, %v7031_v61 }
 0x3ae   : > { %4003 = vst [vmem:[#allocation4 + $0x30] sm:$0xff] %v3971_v58  ;;  %v3814_v14 = vadd.f32 %v7142_v50, %v3725_v62  ;;  %v425_v58 = vld [vmem:[%s6442_s25 + $0x18] sm:$0xff]  }
 0x3af   : > { %v3552_v28 = vadd.f32 %v7530_v10, %v3463_v13  ;;  %v4130_v44 = vunpack.c.l.bf16 %v425_v58  ;;  %v4131_v48 = vunpack.c.h.bf16 %v425_v58 }
 0x3b0   : > { %v3903_v55 = vadd.f32 %v7147_v12, %v3814_v14  ;;  %3766 = vmatmul.bf16.gmra.mxu3 %v5177_v53  ;;  %v3466_v14 = vadd.f32 %v7531_v34, %v7026_v32  ;;  %v7229_v58 = vpop.f32.mrf.mxu1  ;;  %v7532_v32 = vld [vmem:[#allocation41_spill] sm:$0xff] }
 0x3b1   : > { %v3641_v62 = vadd.f32 %v7155_v52, %v3552_v28 }
 0x3b2   : > { %v3972_v33 = vmax.f32 %v3903_v55, 0.0  ;;  %v5212_v55 = vld [vmem:[#allocation3 + $0x3c0] sm:$0xf]  ;;  %v7225_v8 = vpop.f32.mrf.mxu0  ;;  %v3555_v10 = vadd.f32 %v7532_v32, %v3466_v14 }
 0x3b3   : > { %v3727_v5 = vpop.f32.mrf.mxu3 }
 0x3b4   : > { %4004 = vst [vmem:[#allocation4 + $0x38] sm:$0xff] %v3972_v33  ;;  %v3728_v50 = vadd.f32 %v3727_v5, %v3639_v7  ;;  %v4092_v7 = vadd.f32 %v7161_v37, %v7159_v2  ;;  %v7227_v5 = vpop.f32.mrf.mxu2 }
 0x3b6   : > { %v3817_v12 = vadd.f32 %v7153_v25, %v3728_v50  ;;  %v4108_v50 = vadd.f32 %v4093_v3, %v4092_v7  ;;  %v1526_v7 = vld [vmem:[#allocation2 + $0x199] sm:$0xff] }
 0x3b8   : > { %v3906_v27 = vadd.f32 %v7157_v45, %v3817_v12  ;;  %v5800_v45 = vld [vmem:[#allocation3 + $0x3e0] sm:$0xf0]  ;;  %v7243_v32 = vpop.f32.mrf.mxu1 }
 0x3b9   : > { %v5213_v37 = vor.u32 %v5800_v45, %v5212_v55  ;;  %v1622_v45 = vld [vmem:[#allocation2 + $0x19a] sm:$0xff] }
 0x3ba   : > { %v3973_v53 = vmax.f32 %v3906_v27, 0.0  ;;  %v4116_v27 = vmul.f32 0.25, %v4108_v50  ;;  %v1654_v50 = vpack.c.bf16 %v1622_v45, %v1622_v45 }
 0x3bb   : > { %v4035_v25 = vld [vmem:[#allocation4 + $0x30] ss:$2 sm:$0xff]  ;;  %v4067_v13 = vld [vmem:[#allocation4 + $0x31] ss:$2 sm:$0xff]  ;;  %v3729_v33 = vpop.f32.mrf.mxu3 }
 0x3bc   : > { %4162 = vst [vmem:[#allocation4 + $0x30] sm:$0xff] %v4130_v44  ;;  %v3730_v38 = vadd.f32 %v3729_v33, %v3641_v62  ;;  %v4095_v52 = vadd.f32 %v4067_v13, %v4035_v25  ;;  %v3644_v44 = vadd.f32 %v7168_v42, %v3555_v10  ;;  %v1527_v25 = vld [vmem:[#allocation2 + $0x1a1] sm:$0xff]  ;;  %v1558_v13 = vpack.c.bf16 %v1526_v7, %v1526_v7  ;;  %v7240_v61 = vpop.f32.mrf.mxu2 }
 0x3bd   : > { %4163 = vst [vmem:[#allocation4 + $0x38] sm:$0xff] %v4131_v48  ;;  %v1559_v33 = vpack.c.bf16 %v1527_v25, %v1527_v25  ;;  %v1623_v42 = vld [vmem:[#allocation2 + $0x1a2] sm:$0xff] }
 0x3be   : > { %4005 = vst [vmem:[#allocation4 + $0x40] sm:$0xff] %v3973_v53  ;;  %v3819_v2 = vadd.f32 %v7166_v11, %v3730_v38  ;;  %v4109_v28 = vadd.f32 %v4095_v52, %v4094_v0  ;;  %v5903_v53 = vld [vmem:[#allocation13 + $0x18] sm:$0xff]  ;;  %v6022_v11 = vld [vmem:[#allocation2] sm:$0xff]  ;;  %v7534_v38 = vld [vmem:[#allocation43_spill] sm:$0xff]  ;;  %v1655_v10 = vpack.c.bf16 %v1623_v42, %v1623_v42 }
 0x3bf   : > { %v1462_v55 = vpack.c.bf16 %v6022_v11, %v6022_v11  ;;  %v3557_v0 = vadd.f32 %v7534_v38, %v3468_v16  ;;  %4429 = vmatpush.bf16.msrb.mxu3 %v5903_v53  ;;  %1590 = vst [vmem:[#allocation3 + $0x454] sm:$0xf] %v1558_v13  ;;  %v5902_v16 = vld [vmem:[#allocation13 + $0x10] sm:$0xff] }
 0x3c0   : > { %v3908_v12 = vadd.f32 %v7171_v19, %v3819_v2  ;;  %3771 = vmatmul.bf16.gmra.mxu3 %v5213_v37  ;;  %v4117_v34 = vmul.f32 0.25, %v4109_v28  ;;  %v7237_v19 = vpop.f32.mrf.mxu0  ;;  %1591 = vst [vmem:[#allocation3 + $0x478] sm:$0xf] %v1559_v33  ;;  %v7535_v28 = vld [vmem:[#allocation23_spill] sm:$0xff] }
 0x3c1   : > { %1494 = vst [vmem:[#allocation3 + $0x450] sm:$0xf] %v1462_v55  ;;  %v3646_v37 = vadd.f32 %v7183_v49, %v3557_v0 }
 0x3c2   : > { %v3974_v3 = vmax.f32 %v3908_v12, 0.0  ;;  %v4252_v62 = vpack.c.bf16 %v4117_v34, %v4116_v27  ;;  %1495 = vst [vmem:[#allocation3 + $0x474] sm:$0xf] %v1462_v55  ;;  %v3471_v12 = vadd.f32 %v7535_v28, %v7038_v15  ;;  %v7256_v55 = vpop.f32.mrf.mxu1  ;;  %v7537_v28 = vld [vmem:[#allocation25_spill] sm:$0xff] }
 0x3c3   : > { %v3732_v48 = vpop.f32.mrf.mxu3  ;;  %1686 = vst [vmem:[#allocation3 + $0x458] sm:$0xf] %v1654_v50  ;;  %4430 = vmatpush.bf16.msrb.mxu3 %v5902_v16 }
 0x3c4   : > { %4006 = vst [vmem:[#allocation4 + $0x48] sm:$0xff] %v3974_v3  ;;  %v3733_v14 = vadd.f32 %v3732_v48, %v3644_v44  ;;  %4332 = vmatmul.bf16.vlgmr.msrb.gmra.mxu2 %v4252_v62  ;;  %v5809_v44 = vld [vmem:[#allocation3 + $0x428] sm:$0xf0]  ;;  %v3560_v3 = vadd.f32 %v6943_v4, %v3471_v12  ;;  %v7253_v15 = vpop.f32.mrf.mxu2  ;;  %v3476_v12 = vadd.f32 %v7537_v28, %v7052_v63 }
 0x3c5   : > { %1687 = vst [vmem:[#allocation3 + $0x47c] sm:$0xf] %v1655_v10  ;;  %v5901_v48 = vld [vmem:[#allocation13 + $0x8] sm:$0xff] }
 0x3c6   : > { %v3822_v52 = vadd.f32 %v7181_v57, %v3733_v14  ;;  %v5248_v57 = vld [vmem:[#allocation3 + $0x408] sm:$0xf]  ;;  %v5814_v14 = vld [vmem:[#allocation3 + $0x454] sm:$0xf]  ;;  %v3649_v4 = vadd.f32 %v7194_v35, %v3560_v3 }
 0x3c7   : > { %v5249_v62 = vor.u32 %v5809_v44, %v5248_v57  ;;  %v5286_v11 = vld [vmem:[#allocation3 + $0x474] sm:$0xf0]  ;;  %4431 = vmatpush.bf16.msrb.mxu3 %v5901_v48  ;;  %v4188_v44 = vld [vmem:[#allocation4] ss:$2 sm:$0xff]  ;;  %v4206_v48 = vld [vmem:[#allocation4 + $0x21] ss:$2 sm:$0xff] }
 0x3c8   : > { %v3911_v2 = vadd.f32 %v7186_v41, %v3822_v52  ;;  %v7251_v49 = vpop.f32.mrf.mxu0  ;;  %v5289_v7 = vor.u32 %v5814_v14, %v5286_v11  ;;  %v4191_v3 = vld [vmem:[#allocation4 + $0x30] ss:$2 sm:$0xff]  ;;  %v3565_v14 = vadd.f32 %v6965_v29, %v3476_v12 }
 0x3ca   : > { %v3975_v27 = vmax.f32 %v3911_v2, 0.0  ;;  %v5292_v25 = vld [vmem:[#allocation3 + $0x458] sm:$0xf]  ;;  %3870 = vmatmul.bf16.gmra.mxu0 %v5289_v7  ;;  %v5818_v2 = vld [vmem:[#allocation3 + $0x470] sm:$0xf0]  ;;  %v7271_v57 = vpop.f32.mrf.mxu1 }
 0x3cb   : > { %v3734_v34 = vpop.f32.mrf.mxu3 }
 0x3cc   : > { %4007 = vst [vmem:[#allocation4 + $0x50] sm:$0xff] %v3975_v27  ;;  %v3735_v60 = vadd.f32 %v3734_v34, %v3646_v37  ;;  %v5819_v45 = vld [vmem:[#allocation3 + $0x478] sm:$0xf0]  ;;  %v7269_v27 = vpop.f32.mrf.mxu2 }
 0x3cd   : > { %v5293_v38 = vor.u32 %v5819_v45, %v5292_v25 }
 0x3ce   : > { %v3824_v41 = vadd.f32 %v7192_v54, %v3735_v60  ;;  %v7536_v54 = vld [vmem:[#allocation24_spill] sm:$0xff] }
 0x3cf   : > { %v3473_v13 = vadd.f32 %v7536_v54, %v7045_v6  ;;  %3959 = vmatmul.bf16.gmra.mxu1 %v5293_v38  ;;  %v5284_v6 = vld [vmem:[#allocation3 + $0x450] sm:$0xf]  ;;  %v4190_v60 = vld [vmem:[#allocation4 + $0x20] ss:$2 sm:$0xff]  ;;  %v3654_v54 = vadd.f32 %v7227_v5, %v3565_v14 }
 0x3d0   : > { %v3913_v53 = vadd.f32 %v7197_v26, %v3824_v41  ;;  %3776 = vmatmul.bf16.gmra.mxu3 %v5249_v62  ;;  %v5900_v26 = vld [vmem:[#allocation13] sm:$0xff]  ;;  %v7264_v10 = vpop.f32.mrf.mxu0  ;;  %v5285_v16 = vor.u32 %v5818_v2, %v5284_v6  ;;  %v4205_v62 = vld [vmem:[#allocation4 + $0x11] ss:$2 sm:$0xff]  ;;  %v4222_v25 = vadd.f32 %v4206_v48, %v4190_v60 }
 0x3d1   : > { %v3562_v52 = vadd.f32 %v6955_v47, %v3473_v13  ;;  %4432 = vmatpush.bf16.msrb.mxu3 %v5900_v26  ;;  %v4204_v41 = vld [vmem:[#allocation4 + $0x1] ss:$2 sm:$0xff]  ;;  %v7538_v13 = vld [vmem:[#allocation26_spill] sm:$0xff]  ;;  %v431_v60 = vld [vmem:[%s6442_s25 + $0x30] sm:$0xff]  }
 0x3d2   : > { %v3976_v33 = vmax.f32 %v3913_v53, 0.0  ;;  %v4220_v53 = vadd.f32 %v4204_v41, %v4188_v44  ;;  %v7283_v26 = vpop.f32.mrf.mxu1  ;;  %v7539_v2 = vld [vmem:[#allocation27_spill] sm:$0xff] }
 0x3d3   : > { %v3737_v42 = vpop.f32.mrf.mxu3  ;;  %v3651_v37 = vadd.f32 %v7210_v17, %v3562_v52  ;;  %v4207_v17 = vld [vmem:[#allocation4 + $0x31] ss:$2 sm:$0xff]  ;;  %v427_v44 = vld [vmem:[%s6442_s25 + $0x20] sm:$0xff]  }
 0x3d4   : > { %4008 = vst [vmem:[#allocation4 + $0x58] sm:$0xff] %v3976_v33  ;;  %v3738_v0 = vadd.f32 %v3737_v42, %v3649_v4  ;;  %v4223_v4 = vadd.f32 %v4207_v17, %v4191_v3  ;;  %v3478_v33 = vadd.f32 %v7538_v13, %v7057_v36  ;;  %v4069_v41 = vld [vmem:[#allocation4 + $0x41] ss:$2 sm:$0xff]  ;;  %v4136_v17 = vunpack.c.l.bf16 %v431_v60 }
 0x3d6   : > { %v3827_v50 = vadd.f32 %v7205_v18, %v3738_v0  ;;  %v4189_v18 = vld [vmem:[#allocation4 + $0x10] ss:$2 sm:$0xff]  ;;  %v7281_v0 = vpop.f32.mrf.mxu2  ;;  %v3567_v5 = vadd.f32 %v6974_v51, %v3478_v33 }
 0x3d7   : > { %v4221_v7 = vadd.f32 %v4205_v62, %v4189_v18  ;;  %v429_v18 = vld [vmem:[%s6442_s25 + $0x28] sm:$0xff]  }
 0x3d8   : > { %v3916_v35 = vadd.f32 %v7212_v22, %v3827_v50  ;;  %v7279_v42 = vpop.f32.mrf.mxu0  ;;  %v3656_v6 = vadd.f32 %v7240_v61, %v3567_v5  ;;  %v4135_v62 = vunpack.c.h.bf16 %v429_v18 }
 0x3da   : > { %v3977_v34 = vmax.f32 %v3916_v35, 0.0  ;;  %v7300_v48 = vpop.f32.mrf.mxu1 }
 0x3db   : > { %v3739_v47 = vpop.f32.mrf.mxu3 }
 0x3dc   : > { %4009 = vst [vmem:[#allocation4 + $0x60] sm:$0xff] %v3977_v34  ;;  %v3740_v22 = vadd.f32 %v3739_v47, %v3651_v37  ;;  %v3481_v37 = vadd.f32 %v7539_v2, %v7060_v59  ;;  %v4037_v59 = vld [vmem:[#allocation4 + $0x40] ss:$2 sm:$0xff] }
 0x3dd   : > { %v4096_v5 = vadd.f32 %v4069_v41, %v4037_v59 }
 0x3de   : > { %v3829_v63 = vadd.f32 %v7225_v8, %v3740_v22  ;;  %v4236_v8 = vadd.f32 %v4221_v7, %v4220_v53  ;;  %v4133_v22 = vunpack.c.h.bf16 %v427_v44  ;;  %v7297_v3 = vpop.f32.mrf.mxu2  ;;  %v4071_v53 = vld [vmem:[#allocation4 + $0x51] ss:$2 sm:$0xff] }
 0x3e0   : > { %v3918_v11 = vadd.f32 %v7229_v58, %v3829_v63  ;;  %3781 = vmatmul.bf16.gmra.mxu3 %v5285_v16  ;;  %v4237_v58 = vadd.f32 %v4223_v4, %v4222_v25  ;;  %v4244_v50 = vmul.f32 0.25, %v4236_v8  ;;  %v7294_v51 = vpop.f32.mrf.mxu0  ;;  %v3570_v16 = vadd.f32 %v6984_v31, %v3481_v37  ;;  %v4039_v63 = vld [vmem:[#allocation4 + $0x50] ss:$2 sm:$0xff]  ;;  %4165 = vst [vmem:[#allocation4 + $0x48] sm:$0xff] %v4133_v22 }
 0x3e1   : > { %4167 = vst [vmem:[#allocation4 + $0x58] sm:$0xff] %v4135_v62 }
 0x3e2   : > { %v3978_v45 = vmax.f32 %v3918_v11, 0.0  ;;  %v4245_v35 = vmul.f32 0.25, %v4237_v58  ;;  %v4137_v11 = vunpack.c.h.bf16 %v431_v60  ;;  %v3659_v31 = vadd.f32 %v7253_v15, %v3570_v16  ;;  %v7314_v58 = vpop.f32.mrf.mxu1 }
 0x3e3   : > { %v3742_v38 = vpop.f32.mrf.mxu3  ;;  %v4097_v15 = vadd.f32 %v4071_v53, %v4039_v63  ;;  %v7542_v63 = vld [vmem:[#allocation30_spill] sm:$0xff] }
 0x3e4   : > { %4010 = vst [vmem:[#allocation4 + $0x68] sm:$0xff] %v3978_v45  ;;  %v3743_v29 = vadd.f32 %v3742_v38, %v3654_v54  ;;  %v4353_v47 = vpack.c.bf16 %v4245_v35, %v4244_v50  ;;  %v433_v38 = vld [vmem:[%s6442_s25 + $0x38] sm:$0xff]   ;;  %v7541_v50 = vld [vmem:[#allocation29_spill] sm:$0xff]  ;;  %v3488_v53 = vadd.f32 %v7542_v63, %v7075_v1  ;;  %v7548_v63 = vld [vmem:[#allocation51_spill] sm:$0xff] }
 0x3e5   : > { %v3486_v35 = vadd.f32 %v7541_v50, %v7070_v39 }
 0x3e6   : > { %v3832_v52 = vadd.f32 %v7237_v19, %v3743_v29  ;;  %v4132_v19 = vunpack.c.l.bf16 %v427_v44  ;;  %v7311_v8 = vpop.f32.mrf.mxu2 }
 0x3e8   : > { %v3921_v36 = vadd.f32 %v7243_v32, %v3832_v52  ;;  %v4134_v32 = vunpack.c.l.bf16 %v429_v18  ;;  %4164 = vst [vmem:[#allocation4 + $0x40] sm:$0xff] %v4132_v19  ;;  %v7309_v29 = vpop.f32.mrf.mxu0  ;;  %v4138_v52 = vunpack.c.l.bf16 %v433_v38 }
 0x3ea   : > { %v3979_v28 = vmax.f32 %v3921_v36, 0.0  ;;  %4166 = vst [vmem:[#allocation4 + $0x50] sm:$0xff] %v4134_v32 }
 0x3eb   : > { %v3744_v12 = vpop.f32.mrf.mxu3  ;;  %v4041_v4 = vld [vmem:[#allocation4 + $0x60] ss:$2 sm:$0xff]  ;;  %v4073_v54 = vld [vmem:[#allocation4 + $0x61] ss:$2 sm:$0xff] }
 0x3ec   : > { %4011 = vst [vmem:[#allocation4 + $0x70] sm:$0xff] %v3979_v28  ;;  %v3745_v34 = vadd.f32 %v3744_v12, %v3656_v6  ;;  %v4139_v6 = vunpack.c.h.bf16 %v433_v38  ;;  %v4110_v28 = vadd.f32 %v4097_v15, %v4096_v5  ;;  %v7543_v15 = vld [vmem:[#allocation31_spill] sm:$0xff] }
 0x3ed   : > { %4168 = vst [vmem:[#allocation4 + $0x60] sm:$0xff] %v4136_v17 }
 0x3ee   : > { %v3834_v61 = vadd.f32 %v7251_v49, %v3745_v34  ;;  %v7540_v49 = vld [vmem:[#allocation28_spill] sm:$0xff]  ;;  %4169 = vst [vmem:[#allocation4 + $0x68] sm:$0xff] %v4137_v11  ;;  %v4098_v34 = vadd.f32 %v4073_v54, %v4041_v4  ;;  %v4118_v22 = vmul.f32 0.25, %v4110_v28  ;;  %v3670_v11 = vpop.f32.mrf.mxu2 }
 0x3ef   : > { %v3483_v7 = vadd.f32 %v7540_v49, %v7065_v30  ;;  %v4208_v44 = vld [vmem:[#allocation4 + $0x41] ss:$2 sm:$0xff] }
 0x3f0   : > { %v3923_v14 = vadd.f32 %v7256_v55, %v3834_v61  ;;  %4433 = vmatmul.bf16.vlgmr.msrb.gmra.mxu3 %v4353_v47  ;;  %v3846_v41 = vpop.f32.mrf.mxu0 }
 0x3f1   : > { %v3572_v33 = vadd.f32 %v6994_v46, %v3483_v7  ;;  %v4193_v18 = vld [vmem:[#allocation4 + $0x50] ss:$2 sm:$0xff]  ;;  %v4209_v60 = vld [vmem:[#allocation4 + $0x51] ss:$2 sm:$0xff] }
 0x3f2   : > { %v3980_v25 = vmax.f32 %v3923_v14, 0.0  ;;  %v4225_v59 = vadd.f32 %v4209_v60, %v4193_v18  ;;  %v7545_v60 = vld [vmem:[#allocation33_spill] sm:$0xff] }
 0x3f3   : > { %v3747_v13 = vpop.f32.mrf.mxu3  ;;  %v3661_v36 = vadd.f32 %v7269_v27, %v3572_v33  ;;  %v3575_v27 = vadd.f32 %v7006_v56, %v3486_v35 }
 0x3f4   : > { %4012 = vst [vmem:[#allocation4 + $0x78] sm:$0xff] %v3980_v25  ;;  %v3748_v55 = vadd.f32 %v3747_v13, %v3659_v31  ;;  %v3577_v13 = vadd.f32 %v7016_v21, %v3488_v53 }
 0x3f5   : > { %v4194_v62 = vld [vmem:[#allocation4 + $0x60] ss:$2 sm:$0xff]  ;;  %v4210_v17 = vld [vmem:[#allocation4 + $0x61] ss:$2 sm:$0xff]  ;;  %v3664_v14 = vadd.f32 %v7281_v0, %v3575_v27 }
 0x3f6   : > { %v3837_v45 = vadd.f32 %v7264_v10, %v3748_v55  ;;  %v3666_v38 = vadd.f32 %v7297_v3, %v3577_v13  ;;  %v3673_v35 = vpop.f32.mrf.mxu2 }
 0x3f8   : > { %v3926_v30 = vadd.f32 %v7271_v57, %v3837_v45  ;;  %v4192_v57 = vld [vmem:[#allocation4 + $0x40] ss:$2 sm:$0xff] }
 0x3f9   : > { %v4224_v61 = vadd.f32 %v4208_v44, %v4192_v57 }
 0x3fa   : > { %v3981_v46 = vmax.f32 %v3926_v30, 0.0  ;;  %v3491_v30 = vadd.f32 %v7543_v15, %v7080_v43  ;;  %v7544_v43 = vld [vmem:[#allocation32_spill] sm:$0xff] }
 0x3fb   : > { %v3749_v10 = vpop.f32.mrf.mxu3  ;;  %v4043_v2 = vld [vmem:[#allocation4 + $0x70] ss:$2 sm:$0xff]  ;;  %v4075_v37 = vld [vmem:[#allocation4 + $0x71] ss:$2 sm:$0xff]  ;;  %v4238_v25 = vadd.f32 %v4225_v59, %v4224_v61  ;;  %v7546_v59 = vld [vmem:[#allocation59_spill] sm:$0xff] }
 0x3fc   : > { %4013 = vst [vmem:[#allocation4 + $0x80] sm:$0xff] %v3981_v46  ;;  %v3750_v12 = vadd.f32 %v3749_v10, %v3661_v36  ;;  %v4099_v47 = vadd.f32 %v4075_v37, %v4043_v2  ;;  %v3848_v36 = vpop.f32.mrf.mxu0  ;;  %v3493_v2 = vadd.f32 %v7544_v43, %v7083_v20  ;;  %v7551_v15 = vld [vmem:[#allocation52_spill] sm:$0xff] }
 0x3fd   : > { %4170 = vst [vmem:[#allocation4 + $0x70] sm:$0xff] %v4138_v52  ;;  %v4246_v45 = vmul.f32 0.25, %v4238_v25 }
 0x3fe   : > { %v3839_v19 = vadd.f32 %v7279_v42, %v3750_v12  ;;  %v4111_v39 = vadd.f32 %v4099_v47, %v4098_v34  ;;  %4171 = vst [vmem:[#allocation4 + $0x78] sm:$0xff] %v4139_v6  ;;  %v3935_v42 = vpop.f32.mrf.mxu1  ;;  %v3582_v47 = vadd.f32 %v7033_v23, %v3493_v2  ;;  %v3675_v57 = vpop.f32.mrf.mxu2 }
 0x400   : > { %v3928_v32 = vadd.f32 %v7283_v26, %v3839_v19  ;;  %v4119_v16 = vmul.f32 0.25, %v4111_v39  ;;  %v4226_v26 = vadd.f32 %v4210_v17, %v4194_v62 }
 0x402   : > { %v3982_v56 = vmax.f32 %v3928_v32, 0.0  ;;  %v4253_v31 = vpack.c.bf16 %v4119_v16, %v4118_v22 }
 0x403   : > { %v3752_v49 = vpop.f32.mrf.mxu3 }
 0x404   : > { %4014 = vst [vmem:[#allocation4 + $0x88] sm:$0xff] %v3982_v56  ;;  %v3753_v7 = vadd.f32 %v3752_v49, %v3664_v14  ;;  %4337 = vmatmul.bf16.gmra.mxu2 %v4253_v31  ;;  %v3851_v34 = vpop.f32.mrf.mxu0  ;;  %v7550_v49 = vld [vmem:[#allocation40_spill] sm:$0xff] }
 0x405   : > { %v4195_v4 = vld [vmem:[#allocation4 + $0x70] ss:$2 sm:$0xff]  ;;  %v4211_v54 = vld [vmem:[#allocation4 + $0x71] ss:$2 sm:$0xff] }
 0x406   : > { %v3842_v55 = vadd.f32 %v7294_v51, %v3753_v7  ;;  %v4227_v0 = vadd.f32 %v4211_v54, %v4195_v4  ;;  %v3937_v6 = vpop.f32.mrf.mxu1  ;;  %v3580_v51 = vadd.f32 %v7023_v9, %v3491_v30  ;;  %v3678_v32 = vpop.f32.mrf.mxu2 }
 0x408   : > { %v3931_v33 = vadd.f32 %v7300_v48, %v3842_v55  ;;  %v4239_v1 = vadd.f32 %v4227_v0, %v4226_v26  ;;  %v3669_v3 = vadd.f32 %v7311_v8, %v3580_v51  ;;  %v435_v55 = vld [vmem:[%s6442_s25 + $0x40] sm:$0xff]   ;;  %v437_v0 = vld [vmem:[%s6442_s25 + $0x48] sm:$0xff]  }
 0x40a   : > { %v3983_v5 = vmax.f32 %v3931_v33, 0.0  ;;  %v4247_v52 = vmul.f32 0.25, %v4239_v1  ;;  %v439_v33 = vld [vmem:[%s6442_s25 + $0x50] sm:$0xff]   ;;  %v4140_v1 = vunpack.c.l.bf16 %v435_v55 }
 0x40b   : > { %v3754_v50 = vpop.f32.mrf.mxu3  ;;  %v4145_v51 = vunpack.c.h.bf16 %v439_v33 }
 0x40c   : > { %4015 = vst [vmem:[#allocation4 + $0x90] sm:$0xff] %v3983_v5  ;;  %v3755_v46 = vadd.f32 %v3754_v50, %v3666_v38  ;;  %v4354_v21 = vpack.c.bf16 %v4247_v52, %v4246_v45  ;;  %v3853_v22 = vpop.f32.mrf.mxu0  ;;  %v4141_v45 = vunpack.c.h.bf16 %v435_v55  ;;  %v4142_v38 = vunpack.c.l.bf16 %v437_v0  ;;  %v4045_v52 = vld [vmem:[#allocation4 + $0x80] ss:$2 sm:$0xff] }
 0x40d   : > { %v4143_v50 = vunpack.c.h.bf16 %v437_v0 }
 0x40e   : > { %v3844_v48 = vadd.f32 %v7309_v29, %v3755_v46  ;;  %4438 = vmatmul.bf16.gmra.mxu3 %v4354_v21  ;;  %v3940_v9 = vpop.f32.mrf.mxu1  ;;  %v3671_v29 = vadd.f32 %v3670_v11, %v3582_v47  ;;  %v3680_v26 = vpop.f32.mrf.mxu2 }
 0x410   : > { %v3933_v10 = vadd.f32 %v7314_v58, %v3844_v48  ;;  %v3496_v58 = vadd.f32 %v7545_v60, %v7088_v24  ;;  %v441_v60 = vld [vmem:[%s6442_s25 + $0x58] sm:$0xff]  }
 0x412   : > { %v3984_v37 = vmax.f32 %v3933_v10, 0.0  ;;  %v3585_v20 = vadd.f32 %v7040_v40, %v3496_v58  ;;  %v7552_v10 = vld [vmem:[#allocation62_spill] sm:$0xff] }
 0x413   : > { %v3757_v28 = vpop.f32.mrf.mxu3 }
 0x414   : > { %4016 = vst [vmem:[#allocation4 + $0x98] sm:$0xff] %v3984_v37  ;;  %v3758_v12 = vadd.f32 %v3757_v28, %v3669_v3  ;;  %v3674_v23 = vadd.f32 %v3673_v35, %v3585_v20  ;;  %v3856_v56 = vpop.f32.mrf.mxu0  ;;  %v4144_v35 = vunpack.c.l.bf16 %v439_v33  ;;  %v7553_v3 = vld [vmem:[#allocation42_spill] sm:$0xff] }
 0x415   : > { %v3503_v43 = vadd.f32 %v7553_v3, %v7552_v10 }
 0x416   : > { %v3847_v44 = vadd.f32 %v3846_v41, %v3758_v12  ;;  %v3942_v61 = vpop.f32.mrf.mxu1  ;;  %v7547_v41 = vld [vmem:[#allocation37_spill] sm:$0xff]  ;;  %v3683_v47 = vpop.f32.mrf.mxu2 }
 0x417   : > { %v3498_v62 = vadd.f32 %v7547_v41, %v7546_v59 }
 0x418   : > { %v3936_v18 = vadd.f32 %v3935_v42, %v3847_v44  ;;  %v7549_v42 = vld [vmem:[#allocation61_spill] sm:$0xff] }
 0x419   : > { %v3587_v53 = vadd.f32 %v7548_v63, %v3498_v62  ;;  %v3501_v7 = vadd.f32 %v7550_v49, %v7549_v42 }
 0x41a   : > { %v3985_v27 = vmax.f32 %v3936_v18, 0.0 }
 0x41b   : > { %v3759_v8 = vpop.f32.mrf.mxu3  ;;  %v3676_v31 = vadd.f32 %v3675_v57, %v3587_v53  ;;  %v3590_v30 = vadd.f32 %v7551_v15, %v3501_v7  ;;  %v4047_v21 = vld [vmem:[#allocation4 + $0x90] ss:$2 sm:$0xff] }
 0x41c   : > { %4017 = vst [vmem:[#allocation4 + $0xa0] sm:$0xff] %v3985_v27  ;;  %v3760_v19 = vadd.f32 %v3759_v8, %v3671_v29  ;;  %v3858_v12 = vpop.f32.mrf.mxu0  ;;  %v7559_v15 = vld [vmem:[#allocation46_spill] sm:$0xff] }
 0x41d   : > { %v3679_v48 = vadd.f32 %v3678_v32, %v3590_v30 }
 0x41e   : > { %v3849_v39 = vadd.f32 %v3848_v36, %v3760_v19  ;;  %v3945_v4 = vpop.f32.mrf.mxu1  ;;  %v4077_v36 = vld [vmem:[#allocation4 + $0x81] ss:$2 sm:$0xff]  ;;  %v4146_v19 = vunpack.c.l.bf16 %v441_v60  ;;  %v3685_v49 = vpop.f32.mrf.mxu2 }
 0x41f   : > { %4172 = vst [vmem:[#allocation4 + $0x80] sm:$0xff] %v4140_v1  ;;  %v4100_v8 = vadd.f32 %v4077_v36, %v4045_v52 }
 0x420   : > { %v3938_v16 = vadd.f32 %v3937_v6, %v3849_v39  ;;  %v4079_v6 = vld [vmem:[#allocation4 + $0x91] ss:$2 sm:$0xff]  ;;  %4173 = vst [vmem:[#allocation4 + $0x88] sm:$0xff] %v4141_v45 }
 0x421   : > { %4174 = vst [vmem:[#allocation4 + $0x90] sm:$0xff] %v4142_v38  ;;  %v4101_v58 = vadd.f32 %v4079_v6, %v4047_v21  ;;  %v7555_v39 = vld [vmem:[#allocation34_spill] sm:$0xff]  ;;  %v7558_v38 = vld [vmem:[#allocation36_spill] sm:$0xff] }
 0x422   : > { %v3986_v17 = vmax.f32 %v3938_v16, 0.0  ;;  %4175 = vst [vmem:[#allocation4 + $0x98] sm:$0xff] %v4143_v50  ;;  %v3508_v30 = vadd.f32 %v7559_v15, %v7558_v38  ;;  %v7571_v38 = vld [vmem:[#allocation50_spill] sm:$0xff] }
 0x423   : > { %v3762_v14 = vpop.f32.mrf.mxu3  ;;  %v4112_v62 = vadd.f32 %v4101_v58, %v4100_v8  ;;  %v7563_v8 = vld [vmem:[#allocation56_spill] sm:$0xff] }
 0x424   : > { %4018 = vst [vmem:[#allocation4 + $0xa8] sm:$0xff] %v3986_v17  ;;  %v3763_v24 = vadd.f32 %v3762_v14, %v3674_v23 }
 0x426   : > { %v3852_v11 = vadd.f32 %v3851_v34, %v3763_v24  ;;  %v3947_v44 = vpop.f32.mrf.mxu1 }
 0x427   : > { %v4196_v63 = vld [vmem:[#allocation4 + $0x80] ss:$2 sm:$0xff]  ;;  %v4212_v53 = vld [vmem:[#allocation4 + $0x81] ss:$2 sm:$0xff] }
 0x428   : > { %v3941_v40 = vadd.f32 %v3940_v9, %v3852_v11  ;;  %v7554_v9 = vld [vmem:[#allocation53_spill] sm:$0xff]  ;;  %v3861_v11 = vpop.f32.mrf.mxu0  ;;  %v4228_v55 = vadd.f32 %v4212_v53, %v4196_v63 }
 0x429   : > { %v3592_v18 = vadd.f32 %v7554_v9, %v3503_v43 }
 0x42a   : > { %v3987_v25 = vmax.f32 %v3941_v40, 0.0  ;;  %v4197_v40 = vld [vmem:[#allocation4 + $0x90] ss:$2 sm:$0xff] }
 0x42b   : > { %v3764_v54 = vpop.f32.mrf.mxu3  ;;  %v4049_v37 = vld [vmem:[#allocation4 + $0xa0] ss:$2 sm:$0xff]  ;;  %v4081_v28 = vld [vmem:[#allocation4 + $0xa1] ss:$2 sm:$0xff]  ;;  %v3681_v20 = vadd.f32 %v3680_v26, %v3592_v18 }
 0x42c   : > { %4019 = vst [vmem:[#allocation4 + $0xb0] sm:$0xff] %v3987_v25  ;;  %v3765_v13 = vadd.f32 %v3764_v54, %v3676_v31  ;;  %v4102_v14 = vadd.f32 %v4081_v28, %v4049_v37  ;;  %v7557_v31 = vld [vmem:[#allocation54_spill] sm:$0xff] }
 0x42d   : > { %4176 = vst [vmem:[#allocation4 + $0xa0] sm:$0xff] %v4144_v35 }
 0x42e   : > { %v3854_v5 = vadd.f32 %v3853_v22, %v3765_v13  ;;  %4177 = vst [vmem:[#allocation4 + $0xa8] sm:$0xff] %v4145_v51  ;;  %v7556_v22 = vld [vmem:[#allocation45_spill] sm:$0xff]  ;;  %v3950_v25 = vpop.f32.mrf.mxu1  ;;  %v7560_v51 = vld [vmem:[#allocation55_spill] sm:$0xff] }
 0x42f   : > { %v3506_v32 = vadd.f32 %v7556_v22, %v7555_v39 }
 0x430   : > { %v3943_v46 = vadd.f32 %v3942_v61, %v3854_v5  ;;  %v4147_v61 = vunpack.c.h.bf16 %v441_v60  ;;  %v3863_v43 = vpop.f32.mrf.mxu0 }
 0x431   : > { %v3595_v42 = vadd.f32 %v7557_v31, %v3506_v32  ;;  %v7568_v31 = vld [vmem:[#allocation49_spill] sm:$0xff] }
 0x432   : > { %v3988_v2 = vmax.f32 %v3943_v46, 0.0 }
 0x433   : > { %v3767_v34 = vpop.f32.mrf.mxu3  ;;  %v3684_v45 = vadd.f32 %v3683_v47, %v3595_v42 }
 0x434   : > { %4020 = vst [vmem:[#allocation4 + $0xb8] sm:$0xff] %v3988_v2  ;;  %v3768_v57 = vadd.f32 %v3767_v34, %v3679_v48  ;;  %v3597_v48 = vadd.f32 %v7560_v51, %v3508_v30  ;;  %v3688_v2 = vpop.f32.mrf.mxu2 }
 0x435   : > { %v4198_v33 = vld [vmem:[#allocation4 + $0xa0] ss:$2 sm:$0xff]  ;;  %v4214_v1 = vld [vmem:[#allocation4 + $0xa1] ss:$2 sm:$0xff] }
 0x436   : > { %v3857_v29 = vadd.f32 %v3856_v56, %v3768_v57  ;;  %v4213_v56 = vld [vmem:[#allocation4 + $0x91] ss:$2 sm:$0xff]  ;;  %v4230_v35 = vadd.f32 %v4214_v1, %v4198_v33  ;;  %v3952_v34 = vpop.f32.mrf.mxu1  ;;  %v3686_v47 = vadd.f32 %v3685_v49, %v3597_v48  ;;  %v7561_v57 = vld [vmem:[#allocation39_spill] sm:$0xff] }
 0x437   : > { %v4229_v0 = vadd.f32 %v4213_v56, %v4197_v40  ;;  %v7567_v56 = vld [vmem:[#allocation44_spill] sm:$0xff] }
 0x438   : > { %v3946_v27 = vadd.f32 %v3945_v4, %v3857_v29  ;;  %v4120_v4 = vmul.f32 0.25, %v4112_v62  ;;  %v3866_v22 = vpop.f32.mrf.mxu0  ;;  %v3516_v42 = vadd.f32 %v7568_v31, %v7567_v56 }
 0x439   : > { %v4240_v46 = vadd.f32 %v4229_v0, %v4228_v55 }
 0x43a   : > { %v3989_v16 = vmax.f32 %v3946_v27, 0.0 }
 0x43b   : > { %v3769_v23 = vpop.f32.mrf.mxu3  ;;  %v4051_v59 = vld [vmem:[#allocation4 + $0xb0] ss:$2 sm:$0xff]  ;;  %v4083_v41 = vld [vmem:[#allocation4 + $0xb1] ss:$2 sm:$0xff] }
 0x43c   : > { %4021 = vst [vmem:[#allocation4 + $0xc0] sm:$0xff] %v3989_v16  ;;  %v3770_v17 = vadd.f32 %v3769_v23, %v3681_v20  ;;  %v4103_v24 = vadd.f32 %v4083_v41, %v4051_v59  ;;  %v7564_v16 = vld [vmem:[#allocation63_spill] sm:$0xff]  ;;  %v3690_v59 = vpop.f32.mrf.mxu2 }
 0x43d   : > { %4178 = vst [vmem:[#allocation4 + $0xb0] sm:$0xff] %v4146_v19 }
 0x43e   : > { %v3859_v7 = vadd.f32 %v3858_v12, %v3770_v17  ;;  %v4113_v26 = vadd.f32 %v4103_v24, %v4102_v14  ;;  %4179 = vst [vmem:[#allocation4 + $0xb8] sm:$0xff] %v4147_v61  ;;  %v4248_v12 = vmul.f32 0.25, %v4240_v46  ;;  %v7565_v61 = vld [vmem:[#allocation48_spill] sm:$0xff]  ;;  %v3955_v62 = vpop.f32.mrf.mxu1  ;;  %v7566_v24 = vld [vmem:[#allocation57_spill] sm:$0xff] }
 0x43f   : > { %v3513_v23 = vadd.f32 %v7565_v61, %v7564_v16  ;;  %v7383_v61 = vld [vmem:[%s7455_s8] ss:$0 sm:$0xff] }
 0x440   : > { %v3948_v54 = vadd.f32 %v3947_v44, %v3859_v7  ;;  %v4121_v13 = vmul.f32 0.25, %v4113_v26  ;;  %v7562_v44 = vld [vmem:[#allocation47_spill] sm:$0xff]  ;;  %v3868_v7 = vpop.f32.mrf.mxu0 }
 0x441   : > { %v3511_v9 = vadd.f32 %v7562_v44, %v7561_v57  ;;  %v3602_v63 = vadd.f32 %v7566_v24, %v3513_v23 }
 0x442   : > { %v3990_v5 = vmax.f32 %v3948_v54, 0.0  ;;  %v4254_v52 = vpack.c.bf16 %v4121_v13, %v4120_v4  ;;  %v7569_v13 = vld [vmem:[#allocation58_spill] sm:$0xff] }
 0x443   : > { %v3772_v36 = vpop.f32.mrf.mxu3  ;;  %v3600_v19 = vadd.f32 %v7563_v8, %v3511_v9  ;;  %v3691_v40 = vadd.f32 %v3690_v59, %v3602_v63  ;;  %v3605_v55 = vadd.f32 %v7569_v13, %v3516_v42 }
 0x444   : > { %4022 = vst [vmem:[#allocation4 + $0xc8] sm:$0xff] %v3990_v5  ;;  %v3773_v50 = vadd.f32 %v3772_v36, %v3684_v45  ;;  %4342 = vmatmul.bf16.gmra.mxu2 %v4254_v52  ;;  %v3693_v4 = vpop.f32.mrf.mxu2  ;;  %v7570_v45 = vld [vmem:[#allocation64_spill] sm:$0xff]  ;;  %v443_v5 = vld [vmem:[%s6442_s25 + $0x60] sm:$0xff]  }
 0x445   : > { %v4199_v21 = vld [vmem:[#allocation4 + $0xb0] ss:$2 sm:$0xff]  ;;  %v4215_v6 = vld [vmem:[#allocation4 + $0xb1] ss:$2 sm:$0xff]  ;;  %v3689_v32 = vadd.f32 %v3688_v2, %v3600_v19  ;;  %v3694_v1 = vadd.f32 %v3693_v4, %v3605_v55  ;;  %v3518_v15 = vadd.f32 %v7571_v38, %v7570_v45  ;;  %v445_v52 = vld [vmem:[%s6442_s25 + $0x68] sm:$0xff]   ;;  %v4149_v46 = vunpack.c.h.bf16 %v443_v5 }
 0x446   : > { %v3862_v10 = vadd.f32 %v3861_v11, %v3773_v50  ;;  %v4231_v3 = vadd.f32 %v4215_v6, %v4199_v21  ;;  %v3957_v54 = vpop.f32.mrf.mxu1  ;;  %v4150_v21 = vunpack.c.l.bf16 %v445_v52 }
 0x448   : > { %v3951_v37 = vadd.f32 %v3950_v25, %v3862_v10  ;;  %v4241_v28 = vadd.f32 %v4231_v3, %v4230_v35  ;;  %v3871_v36 = vpop.f32.mrf.mxu0  ;;  %v4148_v35 = vunpack.c.l.bf16 %v443_v5  ;;  %v4151_v10 = vunpack.c.h.bf16 %v445_v52 }
 0x44a   : > { %v3991_v18 = vmax.f32 %v3951_v37, 0.0  ;;  %v4249_v29 = vmul.f32 0.25, %v4241_v28  ;;  %v447_v28 = vld [vmem:[%s6442_s25 + $0x70] sm:$0xff]  }
 0x44b   : > { %v3774_v60 = vpop.f32.mrf.mxu3  ;;  %v4053_v51 = vld [vmem:[#allocation4 + $0xc0] ss:$2 sm:$0xff]  ;;  %v4085_v48 = vld [vmem:[#allocation4 + $0xc1] ss:$2 sm:$0xff]  ;;  %v4152_v44 = vunpack.c.l.bf16 %v447_v28 }
 0x44c   : > { %4023 = vst [vmem:[#allocation4 + $0xd0] sm:$0xff] %v3991_v18  ;;  %v3775_v58 = vadd.f32 %v3774_v60, %v3686_v47  ;;  %v4355_v27 = vpack.c.bf16 %v4249_v29, %v4248_v12  ;;  %v3695_v47 = vpop.f32.mrf.mxu2  ;;  %v4153_v29 = vunpack.c.h.bf16 %v447_v28 }
 0x44d   : > { %4180 = vst [vmem:[#allocation4 + $0xc0] sm:$0xff] %v4148_v35 }
 0x44e   : > { %v3864_v20 = vadd.f32 %v3863_v43, %v3775_v58  ;;  %4443 = vmatmul.bf16.gmra.mxu3 %v4355_v27  ;;  %v3960_v3 = vpop.f32.mrf.mxu1  ;;  %v7572_v43 = vld [vmem:[#allocation60_spill] sm:$0xff]  ;;  %4181 = vst [vmem:[#allocation4 + $0xc8] sm:$0xff] %v4149_v46 }
 0x44f   : > { %v3607_v2 = vadd.f32 %v7572_v43, %v3518_v15 }
 0x450   : > { %v3953_v39 = vadd.f32 %v3952_v34, %v3864_v20  ;;  %v3873_v19 = vpop.f32.mrf.mxu0 }
 0x451   : > { %v3696_v9 = vadd.f32 %v3695_v47, %v3607_v2 }
 0x452   : > { %v3992_v41 = vmax.f32 %v3953_v39, 0.0 }
 0x453   : > { %v3777_v17 = vpop.f32.mrf.mxu3 }
 0x454   : > { %4024 = vst [vmem:[#allocation4 + $0xd8] sm:$0xff] %v3992_v41  ;;  %v3778_v14 = vadd.f32 %v3777_v17, %v3689_v32  ;;  %v4333_v39 = vpop.f32.mrf.mxu2  ;;  %v7378_v32 = vld [vmem:[%s7453_s6] ss:$0 sm:$0xff]  ;;  %v449_v17 = vld [vmem:[%s6442_s25 + $0x78] sm:$0xff]  }
 0x455   : > { %v4334_v41 = vadd.f32 %v7378_v32, %v4333_v39  ;;  %v4155_v56 = vunpack.c.h.bf16 %v449_v17  ;;  %v4200_v31 = vld [vmem:[#allocation4 + $0xc0] ss:$2 sm:$0xff] }
 0x456   : > { %v3867_v53 = vadd.f32 %v3866_v22, %v3778_v14  ;;  %v3962_v22 = vpop.f32.mrf.mxu1 }
 0x458   : > { %v3956_v11 = vadd.f32 %v3955_v62, %v3867_v53  ;;  %v4154_v53 = vunpack.c.l.bf16 %v449_v17 }
 0x45a   : > { %v3993_v49 = vmax.f32 %v3956_v11, 0.0 }
 0x45b   : > { %v3779_v26 = vpop.f32.mrf.mxu3  ;;  %v4055_v12 = vld [vmem:[#allocation4 + $0xd0] ss:$2 sm:$0xff]  ;;  %v4087_v34 = vld [vmem:[#allocation4 + $0xd1] ss:$2 sm:$0xff] }
 0x45c   : > { %4025 = vst [vmem:[#allocation4 + $0xe0] sm:$0xff] %v3993_v49  ;;  %v3780_v25 = vadd.f32 %v3779_v26, %v3691_v40  ;;  %v4105_v24 = vadd.f32 %v4087_v34, %v4055_v12  ;;  %v4335_v11 = vpop.f32.mrf.mxu2  ;;  %v4104_v40 = vadd.f32 %v4085_v48, %v4053_v51 }
 0x45d   : > { %4182 = vst [vmem:[#allocation4 + $0xd0] sm:$0xff] %v4150_v21  ;;  %v4336_v4 = vadd.f32 %v7378_v32, %v4335_v11 }
 0x45e   : > { %v3869_v0 = vadd.f32 %v3868_v7, %v3780_v25  ;;  %4183 = vst [vmem:[#allocation4 + $0xd8] sm:$0xff] %v4151_v10  ;;  %v4114_v26 = vadd.f32 %v4105_v24, %v4104_v40  ;;  %v4216_v25 = vld [vmem:[#allocation4 + $0xc1] ss:$2 sm:$0xff] }
 0x45f   : > { %v4232_v15 = vadd.f32 %v4216_v25, %v4200_v31 }
 0x460   : > { %v3958_v33 = vadd.f32 %v3957_v54, %v3869_v0  ;;  %v4122_v38 = vmul.f32 0.25, %v4114_v26 }
 0x462   : > { %v3994_v30 = vmax.f32 %v3958_v33, 0.0 }
 0x463   : > { %v3782_v50 = vpop.f32.mrf.mxu3 }
 0x464   : > { %4026 = vst [vmem:[#allocation4 + $0xe8] sm:$0xff] %v3994_v30  ;;  %v3783_v6 = vadd.f32 %v3782_v50, %v3694_v1 }
 0x465   : > { %v4201_v0 = vld [vmem:[#allocation4 + $0xd0] ss:$2 sm:$0xff]  ;;  %v4217_v33 = vld [vmem:[#allocation4 + $0xd1] ss:$2 sm:$0xff] }
 0x466   : > { %v3872_v37 = vadd.f32 %v3871_v36, %v3783_v6  ;;  %v4233_v30 = vadd.f32 %v4217_v33, %v4201_v0 }
 0x468   : > { %v3961_v57 = vadd.f32 %v3960_v3, %v3872_v37  ;;  %v4242_v21 = vadd.f32 %v4233_v30, %v4232_v15 }
 0x46a   : > { %v3995_v18 = vmax.f32 %v3961_v57, 0.0  ;;  %v4250_v3 = vmul.f32 0.25, %v4242_v21 }
 0x46b   : > { %v3784_v60 = vpop.f32.mrf.mxu3  ;;  %v4057_v27 = vld [vmem:[#allocation4 + $0xe0] ss:$2 sm:$0xff]  ;;  %v4089_v8 = vld [vmem:[#allocation4 + $0xe1] ss:$2 sm:$0xff] }
 0x46c   : > { %4027 = vst [vmem:[#allocation4 + $0xf0] sm:$0xff] %v3995_v18  ;;  %v3785_v58 = vadd.f32 %v3784_v60, %v3696_v9  ;;  %v4106_v13 = vadd.f32 %v4089_v8, %v4057_v27 }
 0x46d   : > { %4184 = vst [vmem:[#allocation4 + $0xe0] sm:$0xff] %v4152_v44 }
 0x46e   : > { %v3874_v20 = vadd.f32 %v3873_v19, %v3785_v58  ;;  %4185 = vst [vmem:[#allocation4 + $0xe8] sm:$0xff] %v4153_v29 }
 0x470   : > { %v3963_v16 = vadd.f32 %v3962_v22, %v3874_v20 }
 0x472   : > { %v3996_v23 = vmax.f32 %v3963_v16, 0.0 }
 0x473   : > { %v4434_v59 = vpop.f32.mrf.mxu3 }
 0x474   : > { %4028 = vst [vmem:[#allocation4 + $0xf8] sm:$0xff] %v3996_v23  ;;  %v4435_v62 = vadd.f32 %v7383_v61, %v4434_v59 }
 0x475   : > { %v4202_v36 = vld [vmem:[#allocation4 + $0xe0] ss:$2 sm:$0xff]  ;;  %v4218_v50 = vld [vmem:[#allocation4 + $0xe1] ss:$2 sm:$0xff] }
 0x476   : > { %v4454_v14 = vadd.f32 %v4435_v62, %v4334_v41  ;;  %v4234_v46 = vadd.f32 %v4218_v50, %v4202_v36 }
 0x478   : > { %v4462_v63 = vmax.f32 %v4454_v14, 0.0 }
 0x47a   : > { %4470 = vst [vmem:[%s7389_s3] sm:$0xff] %v4462_v63 }
 0x47b   : > { %v4436_v42 = vpop.f32.mrf.mxu3  ;;  %v4059_v49 = vld [vmem:[#allocation4 + $0xf0] ss:$2 sm:$0xff]  ;;  %v4091_v7 = vld [vmem:[#allocation4 + $0xf1] ss:$2 sm:$0xff] }
 0x47c   : > { %v4437_v54 = vadd.f32 %v7383_v61, %v4436_v42  ;;  %v4107_v55 = vadd.f32 %v4091_v7, %v4059_v49  ;;  %4186 = vst [vmem:[#allocation4 + $0xf0] sm:$0xff] %v4154_v53 }
 0x47d   : > { %4187 = vst [vmem:[#allocation4 + $0xf8] sm:$0xff] %v4155_v56 }
 0x47e   : > { %v4455_v1 = vadd.f32 %v4437_v54, %v4336_v4  ;;  %v4115_v45 = vadd.f32 %v4107_v55, %v4106_v13 }
 0x480   : > { %v4463_v5 = vmax.f32 %v4455_v1, 0.0  ;;  %v4123_v52 = vmul.f32 0.25, %v4115_v45 }
 0x482   : > { %4471 = vst [vmem:[%s7389_s3 + $0x8] sm:$0xff] %v4463_v5  ;;  %v4255_v35 = vpack.c.bf16 %v4123_v52, %v4122_v38 }
 0x484   : > { %4347 = vmatmul.bf16.gmra.mxu2 %v4255_v35  ;;  %v4203_v6 = vld [vmem:[#allocation4 + $0xf0] ss:$2 sm:$0xff]  ;;  %v4219_v51 = vld [vmem:[#allocation4 + $0xf1] ss:$2 sm:$0xff] }
 0x485   : > { %v4235_v48 = vadd.f32 %v4219_v51, %v4203_v6 }
 0x487   : > { %v4243_v10 = vadd.f32 %v4235_v48, %v4234_v46  ;;  %v4338_v37 = vpop.f32.mrf.mxu2 }
 0x488   : > { %v4339_v12 = vadd.f32 %v7378_v32, %v4338_v37 }
 0x489   : > { %v4251_v43 = vmul.f32 0.25, %v4243_v10 }
 0x48b   : > { %v4356_v2 = vpack.c.bf16 %v4251_v43, %v4250_v3 }
 0x48d   : > { %4448 = vmatmul.bf16.gmra.mxu3 %v4356_v2 }
 0x48f   : > { %v4340_v44 = vpop.f32.mrf.mxu2 }
 0x490   : > { %v4341_v18 = vadd.f32 %v7378_v32, %v4340_v44 }
 0x491   : > { %v4439_v28 = vpop.f32.mrf.mxu3 }
 0x492   : > { %v4440_v34 = vadd.f32 %v7383_v61, %v4439_v28 }
 0x494   : > { %v4456_v47 = vadd.f32 %v4440_v34, %v4339_v12 }
 0x496   : > { %v4464_v57 = vmax.f32 %v4456_v47, 0.0 }
 0x498   : > { %4472 = vst [vmem:[%s7389_s3 + $0x10] sm:$0xff] %v4464_v57 }
 0x499   : > { %v4441_v9 = vpop.f32.mrf.mxu3 }
 0x49a   : > { %v4442_v29 = vadd.f32 %v7383_v61, %v4441_v9 }
 0x49c   : > { %v4457_v60 = vadd.f32 %v4442_v29, %v4341_v18 }
 0x49e   : > { %v4465_v58 = vmax.f32 %v4457_v60, 0.0 }
 0x4a0   : > { %4473 = vst [vmem:[%s7389_s3 + $0x18] sm:$0xff] %v4465_v58 }
 0x4c7   : > { %v4343_v27 = vpop.f32.mrf.mxu2 }
 0x4c8   : > { %v4344_v19 = vadd.f32 %v7378_v32, %v4343_v27 }
 0x4cf   : > { %v4345_v16 = vpop.f32.mrf.mxu2 }
 0x4d0   : > { %v4346_v59 = vadd.f32 %v7378_v32, %v4345_v16 }
 0x4d1   : > { %v4444_v8 = vpop.f32.mrf.mxu3 }
 0x4d2   : > { %v4445_v20 = vadd.f32 %v7383_v61, %v4444_v8 }
 0x4d4   : > { %v4458_v39 = vadd.f32 %v4445_v20, %v4344_v19 }
 0x4d6   : > { %v4466_v22 = vmax.f32 %v4458_v39, 0.0 }
 0x4d8   : > { %4474 = vst [vmem:[%s7389_s3 + $0x20] sm:$0xff] %v4466_v22 }
 0x4d9   : > { %v4446_v23 = vpop.f32.mrf.mxu3 }
 0x4da   : > { %v4447_v41 = vadd.f32 %v7383_v61, %v4446_v23 }
 0x4dc   : > { %v4459_v62 = vadd.f32 %v4447_v41, %v4346_v59 }
 0x4de   : > { %v4467_v17 = vmax.f32 %v4459_v62, 0.0 }
 0x4e0   : > { %4475 = vst [vmem:[%s7389_s3 + $0x28] sm:$0xff] %v4467_v17 }
 0x507   : > { %v4348_v14 = vpop.f32.mrf.mxu2 }
 0x508   : > { %v4349_v63 = vadd.f32 %v7378_v32, %v4348_v14 }
 0x50f   : > { %v4350_v56 = vpop.f32.mrf.mxu2 }
 0x510   : > { %v4449_v24 = vpop.f32.mrf.mxu3  ;;  %v4351_v42 = vadd.f32 %v7378_v32, %v4350_v56 }
 0x511   : > { %v4450_v53 = vadd.f32 %v7383_v61, %v4449_v24 }
 0x513   : > { %v4460_v11 = vadd.f32 %v4450_v53, %v4349_v63 }
 0x515   : > { %v4468_v40 = vmax.f32 %v4460_v11, 0.0 }
 0x517   : > { %4476 = vst [vmem:[%s7389_s3 + $0x30] sm:$0xff] %v4468_v40 }
 0x518   : > { %v4451_v31 = vpop.f32.mrf.mxu3 }
 0x519   : > { %v4452_v49 = vadd.f32 %v7383_v61, %v4451_v31 }
 0x51b   : > { %v4461_v7 = vadd.f32 %v4452_v49, %v4351_v42 }
 0x51d   : > { %v4469_v26 = vmax.f32 %v4461_v7, 0.0 }
 0x51f   : > { %4477 = vst [vmem:[%s7389_s3 + $0x38] sm:$0xff] %v4469_v26 }
 0x520   : > { %6200 = shalt.err (!%p6197_p10)
}
 0x521   : > { %s6257_s24 = smov 128   ;;  %s6258_s3 = smov 8  }
 0x522   : > { %5943 = dma.vmem_to_hbm [thread:$0]  (%p6405_p3), %s4492_s20, 1024, %s4494_s28, %s4479_s13, %s6257_s24, %s6257_s24, %s6258_s3  }
 0x523 PF: > { %s4508_s5 = sand.u32 1, %s6235_s30   ;;  %p7573_p12 = scmp.ge.s32.totalorder %s6247_s12, 2 }
 0x524   : > { %s4509_s25 = scalar_lea.sflag [#allocation7], %s4508_s5 }
 0x525   : > { %p5963_p13 = pnand %p7573_p12, %p6344_p6 }
 0x527   : > { %p5964_p0 = pneg %p5963_p13 }
 0x529   : > { %6230 = dma.done.wait (%p5964_p0), %s4509_s25, 1024  }
 0x52a   : > { %6232 = vsyncadd (%p5964_p0), %s4509_s25, 4294966272  ;;  %p24_p5 = scmp.ge.s32.totalorder %s6395_s14, 4   ;;  %s7574_s30 = smov %s6239_s10 }
 0x52b   : > { %s7575_s10 = smov %s6243_s11  ;;  %s7576_s11 = smov %s6411_s22 }
 0x52c   : > { %s7577_s12 = smov %s6395_s14  ;;  %26 = sbr.rel (!%p24_p5) target bundleno = 11 (0xb), region = 150 }
 0x531   :  { %4515 = vsyncpa [#allocation6], 1 }
 0x532   :  { %4517 = vsyncpa [#allocation6 + $0x1], 1 }
 0x533   :  { %4518 = vsyncpa [#allocation9], 1 }
 0x534   :  { %4519 = vsyncpa [#allocation12], 1 }
 0x535   :  { %4520 = vsyncpa [#allocation7], 1 }
 0x536   :  { %4522 = vsyncpa [#allocation7 + $0x1], 1 }

</bundles_post_ra>
